<compile_context>
chip_gen: v7x
topology: tpu7x:2x2x1
jax: 0.10.0
libtpu: 0.0.40
codegen_flags: <defaults>
</compile_context>

<pallas_src>
import jax
import jax.numpy as jnp
import numpy as np
from jax.experimental import pallas as pl
from jax.experimental.pallas import tpu as pltpu

H, W = 14, 14
CIN, COUT = 1280, 640
C2 = 32
HO, WO = H // 2, W // 2            # 7, 7
HW, HWO = H * W, HO * WO           # 196, 49


def _make_pooling_matrix():
    """(H*W, HO*WO) matrix P with P[s, p] = 0.25 iff flat spatial index s of the
    14x14 input falls inside 2x2 output window p of the 7x7 output."""
    s = np.arange(HW)
    h, w = s // W, s % W
    dst = (h // 2) * WO + (w // 2)                          # (196,)
    p = (dst[:, None] == np.arange(HWO)[None, :]) * 0.25    # (196, 49)
    return jnp.asarray(p, dtype=jnp.bfloat16)               # 0.25 exact in bf16


_POOL_MAT = _make_pooling_matrix()


def _conv_pool_cat_kernel(x_ref, w_ref, p_ref, y2_ref, o_ref):
    # x_ref : (CIN, H*W)        activation, channels-first (native NCHW view)
    # w_ref : (COUT, CIN)       1x1-conv weight
    # p_ref : (H*W, HO*WO)      constant 2x2 average-pooling matrix (bf16)
    # y2_ref: (C2, HO*WO)       tensor concatenated on the channel axis
    # o_ref : (COUT+C2, HO*WO)  output
    #
    # AvgPool first (MXU matmul with the constant pooling matrix) ...
    pooled = jnp.dot(x_ref[...].astype(jnp.bfloat16), p_ref[...],
                     preferred_element_type=jnp.float32)            # (CIN, 49)
    # ... then the 1x1 conv on the pooled activations (4x fewer FLOPs).
    conv = jnp.dot(w_ref[...].astype(jnp.bfloat16),
                   pooled.astype(jnp.bfloat16),
                   preferred_element_type=jnp.float32)              # (640, 49)
    o_ref[:COUT, :] = conv
    o_ref[COUT:, :] = y2_ref[...]                                   # channel concat


def conv_pool_cat(x367, w_conv, x376):
    """x367: (1, 1280, 14, 14) NCHW, w_conv: (640, 1280, 1, 1), x376: (1, 32, 7, 7)."""
    # Contiguity-preserving reshapes only (no transposes, no HBM copies).
    x = x367.reshape(CIN, HW)             # (1280, 196)
    w = w_conv.reshape(COUT, CIN)         # (640, 1280)
    y2 = x376.reshape(C2, HWO)            # (32, 49)

    flops = 2 * CIN * HW * HWO + 2 * CIN * COUT * HWO          # pool + conv
    bytes_accessed = (x.size * 4 + w.size * 4 + _POOL_MAT.size * 2
                      + y2.size * 4 + (COUT + C2) * HWO * 4)

    out = pl.pallas_call(
        _conv_pool_cat_kernel,
        out_shape=jax.ShapeDtypeStruct((COUT + C2, HWO), jnp.float32),
        grid=(1,),
        in_specs=[
            pl.BlockSpec((CIN, HW), lambda i: (0, 0)),       # activation
            pl.BlockSpec((COUT, CIN), lambda i: (0, 0)),     # conv weight
            pl.BlockSpec((HW, HWO), lambda i: (0, 0)),       # pooling matrix
            pl.BlockSpec((C2, HWO), lambda i: (0, 0)),       # concat input
        ],
        out_specs=pl.BlockSpec((COUT + C2, HWO), lambda i: (0, 0)),
        compiler_params=pltpu.CompilerParams(
            dimension_semantics=("arbitrary",),
            vmem_limit_bytes=32 * 1024 * 1024),
        cost_estimate=pl.CostEstimate(
            flops=flops, transcendentals=0, bytes_accessed=bytes_accessed),
    )(x, w, _POOL_MAT, y2)

    # (672, 49) -> (1, 672, 7, 7): free reshape, already channels-first.
    return out.reshape(1, COUT + C2, HO, WO)


def _reference(x367, w_conv, x376):
    # Pure-JAX f32 reference for a sanity check.
    conv = jax.lax.conv_general_dilated(
        x367, w_conv, window_strides=(1, 1), padding="VALID",
        dimension_numbers=("NCHW", "OIHW", "NCHW"))
    pooled = jax.lax.reduce_window(
        conv, 0.0, jax.lax.add, (1, 1, 2, 2), (1, 1, 2, 2), "VALID") / 4.0
    return jnp.concatenate([pooled, x376], axis=1)


if __name__ == "__main__":
    key = jax.random.PRNGKey(0)
    k1, k2, k3 = jax.random.split(key, 3)

    x367 = jax.random.normal(k1, (1, CIN, H, W), dtype=jnp.float32)
    x376 = jax.random.normal(k2, (1, C2, HO, WO), dtype=jnp.float32)
    # Deterministic conv weight (Conv2d(1280, 640, 1, bias=False) shape).
    w_conv = jax.random.normal(k3, (COUT, CIN, 1, 1), dtype=jnp.float32) * 0.02

    out = jax.jit(conv_pool_cat)(x367, w_conv, x376)
    out = jax.block_until_ready(out)

    ref = _reference(x367, w_conv, x376)
    assert out.shape == (1, COUT + C2, HO, WO), out.shape
    # bf16 MXU operands with f32 accumulation over CIN=1280: tolerance sized
    # for bf16 rounding (observed max abs error ~1e-2 at this scale).
    assert jnp.allclose(out, ref, atol=5e-2, rtol=5e-2), float(
        jnp.max(jnp.abs(out - ref)))

    print("KERNEL_OK")
</pallas_src>

<mosaic_0001>
module attributes {stable_mosaic.version = 11 : i64} {
  func.func @_conv_pool_cat_kernel(%arg0: i32, %arg1: memref<1280x196xf32, #tpu.memory_space<vmem>>, %arg2: memref<640x1280xf32, #tpu.memory_space<vmem>>, %arg3: memref<196x49xbf16, #tpu.memory_space<vmem>>, %arg4: memref<32x49xf32, #tpu.memory_space<vmem>>, %arg5: memref<672x49xf32, #tpu.memory_space<vmem>>) attributes {dimension_semantics = [#tpu.dimension_semantics<arbitrary>], iteration_bounds = array<i64: 1>, scalar_prefetch = 0 : i64, scratch_operands = 0 : i64, tpu.core_type = #tpu.core_type<tc>, window_params = [{pipeline_mode = #tpu.pipeline_mode<synchronous>, transform_indices = @transform_0, window_bounds = array<i64: 1280, 196>}, {pipeline_mode = #tpu.pipeline_mode<synchronous>, transform_indices = @transform_1, window_bounds = array<i64: 640, 1280>}, {pipeline_mode = #tpu.pipeline_mode<synchronous>, transform_indices = @transform_2, window_bounds = array<i64: 196, 49>}, {pipeline_mode = #tpu.pipeline_mode<synchronous>, transform_indices = @transform_3, window_bounds = array<i64: 32, 49>}, {pipeline_mode = #tpu.pipeline_mode<synchronous>, transform_indices = @transform_4, window_bounds = array<i64: 672, 49>}]} {
    %c0 = arith.constant 0 : index
    %c0_0 = arith.constant 0 : index
    %0 = vector.load %arg1[%c0, %c0_0] : memref<1280x196xf32, #tpu.memory_space<vmem>>, vector<1280x196xf32>
    %1 = arith.truncf %0 : vector<1280x196xf32> to vector<1280x196xbf16>
    %c0_1 = arith.constant 0 : index
    %c0_2 = arith.constant 0 : index
    %2 = vector.load %arg3[%c0_1, %c0_2] : memref<196x49xbf16, #tpu.memory_space<vmem>>, vector<196x49xbf16>
    %cst = arith.constant dense<0.000000e+00> : vector<1280x49xf32>
    %3 = tpu.matmul %1, %2, %cst {dimension_numbers = #tpu.dot_dimension_numbers<[1], [0], [0], [1], [0, 0, 1, 1], [], []>} : vector<1280x196xbf16>, vector<196x49xbf16>, vector<1280x49xf32> -> vector<1280x49xf32>
    %c0_3 = arith.constant 0 : index
    %c0_4 = arith.constant 0 : index
    %4 = vector.load %arg2[%c0_3, %c0_4] : memref<640x1280xf32, #tpu.memory_space<vmem>>, vector<640x1280xf32>
    %5 = arith.truncf %4 : vector<640x1280xf32> to vector<640x1280xbf16>
    %6 = arith.truncf %3 : vector<1280x49xf32> to vector<1280x49xbf16>
    %cst_5 = arith.constant dense<0.000000e+00> : vector<640x49xf32>
    %7 = tpu.matmul %5, %6, %cst_5 {dimension_numbers = #tpu.dot_dimension_numbers<[1], [0], [0], [1], [0, 0, 1, 1], [], []>} : vector<640x1280xbf16>, vector<1280x49xbf16>, vector<640x49xf32> -> vector<640x49xf32>
    %c0_6 = arith.constant 0 : index
    %c0_7 = arith.constant 0 : index
    %8 = vector.load %arg5[%c0_6, %c0_7] : memref<672x49xf32, #tpu.memory_space<vmem>>, vector<640x49xf32>
    tpu.vector_store %arg5[%c0_6, %c0_7], %7 {strides = array<i32>} : memref<672x49xf32, #tpu.memory_space<vmem>>, vector<640x49xf32>,
    %c0_8 = arith.constant 0 : index
    %c0_9 = arith.constant 0 : index
    %9 = vector.load %arg4[%c0_8, %c0_9] : memref<32x49xf32, #tpu.memory_space<vmem>>, vector<32x49xf32>
    %c640 = arith.constant 640 : index
    %c0_10 = arith.constant 0 : index
    %10 = vector.load %arg5[%c640, %c0_10] : memref<672x49xf32, #tpu.memory_space<vmem>>, vector<32x49xf32>
    tpu.vector_store %arg5[%c640, %c0_10], %9 {strides = array<i32>} : memref<672x49xf32, #tpu.memory_space<vmem>>, vector<32x49xf32>,
    return
  }
  func.func @transform_0(%arg0: i32) -> (i32, i32) {
    %c0_i32 = arith.constant 0 : i32
    %c0_i32_0 = arith.constant 0 : i32
    %c0_i32_1 = arith.constant 0 : i32
    return %c0_i32, %c0_i32_0 : i32, i32
  }
  func.func @transform_1(%arg0: i32) -> (i32, i32) {
    %c0_i32 = arith.constant 0 : i32
    %c0_i32_0 = arith.constant 0 : i32
    %c0_i32_1 = arith.constant 0 : i32
    return %c0_i32, %c0_i32_0 : i32, i32
  }
  func.func @transform_2(%arg0: i32) -> (i32, i32) {
    %c0_i32 = arith.constant 0 : i32
    %c0_i32_0 = arith.constant 0 : i32
    %c0_i32_1 = arith.constant 0 : i32
    return %c0_i32, %c0_i32_0 : i32, i32
  }
  func.func @transform_3(%arg0: i32) -> (i32, i32) {
    %c0_i32 = arith.constant 0 : i32
    %c0_i32_0 = arith.constant 0 : i32
    %c0_i32_1 = arith.constant 0 : i32
    return %c0_i32, %c0_i32_0 : i32, i32
  }
  func.func @transform_4(%arg0: i32) -> (i32, i32) {
    %c0_i32 = arith.constant 0 : i32
    %c0_i32_0 = arith.constant 0 : i32
    %c0_i32_1 = arith.constant 0 : i32
    return %c0_i32, %c0_i32_0 : i32, i32
  }
}

</mosaic_0001>

<bundles_post_ra>
// kernel: conv_pool_cat.1
= control target key start
LH: loop header
LB: loop body
LE: loop exit
PB: predicated region body
PF: predicated region fallthrough
CT: control target
= control target key end

     0   :  { %v5353_v0 = vmov 0   ;;  %vm598_vm0 = vcmask 556032   ;;  %vm839_vm1 = vcmask 1041408   ;;  %vm4561_vm2 = vcmask 400384   ;;  %s9706_s2 = inlined_call_operand.vmem [shape: bf16[196,49], index: 2, kind: input, shape index: {}]   ;;  %s9707_s0 = inlined_call_operand.vmem [shape: f32[1280,196], index: 0, kind: input, shape index: {}]   ;;  %s9708_s1 = inlined_call_operand.vmem [shape: f32[640,1280], index: 1, kind: input, shape index: {}]   ;;  %s9709_s4 = inlined_call_operand.vmem [shape: f32[672,49], index: 4, kind: output, shape index: {}]   ;;  %s9710_s3 = inlined_call_operand.vmem [shape: f32[32,49], index: 3, kind: input, shape index: {}]  }
   0x1   :  { %843 = vmatprep.subr.bf16.mxu0 %v5353_v0  ;;  %v5340_v1 = vld [vmem:[%s9706_s2] sm:$0xff]   ;;  %4747 = vmatprep.subr.bf16.mxu1 %v5353_v0  ;;  %v5341_v2 = vld [vmem:[%s9706_s2 + $0x8] sm:$0xff]   ;;  %v5342_v3 = vld [vmem:[%s9706_s2 + $0x10] sm:$0xff]  }
   0x2   :  { %844 = vmatpush1.bf16.msra.mxu0 %v5340_v1  ;;  %v5343_v4 = vld [vmem:[%s9706_s2 + $0x18] sm:$0xff]   ;;  %v19_v5 = vld [vmem:[%s9707_s0 + $0x8] sm:$0xff]  ;;  %v5344_v7 = vld [vmem:[%s9706_s2 + $0x20] sm:$0xff]  }
   0x3   :  { %845 = vmatprep.subr.bf16.mxu0 %v5353_v0  ;;  %v21_v6 = vld [vmem:[%s9707_s0 + $0x18] sm:$0xff]  ;;  %v5345_v9 = vld [vmem:[%s9706_s2 + $0x28] sm:$0xff]   ;;  %v5346_v10 = vld [vmem:[%s9706_s2 + $0x30] sm:$0xff]  }
   0x4   :  { %v339_v8 = vpack.c.bf16 %v21_v6, %v19_v5  ;;  %v5347_v11 = vld [vmem:[%s9706_s2 + $0x38] sm:$0xff]   ;;  %v5348_v12 = vld [vmem:[%s9706_s2 + $0x40] sm:$0xff]   ;;  %v5349_v13 = vld [vmem:[%s9706_s2 + $0x48] sm:$0xff]  }
   0x5   :  { %v5350_v14 = vld [vmem:[%s9706_s2 + $0x50] sm:$0xff]   ;;  %v5351_v15 = vld [vmem:[%s9706_s2 + $0x58] sm:$0xff]   ;;  %v5352_v16 = vld [vmem:[%s9706_s2 + $0x60] ss:$0 sps:$4 sm:$0x33]  }
   0x6   :  { %846 = vmatpush1.bf16.msra.mxu0 %v5341_v2  ;;  %4667 = vmatprep.mubr.msk.bf16.mxu0 %vm598_vm0, %v339_v8  ;;  %v18_v17 = vld [vmem:[%s9707_s0] sm:$0xff]  ;;  %v20_v18 = vld [vmem:[%s9707_s0 + $0x10] sm:$0xff]  ;;  %v841_v19 = vsel %vm839_vm1, %v5352_v16, 0  ;;  %v23_v20 = vld [vmem:[%s9707_s0 + $0x28] sm:$0xff] }
   0x7   :  { %847 = vmatprep.subr.bf16.mxu0 %v5353_v0  ;;  %v25_v21 = vld [vmem:[%s9707_s0 + $0x38] sm:$0xff]  ;;  %v338_v22 = vpack.c.bf16 %v20_v18, %v18_v17  ;;  %v22_v24 = vld [vmem:[%s9707_s0 + $0x20] sm:$0xff]  ;;  %v24_v25 = vld [vmem:[%s9707_s0 + $0x30] sm:$0xff] }
   0x8   :  { %v341_v23 = vpack.c.bf16 %v25_v21, %v23_v20  ;;  %v27_v26 = vld [vmem:[%s9707_s0 + $0x48] sm:$0xff]  ;;  %v29_v27 = vld [vmem:[%s9707_s0 + $0x58] sm:$0xff]  ;;  %v340_v28 = vpack.c.bf16 %v24_v25, %v22_v24  ;;  %v26_v30 = vld [vmem:[%s9707_s0 + $0x40] sm:$0xff] }
   0x9   :  { %v343_v29 = vpack.c.bf16 %v29_v27, %v27_v26  ;;  %v28_v31 = vld [vmem:[%s9707_s0 + $0x50] sm:$0xff]  ;;  %v31_v32 = vld [vmem:[%s9707_s0 + $0x68] sm:$0xff]  ;;  %v33_v33 = vld [vmem:[%s9707_s0 + $0x78] sm:$0xff] }
   0xa   :  { %848 = vmatpush1.bf16.msra.mxu0 %v5342_v3  ;;  %v342_v34 = vpack.c.bf16 %v28_v31, %v26_v30  ;;  %v345_v35 = vpack.c.bf16 %v33_v33, %v31_v32  ;;  %v30_v36 = vld [vmem:[%s9707_s0 + $0x60] sm:$0xff]  ;;  %v32_v37 = vld [vmem:[%s9707_s0 + $0x70] sm:$0xff]  ;;  %v35_v38 = vld [vmem:[%s9707_s0 + $0x88] sm:$0xff] }
   0xb   :  { %849 = vmatprep.subr.bf16.mxu0 %v5353_v0  ;;  %v37_v39 = vld [vmem:[%s9707_s0 + $0x98] sm:$0xff]  ;;  %v344_v40 = vpack.c.bf16 %v32_v37, %v30_v36  ;;  %v34_v42 = vld [vmem:[%s9707_s0 + $0x80] sm:$0xff]  ;;  %v36_v43 = vld [vmem:[%s9707_s0 + $0x90] sm:$0xff] }
   0xc   :  { %v347_v41 = vpack.c.bf16 %v37_v39, %v35_v38  ;;  %v39_v44 = vld [vmem:[%s9707_s0 + $0xa8] sm:$0xff]  ;;  %v41_v45 = vld [vmem:[%s9707_s0 + $0xb8] sm:$0xff]  ;;  %v346_v46 = vpack.c.bf16 %v36_v43, %v34_v42  ;;  %v38_v48 = vld [vmem:[%s9707_s0 + $0xa0] sm:$0xff] }
   0xd   :  { %v349_v47 = vpack.c.bf16 %v41_v45, %v39_v44  ;;  %v40_v49 = vld [vmem:[%s9707_s0 + $0xb0] sm:$0xff]  ;;  %v43_v50 = vld [vmem:[%s9707_s0 + $0xc8] sm:$0xff]  ;;  %v45_v51 = vld [vmem:[%s9707_s0 + $0xd8] sm:$0xff] }
   0xe   :  { %850 = vmatpush1.bf16.msra.mxu0 %v5343_v4  ;;  %v348_v52 = vpack.c.bf16 %v40_v49, %v38_v48  ;;  %v351_v53 = vpack.c.bf16 %v45_v51, %v43_v50  ;;  %v42_v54 = vld [vmem:[%s9707_s0 + $0xc0] sm:$0xff]  ;;  %v44_v55 = vld [vmem:[%s9707_s0 + $0xd0] sm:$0xff]  ;;  %v47_v56 = vld [vmem:[%s9707_s0 + $0xe8] sm:$0xff] }
   0xf   :  { %851 = vmatprep.subr.bf16.mxu0 %v5353_v0  ;;  %v49_v57 = vld [vmem:[%s9707_s0 + $0xf8] sm:$0xff]  ;;  %v350_v58 = vpack.c.bf16 %v44_v55, %v42_v54  ;;  %v46_v60 = vld [vmem:[%s9707_s0 + $0xe0] sm:$0xff]  ;;  %v48_v61 = vld [vmem:[%s9707_s0 + $0xf0] sm:$0xff] }
  0x10   :  { %v353_v59 = vpack.c.bf16 %v49_v57, %v47_v56  ;;  %v51_v62 = vld [vmem:[%s9707_s0 + $0x108] sm:$0xff]  ;;  %v53_v63 = vld [vmem:[%s9707_s0 + $0x118] sm:$0xff]  ;;  %v352_v1 = vpack.c.bf16 %v48_v61, %v46_v60  ;;  %v50_v3 = vld [vmem:[%s9707_s0 + $0x100] sm:$0xff] }
  0x11   :  { %v355_v2 = vpack.c.bf16 %v53_v63, %v51_v62  ;;  %v52_v4 = vld [vmem:[%s9707_s0 + $0x110] sm:$0xff]  ;;  %v55_v5 = vld [vmem:[%s9707_s0 + $0x128] sm:$0xff]  ;;  %v57_v6 = vld [vmem:[%s9707_s0 + $0x138] sm:$0xff] }
  0x12   :  { %852 = vmatpush1.bf16.msra.mxu0 %v5344_v7  ;;  %v354_v7 = vpack.c.bf16 %v52_v4, %v50_v3  ;;  %v357_v8 = vpack.c.bf16 %v57_v6, %v55_v5  ;;  %v60_v16 = vld [vmem:[%s9707_s0 + $0x150] sm:$0xff]  ;;  %v63_v17 = vld [vmem:[%s9707_s0 + $0x168] sm:$0xff]  ;;  %v65_v18 = vld [vmem:[%s9707_s0 + $0x178] sm:$0xff] }
  0x13   :  { %853 = vmatprep.subr.bf16.mxu0 %v5353_v0  ;;  %v361_v20 = vpack.c.bf16 %v65_v18, %v63_v17  ;;  %v62_v21 = vld [vmem:[%s9707_s0 + $0x160] sm:$0xff]  ;;  %v69_v24 = vld [vmem:[%s9707_s0 + $0x198] sm:$0xff] }
  0x14   :  { %v66_v27 = vld [vmem:[%s9707_s0 + $0x180] sm:$0xff]  ;;  %v73_v30 = vld [vmem:[%s9707_s0 + $0x1b8] sm:$0xff] }
  0x15   :  { %v70_v33 = vld [vmem:[%s9707_s0 + $0x1a0] sm:$0xff]  ;;  %v77_v36 = vld [vmem:[%s9707_s0 + $0x1d8] sm:$0xff] }
  0x16   :  { %854 = vmatpush1.bf16.msra.mxu0 %v5345_v9  ;;  %v54_v9 = vld [vmem:[%s9707_s0 + $0x120] sm:$0xff]  ;;  %v81_v42 = vld [vmem:[%s9707_s0 + $0x1f8] sm:$0xff] }
  0x17   :  { %855 = vmatprep.subr.bf16.mxu0 %v5353_v0  ;;  %v74_v39 = vld [vmem:[%s9707_s0 + $0x1c0] sm:$0xff]  ;;  %v85_v48 = vld [vmem:[%s9707_s0 + $0x218] sm:$0xff] }
  0x18   :  { %v78_v45 = vld [vmem:[%s9707_s0 + $0x1e0] sm:$0xff]  ;;  %v89_v54 = vld [vmem:[%s9707_s0 + $0x238] sm:$0xff] }
  0x19   :  { %v82_v51 = vld [vmem:[%s9707_s0 + $0x200] sm:$0xff]  ;;  %v93_v60 = vld [vmem:[%s9707_s0 + $0x258] sm:$0xff] }
  0x1a   :  { %856 = vmatpush1.bf16.msra.mxu0 %v5346_v10  ;;  %v56_v10 = vld [vmem:[%s9707_s0 + $0x130] sm:$0xff]  ;;  %v86_v57 = vld [vmem:[%s9707_s0 + $0x220] sm:$0xff]  ;;  %v97_v3 = vld [vmem:[%s9707_s0 + $0x278] sm:$0xff] }
  0x1b   :  { %857 = vmatprep.subr.bf16.mxu0 %v5353_v0  ;;  %v90_v63 = vld [vmem:[%s9707_s0 + $0x240] sm:$0xff] }
  0x1c   :  { %v94_v6 = vld [vmem:[%s9707_s0 + $0x260] sm:$0xff] }
  0x1d   :  { %v102_v18 = vld [vmem:[%s9707_s0 + $0x2a0] sm:$0xff] }
  0x1e   :  { %858 = vmatpush1.bf16.msra.mxu0 %v5347_v11  ;;  %v59_v11 = vld [vmem:[%s9707_s0 + $0x148] sm:$0xff] }
  0x1f   :  { %859 = vmatprep.subr.bf16.mxu0 %v5353_v0 }
  0x22   :  { %860 = vmatpush1.bf16.msra.mxu0 %v5348_v12  ;;  %v61_v12 = vld [vmem:[%s9707_s0 + $0x158] sm:$0xff] }
  0x23   :  { %861 = vmatprep.subr.bf16.mxu0 %v5353_v0 }
  0x26   :  { %862 = vmatpush1.bf16.msra.mxu0 %v5349_v13  ;;  %v356_v13 = vpack.c.bf16 %v56_v10, %v54_v9  ;;  %v101_v9 = vld [vmem:[%s9707_s0 + $0x298] sm:$0xff] }
  0x27   :  { %863 = vmatprep.subr.bf16.mxu0 %v5353_v0 }
  0x2a   :  { %864 = vmatpush1.bf16.msra.mxu0 %v5350_v14  ;;  %v359_v14 = vpack.c.bf16 %v61_v12, %v59_v11  ;;  %v98_v12 = vld [vmem:[%s9707_s0 + $0x280] sm:$0xff] }
  0x2b   :  { %865 = vmatprep.subr.bf16.mxu0 %v5353_v0 }
  0x2e   :  { %866 = vmatpush1.bf16.msra.mxu0 %v5351_v15  ;;  %v58_v15 = vld [vmem:[%s9707_s0 + $0x140] sm:$0xff] }
  0x2f   :  { %867 = vmatprep.subr.bf16.mxu0 %v5353_v0 }
  0x32   :  { %868 = vmatpush1.bf16.msra.mxu0 %v841_v19  ;;  %v358_v19 = vpack.c.bf16 %v60_v16, %v58_v15  ;;  %v105_v15 = vld [vmem:[%s9707_s0 + $0x2b8] sm:$0xff] }
  0x33   :  { %2796 = vmatprep.subr.bf16.mxu0 %v5353_v0 }
  0x35   :  { %876 = vmatmul.mubr.bf16.vlgmr.msra.gmra.mrb[0].mxu0 %v338_v22  ;;  %v64_v22 = vld [vmem:[%s9707_s0 + $0x170] sm:$0xff] }
  0x36   :  { %4668 = vmatprep.mubr.msk.bf16.mxu0 %vm598_vm0, %v341_v23  ;;  %v67_v23 = vld [vmem:[%s9707_s0 + $0x188] sm:$0xff]  ;;  %v360_v25 = vpack.c.bf16 %v64_v22, %v62_v21  ;;  %v109_v21 = vld [vmem:[%s9707_s0 + $0x2d8] sm:$0xff] }
  0x37   :  { %v363_v26 = vpack.c.bf16 %v69_v24, %v67_v23  ;;  %v106_v24 = vld [vmem:[%s9707_s0 + $0x2c0] sm:$0xff] }
  0x3d   :  { %884 = vmatmul.mubr.bf16.gmra.mrb[4].mxu0 %v340_v28  ;;  %v68_v28 = vld [vmem:[%s9707_s0 + $0x190] sm:$0xff] }
  0x3e   :  { %4669 = vmatprep.mubr.msk.bf16.mxu0 %vm598_vm0, %v343_v29  ;;  %v71_v29 = vld [vmem:[%s9707_s0 + $0x1a8] sm:$0xff]  ;;  %v362_v31 = vpack.c.bf16 %v68_v28, %v66_v27  ;;  %v113_v27 = vld [vmem:[%s9707_s0 + $0x2f8] sm:$0xff] }
  0x3f   :  { %v365_v32 = vpack.c.bf16 %v73_v30, %v71_v29  ;;  %v110_v30 = vld [vmem:[%s9707_s0 + $0x2e0] sm:$0xff] }
  0x45   :  { %892 = vmatmul.mubr.bf16.gmra.mrb[8].mxu0 %v342_v34  ;;  %v72_v34 = vld [vmem:[%s9707_s0 + $0x1b0] sm:$0xff] }
  0x46   :  { %4670 = vmatprep.mubr.msk.bf16.mxu0 %vm598_vm0, %v345_v35  ;;  %v75_v35 = vld [vmem:[%s9707_s0 + $0x1c8] sm:$0xff]  ;;  %v364_v37 = vpack.c.bf16 %v72_v34, %v70_v33  ;;  %v117_v33 = vld [vmem:[%s9707_s0 + $0x318] sm:$0xff] }
  0x47   :  { %v367_v38 = vpack.c.bf16 %v77_v36, %v75_v35  ;;  %v114_v36 = vld [vmem:[%s9707_s0 + $0x300] sm:$0xff] }
  0x4d   :  { %900 = vmatmul.mubr.bf16.gmra.mrb[12].mxu0 %v344_v40  ;;  %v76_v40 = vld [vmem:[%s9707_s0 + $0x1d0] sm:$0xff] }
  0x4e   :  { %4671 = vmatprep.mubr.msk.bf16.mxu0 %vm598_vm0, %v347_v41  ;;  %v79_v41 = vld [vmem:[%s9707_s0 + $0x1e8] sm:$0xff]  ;;  %v366_v43 = vpack.c.bf16 %v76_v40, %v74_v39  ;;  %v121_v39 = vld [vmem:[%s9707_s0 + $0x338] sm:$0xff] }
  0x4f   :  { %v369_v44 = vpack.c.bf16 %v81_v42, %v79_v41  ;;  %v118_v42 = vld [vmem:[%s9707_s0 + $0x320] sm:$0xff] }
  0x55   :  { %908 = vmatmul.mubr.bf16.gmra.mrb[16].mxu0 %v346_v46  ;;  %v80_v46 = vld [vmem:[%s9707_s0 + $0x1f0] sm:$0xff] }
  0x56   :  { %4672 = vmatprep.mubr.msk.bf16.mxu0 %vm598_vm0, %v349_v47  ;;  %v83_v47 = vld [vmem:[%s9707_s0 + $0x208] sm:$0xff]  ;;  %v368_v49 = vpack.c.bf16 %v80_v46, %v78_v45  ;;  %v125_v45 = vld [vmem:[%s9707_s0 + $0x358] sm:$0xff] }
  0x57   :  { %v371_v50 = vpack.c.bf16 %v85_v48, %v83_v47  ;;  %v122_v48 = vld [vmem:[%s9707_s0 + $0x340] sm:$0xff] }
  0x5d   :  { %916 = vmatmul.mubr.bf16.gmra.mrb[20].mxu0 %v348_v52  ;;  %v84_v52 = vld [vmem:[%s9707_s0 + $0x210] sm:$0xff] }
  0x5e   :  { %4673 = vmatprep.mubr.msk.bf16.mxu0 %vm598_vm0, %v351_v53  ;;  %v87_v53 = vld [vmem:[%s9707_s0 + $0x228] sm:$0xff]  ;;  %v370_v55 = vpack.c.bf16 %v84_v52, %v82_v51  ;;  %v129_v51 = vld [vmem:[%s9707_s0 + $0x378] sm:$0xff] }
  0x5f   :  { %v373_v56 = vpack.c.bf16 %v89_v54, %v87_v53  ;;  %v126_v54 = vld [vmem:[%s9707_s0 + $0x360] sm:$0xff] }
  0x65   :  { %924 = vmatmul.mubr.bf16.gmra.mrb[24].mxu0 %v350_v58  ;;  %v88_v58 = vld [vmem:[%s9707_s0 + $0x230] sm:$0xff] }
  0x66   :  { %4674 = vmatprep.mubr.msk.bf16.mxu0 %vm598_vm0, %v353_v59  ;;  %v91_v59 = vld [vmem:[%s9707_s0 + $0x248] sm:$0xff]  ;;  %v372_v61 = vpack.c.bf16 %v88_v58, %v86_v57  ;;  %v133_v57 = vld [vmem:[%s9707_s0 + $0x398] sm:$0xff] }
  0x67   :  { %v375_v62 = vpack.c.bf16 %v93_v60, %v91_v59 }
  0x6d   :  { %932 = vmatmul.mubr.bf16.gmra.mrb[28].mxu0 %v352_v1  ;;  %v92_v1 = vld [vmem:[%s9707_s0 + $0x250] sm:$0xff] }
  0x6e   :  { %4675 = vmatprep.mubr.msk.bf16.mxu0 %vm598_vm0, %v355_v2  ;;  %v95_v2 = vld [vmem:[%s9707_s0 + $0x268] sm:$0xff]  ;;  %v374_v4 = vpack.c.bf16 %v92_v1, %v90_v63 }
  0x6f   :  { %v377_v5 = vpack.c.bf16 %v97_v3, %v95_v2  ;;  %v130_v2 = vld [vmem:[%s9707_s0 + $0x380] sm:$0xff]  ;;  %v132_v3 = vld [vmem:[%s9707_s0 + $0x390] sm:$0xff] }
  0x75   :  { %940 = vmatmul.mubr.bf16.gmra.mrb[32].mxu0 %v354_v7  ;;  %v96_v7 = vld [vmem:[%s9707_s0 + $0x270] sm:$0xff] }
  0x76   :  { %4676 = vmatprep.mubr.msk.bf16.mxu0 %vm598_vm0, %v357_v8  ;;  %v99_v8 = vld [vmem:[%s9707_s0 + $0x288] sm:$0xff]  ;;  %v376_v10 = vpack.c.bf16 %v96_v7, %v94_v6 }
  0x77   :  { %v379_v11 = vpack.c.bf16 %v101_v9, %v99_v8  ;;  %v394_v8 = vpack.c.bf16 %v132_v3, %v130_v2 }
  0x7d   :  { %948 = vmatmul.mubr.bf16.gmra.mrb[36].mxu0 %v356_v13  ;;  %v100_v13 = vld [vmem:[%s9707_s0 + $0x290] sm:$0xff] }
  0x7e   :  { %4677 = vmatprep.mubr.msk.bf16.mxu0 %vm598_vm0, %v359_v14  ;;  %v103_v14 = vld [vmem:[%s9707_s0 + $0x2a8] sm:$0xff]  ;;  %v378_v16 = vpack.c.bf16 %v100_v13, %v98_v12  ;;  %v134_v13 = vld [vmem:[%s9707_s0 + $0x3a0] sm:$0xff] }
  0x7f   :  { %v381_v17 = vpack.c.bf16 %v105_v15, %v103_v14  ;;  %v136_v14 = vld [vmem:[%s9707_s0 + $0x3b0] sm:$0xff]  ;;  %v139_v15 = vld [vmem:[%s9707_s0 + $0x3c8] sm:$0xff] }
  0x85   :  { %956 = vmatmul.mubr.bf16.gmra.mrb[40].mxu0 %v358_v19  ;;  %v104_v19 = vld [vmem:[%s9707_s0 + $0x2b0] sm:$0xff] }
  0x86   :  { %4678 = vmatprep.mubr.msk.bf16.mxu0 %vm598_vm0, %v361_v20  ;;  %v107_v20 = vld [vmem:[%s9707_s0 + $0x2c8] sm:$0xff]  ;;  %v380_v22 = vpack.c.bf16 %v104_v19, %v102_v18  ;;  %v396_v19 = vpack.c.bf16 %v136_v14, %v134_v13 }
  0x87   :  { %v383_v23 = vpack.c.bf16 %v109_v21, %v107_v20 }
  0x8d   :  { %964 = vmatmul.mubr.bf16.gmra.mrb[44].mxu0 %v360_v25  ;;  %v108_v25 = vld [vmem:[%s9707_s0 + $0x2d0] sm:$0xff] }
  0x8e   :  { %4679 = vmatprep.mubr.msk.bf16.mxu0 %vm598_vm0, %v363_v26  ;;  %v111_v26 = vld [vmem:[%s9707_s0 + $0x2e8] sm:$0xff]  ;;  %v382_v28 = vpack.c.bf16 %v108_v25, %v106_v24  ;;  %v138_v24 = vld [vmem:[%s9707_s0 + $0x3c0] sm:$0xff]  ;;  %v140_v25 = vld [vmem:[%s9707_s0 + $0x3d0] sm:$0xff] }
  0x8f   :  { %v385_v29 = vpack.c.bf16 %v113_v27, %v111_v26  ;;  %v143_v26 = vld [vmem:[%s9707_s0 + $0x3e8] sm:$0xff]  ;;  %v145_v27 = vld [vmem:[%s9707_s0 + $0x3f8] sm:$0xff] }
  0x95   :  { %972 = vmatmul.mubr.bf16.gmra.mrb[48].mxu0 %v362_v31  ;;  %v112_v31 = vld [vmem:[%s9707_s0 + $0x2f0] sm:$0xff] }
  0x96   :  { %4680 = vmatprep.mubr.msk.bf16.mxu0 %vm598_vm0, %v365_v32  ;;  %v115_v32 = vld [vmem:[%s9707_s0 + $0x308] sm:$0xff]  ;;  %v384_v34 = vpack.c.bf16 %v112_v31, %v110_v30  ;;  %v398_v30 = vpack.c.bf16 %v140_v25, %v138_v24 }
  0x97   :  { %v387_v35 = vpack.c.bf16 %v117_v33, %v115_v32  ;;  %v401_v32 = vpack.c.bf16 %v145_v27, %v143_v26  ;;  %v162_v27 = vld [vmem:[%s9707_s0 + $0x480] sm:$0xff] }
  0x9d   :  { %980 = vmatmul.mubr.bf16.gmra.mrb[52].mxu0 %v364_v37  ;;  %v116_v37 = vld [vmem:[%s9707_s0 + $0x310] sm:$0xff] }
  0x9e   :  { %4681 = vmatprep.mubr.msk.bf16.mxu0 %vm598_vm0, %v367_v38  ;;  %v119_v38 = vld [vmem:[%s9707_s0 + $0x328] sm:$0xff]  ;;  %v386_v40 = vpack.c.bf16 %v116_v37, %v114_v36  ;;  %v144_v36 = vld [vmem:[%s9707_s0 + $0x3f0] sm:$0xff] }
  0x9f   :  { %v389_v41 = vpack.c.bf16 %v121_v39, %v119_v38  ;;  %v147_v37 = vld [vmem:[%s9707_s0 + $0x408] sm:$0xff]  ;;  %v149_v38 = vld [vmem:[%s9707_s0 + $0x418] sm:$0xff] }
  0xa5   :  { %988 = vmatmul.mubr.bf16.gmra.mrb[56].mxu0 %v366_v43  ;;  %v120_v43 = vld [vmem:[%s9707_s0 + $0x330] sm:$0xff] }
  0xa6   :  { %4682 = vmatprep.mubr.msk.bf16.mxu0 %vm598_vm0, %v369_v44  ;;  %v123_v44 = vld [vmem:[%s9707_s0 + $0x348] sm:$0xff]  ;;  %v388_v46 = vpack.c.bf16 %v120_v43, %v118_v42  ;;  %v403_v43 = vpack.c.bf16 %v149_v38, %v147_v37  ;;  %v166_v38 = vld [vmem:[%s9707_s0 + $0x4a0] sm:$0xff] }
  0xa7   :  { %v391_v47 = vpack.c.bf16 %v125_v45, %v123_v44 }
  0xad   :  { %996 = vmatmul.mubr.bf16.gmra.mrb[60].mxu0 %v368_v49  ;;  %v124_v49 = vld [vmem:[%s9707_s0 + $0x350] sm:$0xff] }
  0xae   :  { %4683 = vmatprep.mubr.msk.bf16.mxu0 %vm598_vm0, %v371_v50  ;;  %v127_v50 = vld [vmem:[%s9707_s0 + $0x368] sm:$0xff]  ;;  %v390_v52 = vpack.c.bf16 %v124_v49, %v122_v48  ;;  %v153_v49 = vld [vmem:[%s9707_s0 + $0x438] sm:$0xff] }
  0xaf   :  { %v393_v53 = vpack.c.bf16 %v129_v51, %v127_v50  ;;  %v151_v48 = vld [vmem:[%s9707_s0 + $0x428] sm:$0xff] }
  0xb5   :  { %1004 = vmatmul.mubr.bf16.gmra.mrb[64].mxu0 %v370_v55  ;;  %v128_v55 = vld [vmem:[%s9707_s0 + $0x370] sm:$0xff] }
  0xb6   :  { %4684 = vmatprep.mubr.msk.bf16.mxu0 %vm598_vm0, %v373_v56  ;;  %v131_v56 = vld [vmem:[%s9707_s0 + $0x388] sm:$0xff]  ;;  %v392_v60 = vpack.c.bf16 %v128_v55, %v126_v54  ;;  %v405_v54 = vpack.c.bf16 %v153_v49, %v151_v48  ;;  %v170_v49 = vld [vmem:[%s9707_s0 + $0x4c0] sm:$0xff] }
  0xbd   :  { %1012 = vmatmul.mubr.bf16.gmra.mrb[68].mxu0 %v372_v61 }
  0xbe   :  { %4685 = vmatprep.mubr.msk.bf16.mxu0 %vm598_vm0, %v375_v62  ;;  %v395_v62 = vpack.c.bf16 %v133_v57, %v131_v56  ;;  %v150_v57 = vld [vmem:[%s9707_s0 + $0x420] sm:$0xff] }
  0xc5   :  { %1020 = vmatmul.mubr.bf16.gmra.mrb[72].mxu0 %v374_v4  ;;  %v135_v4 = vld [vmem:[%s9707_s0 + $0x3a8] sm:$0xff] }
  0xc6   :  { %4686 = vmatprep.mubr.msk.bf16.mxu0 %vm598_vm0, %v377_v5  ;;  %v137_v5 = vld [vmem:[%s9707_s0 + $0x3b8] sm:$0xff] }
  0xcd   :  { %1028 = vmatmul.mubr.bf16.gmra.mrb[76].mxu0 %v376_v10  ;;  %v397_v10 = vpack.c.bf16 %v137_v5, %v135_v4  ;;  %v154_v5 = vld [vmem:[%s9707_s0 + $0x440] sm:$0xff] }
  0xce   :  { %4687 = vmatprep.mubr.msk.bf16.mxu0 %vm598_vm0, %v379_v11 }
  0xd5   :  { %1036 = vmatmul.mubr.bf16.gmra.mrb[80].mxu0 %v378_v16  ;;  %v141_v16 = vld [vmem:[%s9707_s0 + $0x3d8] sm:$0xff] }
  0xd6   :  { %4688 = vmatprep.mubr.msk.bf16.mxu0 %vm598_vm0, %v381_v17  ;;  %v399_v21 = vpack.c.bf16 %v141_v16, %v139_v15  ;;  %v158_v16 = vld [vmem:[%s9707_s0 + $0x460] sm:$0xff] }
  0xdd   :  { %1044 = vmatmul.mubr.bf16.gmra.mrb[84].mxu0 %v380_v22 }
  0xde   :  { %4689 = vmatprep.mubr.msk.bf16.mxu0 %vm598_vm0, %v383_v23 }
  0xe5   :  { %1052 = vmatmul.mubr.bf16.gmra.mrb[88].mxu0 %v382_v28 }
  0xe6   :  { %4690 = vmatprep.mubr.msk.bf16.mxu0 %vm598_vm0, %v385_v29 }
  0xed   :  { %1060 = vmatmul.mubr.bf16.gmra.mrb[92].mxu0 %v384_v34 }
  0xee   :  { %4691 = vmatprep.mubr.msk.bf16.mxu0 %vm598_vm0, %v387_v35  ;;  %v142_v35 = vld [vmem:[%s9707_s0 + $0x3e0] sm:$0xff] }
  0xf5   :  { %1068 = vmatmul.mubr.bf16.gmra.mrb[96].mxu0 %v386_v40 }
  0xf6   :  { %4692 = vmatprep.mubr.msk.bf16.mxu0 %vm598_vm0, %v389_v41  ;;  %v400_v41 = vpack.c.bf16 %v144_v36, %v142_v35 }
  0xfd   :  { %1076 = vmatmul.mubr.bf16.gmra.mrb[100].mxu0 %v388_v46  ;;  %v146_v46 = vld [vmem:[%s9707_s0 + $0x400] sm:$0xff] }
  0xfe   :  { %4693 = vmatprep.mubr.msk.bf16.mxu0 %vm598_vm0, %v391_v47  ;;  %v148_v47 = vld [vmem:[%s9707_s0 + $0x410] sm:$0xff] }
 0x105   :  { %1084 = vmatmul.mubr.bf16.gmra.mrb[104].mxu0 %v390_v52  ;;  %v402_v52 = vpack.c.bf16 %v148_v47, %v146_v46 }
 0x106   :  { %4694 = vmatprep.mubr.msk.bf16.mxu0 %vm598_vm0, %v393_v53 }
 0x108   :  { %v877_v58 = vpop.f32.mrb[0].mxu0 }
 0x109   :  { %v879_v59 = vpop.f32.mrb[1].mxu0 }
 0x10a   :  { %v880_v61 = vpop.f32.mrb[2].mxu0  ;;  %v155_v59 = vld [vmem:[%s9707_s0 + $0x448] sm:$0xff] }
 0x10b   :  { %v2716_v63 = vpack.c.bf16 %v880_v61, %v877_v58  ;;  %v882_v1 = vpop.f32.mrb[3].mxu0  ;;  %v152_v58 = vld [vmem:[%s9707_s0 + $0x430] sm:$0xff] }
 0x10d   :  { %1092 = vmatmul.mubr.bf16.gmra.mrb[108].mxu0 %v392_v60  ;;  %v157_v60 = vld [vmem:[%s9707_s0 + $0x458] sm:$0xff] }
 0x10e   :  { %2797 = vmatpush1.bf16.msra.mxu0 %v2716_v63  ;;  %4695 = vmatprep.mubr.msk.bf16.mxu0 %vm598_vm0, %v395_v62  ;;  %v404_v63 = vpack.c.bf16 %v152_v58, %v150_v57  ;;  %v407_v2 = vpack.c.bf16 %v157_v60, %v155_v59  ;;  %v174_v60 = vld [vmem:[%s9707_s0 + $0x4e0] sm:$0xff] }
 0x10f   :  { %2798 = vmatprep.subr.bf16.mxu0 %v5353_v0 }
 0x110   :  { %v885_v6 = vpop.f32.mrb[4].mxu0 }
 0x111   :  { %v887_v7 = vpop.f32.mrb[5].mxu0 }
 0x112   :  { %v888_v9 = vpop.f32.mrb[6].mxu0  ;;  %v159_v7 = vld [vmem:[%s9707_s0 + $0x468] sm:$0xff] }
 0x113   :  { %v2717_v11 = vpack.c.bf16 %v888_v9, %v885_v6  ;;  %v890_v12 = vpop.f32.mrb[7].mxu0  ;;  %v156_v6 = vld [vmem:[%s9707_s0 + $0x450] sm:$0xff] }
 0x115   :  { %1100 = vmatmul.mubr.bf16.gmra.mrb[112].mxu0 %v394_v8  ;;  %v161_v8 = vld [vmem:[%s9707_s0 + $0x478] sm:$0xff] }
 0x116   :  { %2799 = vmatpush1.bf16.msra.mxu0 %v2717_v11  ;;  %4696 = vmatprep.mubr.msk.bf16.mxu0 %vm598_vm0, %v397_v10  ;;  %v406_v11 = vpack.c.bf16 %v156_v6, %v154_v5  ;;  %v409_v13 = vpack.c.bf16 %v161_v8, %v159_v7  ;;  %v178_v8 = vld [vmem:[%s9707_s0 + $0x500] sm:$0xff] }
 0x117   :  { %2800 = vmatprep.subr.bf16.mxu0 %v5353_v0 }
 0x118   :  { %v893_v17 = vpop.f32.mrb[8].mxu0 }
 0x119   :  { %v895_v18 = vpop.f32.mrb[9].mxu0 }
 0x11a   :  { %v896_v20 = vpop.f32.mrb[10].mxu0  ;;  %v163_v18 = vld [vmem:[%s9707_s0 + $0x488] sm:$0xff] }
 0x11b   :  { %v2718_v22 = vpack.c.bf16 %v896_v20, %v893_v17  ;;  %v898_v23 = vpop.f32.mrb[11].mxu0  ;;  %v160_v17 = vld [vmem:[%s9707_s0 + $0x470] sm:$0xff] }
 0x11d   :  { %1108 = vmatmul.mubr.bf16.gmra.mrb[116].mxu0 %v396_v19  ;;  %v165_v19 = vld [vmem:[%s9707_s0 + $0x498] sm:$0xff] }
 0x11e   :  { %2801 = vmatpush1.bf16.msra.mxu0 %v2718_v22  ;;  %4697 = vmatprep.mubr.msk.bf16.mxu0 %vm598_vm0, %v399_v21  ;;  %v408_v22 = vpack.c.bf16 %v160_v17, %v158_v16  ;;  %v411_v24 = vpack.c.bf16 %v165_v19, %v163_v18  ;;  %v182_v19 = vld [vmem:[%s9707_s0 + $0x520] sm:$0xff] }
 0x11f   :  { %2802 = vmatprep.subr.bf16.mxu0 %v5353_v0 }
 0x120   :  { %v901_v28 = vpop.f32.mrb[12].mxu0 }
 0x121   :  { %v903_v29 = vpop.f32.mrb[13].mxu0 }
 0x122   :  { %v904_v31 = vpop.f32.mrb[14].mxu0  ;;  %v167_v29 = vld [vmem:[%s9707_s0 + $0x4a8] sm:$0xff] }
 0x123   :  { %v2719_v33 = vpack.c.bf16 %v904_v31, %v901_v28  ;;  %v906_v34 = vpop.f32.mrb[15].mxu0  ;;  %v164_v28 = vld [vmem:[%s9707_s0 + $0x490] sm:$0xff] }
 0x125   :  { %1116 = vmatmul.mubr.bf16.gmra.mrb[120].mxu0 %v398_v30  ;;  %v169_v30 = vld [vmem:[%s9707_s0 + $0x4b8] sm:$0xff] }
 0x126   :  { %2803 = vmatpush1.bf16.msra.mxu0 %v2719_v33  ;;  %4698 = vmatprep.mubr.msk.bf16.mxu0 %vm598_vm0, %v401_v32  ;;  %v410_v33 = vpack.c.bf16 %v164_v28, %v162_v27  ;;  %v413_v35 = vpack.c.bf16 %v169_v30, %v167_v29  ;;  %v186_v30 = vld [vmem:[%s9707_s0 + $0x540] sm:$0xff] }
 0x127   :  { %2804 = vmatprep.subr.bf16.mxu0 %v5353_v0 }
 0x128   :  { %v909_v39 = vpop.f32.mrb[16].mxu0 }
 0x129   :  { %v911_v40 = vpop.f32.mrb[17].mxu0 }
 0x12a   :  { %v912_v42 = vpop.f32.mrb[18].mxu0  ;;  %v171_v40 = vld [vmem:[%s9707_s0 + $0x4c8] sm:$0xff] }
 0x12b   :  { %v2720_v44 = vpack.c.bf16 %v912_v42, %v909_v39  ;;  %v914_v45 = vpop.f32.mrb[19].mxu0  ;;  %v168_v39 = vld [vmem:[%s9707_s0 + $0x4b0] sm:$0xff] }
 0x12d   :  { %1124 = vmatmul.mubr.bf16.gmra.mrb[124].mxu0 %v400_v41  ;;  %v173_v41 = vld [vmem:[%s9707_s0 + $0x4d8] sm:$0xff] }
 0x12e   :  { %2805 = vmatpush1.bf16.msra.mxu0 %v2720_v44  ;;  %4699 = vmatprep.mubr.msk.bf16.mxu0 %vm598_vm0, %v403_v43  ;;  %v412_v44 = vpack.c.bf16 %v168_v39, %v166_v38  ;;  %v415_v46 = vpack.c.bf16 %v173_v41, %v171_v40  ;;  %v1919_v41 = vld [vmem:[%s9708_s1 + $0xc98] sm:$0xff] }
 0x12f   :  { %2806 = vmatprep.subr.bf16.mxu0 %v5353_v0 }
 0x130   :  { %v917_v50 = vpop.f32.mrb[20].mxu0 }
 0x131   :  { %v919_v51 = vpop.f32.mrb[21].mxu0 }
 0x132   :  { %v920_v53 = vpop.f32.mrb[22].mxu0  ;;  %v175_v51 = vld [vmem:[%s9707_s0 + $0x4e8] sm:$0xff] }
 0x133   :  { %v2721_v55 = vpack.c.bf16 %v920_v53, %v917_v50  ;;  %v922_v56 = vpop.f32.mrb[23].mxu0  ;;  %v172_v50 = vld [vmem:[%s9707_s0 + $0x4d0] sm:$0xff] }
 0x135   :  { %1132 = vmatmul.mubr.bf16.gmra.mrb[128].mxu0 %v402_v52  ;;  %v177_v52 = vld [vmem:[%s9707_s0 + $0x4f8] sm:$0xff] }
 0x136   :  { %2807 = vmatpush1.bf16.msra.mxu0 %v2721_v55  ;;  %4700 = vmatprep.mubr.msk.bf16.mxu0 %vm598_vm0, %v405_v54  ;;  %v414_v55 = vpack.c.bf16 %v172_v50, %v170_v49  ;;  %v417_v57 = vpack.c.bf16 %v177_v52, %v175_v51 }
 0x137   :  { %2808 = vmatprep.subr.bf16.mxu0 %v5353_v0 }
 0x138   :  { %v925_v61 = vpop.f32.mrb[24].mxu0 }
 0x139   :  { %v927_v62 = vpop.f32.mrb[25].mxu0 }
 0x13a   :  { %v928_v1 = vpop.f32.mrb[26].mxu0  ;;  %v179_v62 = vld [vmem:[%s9707_s0 + $0x508] sm:$0xff] }
 0x13b   :  { %v2722_v3 = vpack.c.bf16 %v928_v1, %v925_v61  ;;  %v930_v4 = vpop.f32.mrb[27].mxu0  ;;  %v176_v61 = vld [vmem:[%s9707_s0 + $0x4f0] sm:$0xff] }
 0x13d   :  { %1140 = vmatmul.mubr.bf16.gmra.mrb[132].mxu0 %v404_v63  ;;  %v181_v63 = vld [vmem:[%s9707_s0 + $0x518] sm:$0xff] }
 0x13e   :  { %2809 = vmatpush1.bf16.msra.mxu0 %v2722_v3  ;;  %4701 = vmatprep.mubr.msk.bf16.mxu0 %vm598_vm0, %v407_v2  ;;  %v416_v3 = vpack.c.bf16 %v176_v61, %v174_v60  ;;  %v419_v5 = vpack.c.bf16 %v181_v63, %v179_v62 }
 0x13f   :  { %2810 = vmatprep.subr.bf16.mxu0 %v5353_v0 }
 0x140   :  { %v933_v9 = vpop.f32.mrb[28].mxu0 }
 0x141   :  { %v935_v10 = vpop.f32.mrb[29].mxu0 }
 0x142   :  { %v936_v12 = vpop.f32.mrb[30].mxu0  ;;  %v183_v10 = vld [vmem:[%s9707_s0 + $0x528] sm:$0xff] }
 0x143   :  { %v2723_v14 = vpack.c.bf16 %v936_v12, %v933_v9  ;;  %v938_v15 = vpop.f32.mrb[31].mxu0  ;;  %v180_v9 = vld [vmem:[%s9707_s0 + $0x510] sm:$0xff] }
 0x145   :  { %1148 = vmatmul.mubr.bf16.gmra.mrb[136].mxu0 %v406_v11  ;;  %v185_v11 = vld [vmem:[%s9707_s0 + $0x538] sm:$0xff] }
 0x146   :  { %2811 = vmatpush1.bf16.msra.mxu0 %v2723_v14  ;;  %4702 = vmatprep.mubr.msk.bf16.mxu0 %vm598_vm0, %v409_v13  ;;  %v418_v14 = vpack.c.bf16 %v180_v9, %v178_v8  ;;  %v421_v16 = vpack.c.bf16 %v185_v11, %v183_v10 }
 0x147   :  { %2812 = vmatprep.subr.bf16.mxu0 %v5353_v0 }
 0x148   :  { %v941_v20 = vpop.f32.mrb[32].mxu0 }
 0x149   :  { %v943_v21 = vpop.f32.mrb[33].mxu0 }
 0x14a   :  { %v944_v23 = vpop.f32.mrb[34].mxu0  ;;  %v187_v21 = vld [vmem:[%s9707_s0 + $0x548] sm:$0xff] }
 0x14b   :  { %v2724_v25 = vpack.c.bf16 %v944_v23, %v941_v20  ;;  %v946_v26 = vpop.f32.mrb[35].mxu0  ;;  %v184_v20 = vld [vmem:[%s9707_s0 + $0x530] sm:$0xff] }
 0x14d   :  { %1156 = vmatmul.mubr.bf16.gmra.mrb[140].mxu0 %v408_v22  ;;  %v189_v22 = vld [vmem:[%s9707_s0 + $0x558] sm:$0xff] }
 0x14e   :  { %2813 = vmatpush1.bf16.msra.mxu0 %v2724_v25  ;;  %4703 = vmatprep.mubr.msk.bf16.mxu0 %vm598_vm0, %v411_v24  ;;  %v420_v25 = vpack.c.bf16 %v184_v20, %v182_v19  ;;  %v423_v27 = vpack.c.bf16 %v189_v22, %v187_v21 }
 0x14f   :  { %2814 = vmatprep.subr.bf16.mxu0 %v5353_v0 }
 0x150   :  { %v949_v31 = vpop.f32.mrb[36].mxu0 }
 0x151   :  { %v951_v32 = vpop.f32.mrb[37].mxu0 }
 0x152   :  { %v952_v34 = vpop.f32.mrb[38].mxu0  ;;  %v191_v32 = vld [vmem:[%s9707_s0 + $0x568] sm:$0xff] }
 0x153   :  { %v2725_v36 = vpack.c.bf16 %v952_v34, %v949_v31  ;;  %v954_v37 = vpop.f32.mrb[39].mxu0  ;;  %v188_v31 = vld [vmem:[%s9707_s0 + $0x550] sm:$0xff] }
 0x155   :  { %1164 = vmatmul.mubr.bf16.gmra.mrb[144].mxu0 %v410_v33  ;;  %v193_v33 = vld [vmem:[%s9707_s0 + $0x578] sm:$0xff] }
 0x156   :  { %2815 = vmatpush1.bf16.msra.mxu0 %v2725_v36  ;;  %4704 = vmatprep.mubr.msk.bf16.mxu0 %vm598_vm0, %v413_v35  ;;  %v422_v36 = vpack.c.bf16 %v188_v31, %v186_v30  ;;  %v425_v38 = vpack.c.bf16 %v193_v33, %v191_v32 }
 0x157   :  { %2816 = vmatprep.subr.bf16.mxu0 %v5353_v0 }
 0x158   :  { %v957_v42 = vpop.f32.mrb[40].mxu0 }
 0x159   :  { %v959_v43 = vpop.f32.mrb[41].mxu0 }
 0x15a   :  { %v960_v45 = vpop.f32.mrb[42].mxu0  ;;  %v190_v43 = vld [vmem:[%s9707_s0 + $0x560] sm:$0xff] }
 0x15b   :  { %v2726_v47 = vpack.c.bf16 %v960_v45, %v957_v42  ;;  %v962_v48 = vpop.f32.mrb[43].mxu0  ;;  %v1929_v42 = vld [vmem:[%s9708_s1 + $0xce8] sm:$0xff] }
 0x15c   :  { %v2519_v45 = vpack.c.bf16 %v1929_v42, %v1919_v41 }
 0x15d   :  { %1172 = vmatmul.mubr.bf16.gmra.mrb[148].mxu0 %v412_v44  ;;  %v192_v44 = vld [vmem:[%s9707_s0 + $0x570] sm:$0xff] }
 0x15e   :  { %2817 = vmatpush1.bf16.msra.mxu0 %v2726_v47  ;;  %4705 = vmatprep.mubr.msk.bf16.mxu0 %vm598_vm0, %v415_v46  ;;  %v195_v46 = vld [vmem:[%s9707_s0 + $0x588] sm:$0xff]  ;;  %v197_v47 = vld [vmem:[%s9707_s0 + $0x598] sm:$0xff]  ;;  %v424_v50 = vpack.c.bf16 %v192_v44, %v190_v43 }
 0x15f   :  { %2818 = vmatprep.subr.bf16.mxu0 %v5353_v0  ;;  %3341 = vmatprep.mubr.bf16.mxu1 %v2519_v45  ;;  %v427_v52 = vpack.c.bf16 %v197_v47, %v195_v46  ;;  %v214_v47 = vld [vmem:[%s9707_s0 + $0x620] sm:$0xff] }
 0x160   :  { %v965_v53 = vpop.f32.mrb[44].mxu0 }
 0x161   :  { %v967_v54 = vpop.f32.mrb[45].mxu0 }
 0x162   :  { %v968_v56 = vpop.f32.mrb[46].mxu0 }
 0x163   :  { %v2727_v58 = vpack.c.bf16 %v968_v56, %v965_v53  ;;  %v970_v59 = vpop.f32.mrb[47].mxu0  ;;  %v196_v56 = vld [vmem:[%s9707_s0 + $0x590] sm:$0xff] }
 0x165   :  { %1180 = vmatmul.mubr.bf16.gmra.mrb[152].mxu0 %v414_v55  ;;  %v194_v55 = vld [vmem:[%s9707_s0 + $0x580] sm:$0xff] }
 0x166   :  { %2819 = vmatpush1.bf16.msra.mxu0 %v2727_v58  ;;  %4706 = vmatprep.mubr.msk.bf16.mxu0 %vm598_vm0, %v417_v57  ;;  %v199_v57 = vld [vmem:[%s9707_s0 + $0x5a8] sm:$0xff]  ;;  %v201_v58 = vld [vmem:[%s9707_s0 + $0x5b8] sm:$0xff]  ;;  %v426_v61 = vpack.c.bf16 %v196_v56, %v194_v55 }
 0x167   :  { %2820 = vmatprep.subr.bf16.mxu0 %v5353_v0  ;;  %v429_v63 = vpack.c.bf16 %v201_v58, %v199_v57 }
 0x168   :  { %v973_v1 = vpop.f32.mrb[48].mxu0 }
 0x169   :  { %v975_v2 = vpop.f32.mrb[49].mxu0 }
 0x16a   :  { %v976_v4 = vpop.f32.mrb[50].mxu0 }
 0x16b   :  { %v2728_v6 = vpack.c.bf16 %v976_v4, %v973_v1  ;;  %v978_v7 = vpop.f32.mrb[51].mxu0  ;;  %v200_v4 = vld [vmem:[%s9707_s0 + $0x5b0] sm:$0xff] }
 0x16d   :  { %1188 = vmatmul.mubr.bf16.gmra.mrb[156].mxu0 %v416_v3  ;;  %v198_v3 = vld [vmem:[%s9707_s0 + $0x5a0] sm:$0xff] }
 0x16e   :  { %2821 = vmatpush1.bf16.msra.mxu0 %v2728_v6  ;;  %4707 = vmatprep.mubr.msk.bf16.mxu0 %vm598_vm0, %v419_v5  ;;  %v203_v5 = vld [vmem:[%s9707_s0 + $0x5c8] sm:$0xff]  ;;  %v205_v6 = vld [vmem:[%s9707_s0 + $0x5d8] sm:$0xff]  ;;  %v428_v9 = vpack.c.bf16 %v200_v4, %v198_v3 }
 0x16f   :  { %2822 = vmatprep.subr.bf16.mxu0 %v5353_v0  ;;  %v431_v11 = vpack.c.bf16 %v205_v6, %v203_v5 }
 0x170   :  { %v981_v12 = vpop.f32.mrb[52].mxu0 }
 0x171   :  { %v983_v13 = vpop.f32.mrb[53].mxu0 }
 0x172   :  { %v984_v15 = vpop.f32.mrb[54].mxu0 }
 0x173   :  { %v2729_v17 = vpack.c.bf16 %v984_v15, %v981_v12  ;;  %v986_v18 = vpop.f32.mrb[55].mxu0  ;;  %v204_v15 = vld [vmem:[%s9707_s0 + $0x5d0] sm:$0xff] }
 0x175   :  { %1196 = vmatmul.mubr.bf16.gmra.mrb[160].mxu0 %v418_v14  ;;  %v202_v14 = vld [vmem:[%s9707_s0 + $0x5c0] sm:$0xff] }
 0x176   :  { %2823 = vmatpush1.bf16.msra.mxu0 %v2729_v17  ;;  %4708 = vmatprep.mubr.msk.bf16.mxu0 %vm598_vm0, %v421_v16  ;;  %v207_v16 = vld [vmem:[%s9707_s0 + $0x5e8] sm:$0xff]  ;;  %v209_v17 = vld [vmem:[%s9707_s0 + $0x5f8] sm:$0xff]  ;;  %v430_v20 = vpack.c.bf16 %v204_v15, %v202_v14 }
 0x177   :  { %2824 = vmatprep.subr.bf16.mxu0 %v5353_v0  ;;  %v433_v22 = vpack.c.bf16 %v209_v17, %v207_v16 }
 0x178   :  { %v989_v23 = vpop.f32.mrb[56].mxu0 }
 0x179   :  { %v991_v24 = vpop.f32.mrb[57].mxu0 }
 0x17a   :  { %v992_v26 = vpop.f32.mrb[58].mxu0 }
 0x17b   :  { %v2730_v28 = vpack.c.bf16 %v992_v26, %v989_v23  ;;  %v994_v29 = vpop.f32.mrb[59].mxu0  ;;  %v208_v26 = vld [vmem:[%s9707_s0 + $0x5f0] sm:$0xff] }
 0x17d   :  { %1204 = vmatmul.mubr.bf16.gmra.mrb[164].mxu0 %v420_v25  ;;  %v206_v25 = vld [vmem:[%s9707_s0 + $0x5e0] sm:$0xff] }
 0x17e   :  { %2825 = vmatpush1.bf16.msra.mxu0 %v2730_v28  ;;  %4709 = vmatprep.mubr.msk.bf16.mxu0 %vm598_vm0, %v423_v27  ;;  %v211_v27 = vld [vmem:[%s9707_s0 + $0x608] sm:$0xff]  ;;  %v213_v28 = vld [vmem:[%s9707_s0 + $0x618] sm:$0xff]  ;;  %v432_v31 = vpack.c.bf16 %v208_v26, %v206_v25 }
 0x17f   :  { %2826 = vmatprep.subr.bf16.mxu0 %v5353_v0  ;;  %v435_v33 = vpack.c.bf16 %v213_v28, %v211_v27 }
 0x180   :  { %v997_v34 = vpop.f32.mrb[60].mxu0 }
 0x181   :  { %v999_v35 = vpop.f32.mrb[61].mxu0 }
 0x182   :  { %v1000_v37 = vpop.f32.mrb[62].mxu0 }
 0x183   :  { %v2731_v39 = vpack.c.bf16 %v1000_v37, %v997_v34  ;;  %v1002_v40 = vpop.f32.mrb[63].mxu0  ;;  %v212_v37 = vld [vmem:[%s9707_s0 + $0x610] sm:$0xff] }
 0x185   :  { %1212 = vmatmul.mubr.bf16.gmra.mrb[168].mxu0 %v422_v36  ;;  %v210_v36 = vld [vmem:[%s9707_s0 + $0x600] sm:$0xff] }
 0x186   :  { %2827 = vmatpush1.bf16.msra.mxu0 %v2731_v39  ;;  %4710 = vmatprep.mubr.msk.bf16.mxu0 %vm598_vm0, %v425_v38  ;;  %v215_v38 = vld [vmem:[%s9707_s0 + $0x628] sm:$0xff]  ;;  %v217_v39 = vld [vmem:[%s9707_s0 + $0x638] sm:$0xff]  ;;  %v434_v42 = vpack.c.bf16 %v212_v37, %v210_v36 }
 0x187   :  { %3149 = vmatprep.subr.bf16.mxu0 %v5353_v0  ;;  %v437_v44 = vpack.c.bf16 %v217_v39, %v215_v38  ;;  %v237_v36 = vld [vmem:[%s9707_s0 + $0x6d8] sm:$0xff] }
 0x188   :  { %v1005_v48 = vpop.f32.mrb[64].mxu0 }
 0x189   :  { %v1007_v49 = vpop.f32.mrb[65].mxu0 }
 0x18a   :  { %v1008_v51 = vpop.f32.mrb[66].mxu0  ;;  %v219_v49 = vld [vmem:[%s9707_s0 + $0x648] sm:$0xff] }
 0x18b   :  { %v1010_v53 = vpop.f32.mrb[67].mxu0  ;;  %v6033_v54 = vpack.c.bf16 %v1008_v51, %v1005_v48  ;;  %v216_v48 = vld [vmem:[%s9707_s0 + $0x630] sm:$0xff] }
 0x18c   :  { %v436_v53 = vpack.c.bf16 %v216_v48, %v214_v47  ;;  %v239_v47 = vld [vmem:[%s9707_s0 + $0x6e8] sm:$0xff]  ;;  %v241_v48 = vld [vmem:[%s9707_s0 + $0x6f8] sm:$0xff] }
 0x18d   :  { %1220 = vmatmul.mubr.bf16.gmra.mrb[172].mxu0 %v424_v50  ;;  %4763 = vmatpush1.bf16.msra.mxu1 %v6033_v54  ;;  %v221_v50 = vld [vmem:[%s9707_s0 + $0x658] sm:$0xff] }
 0x18e   :  { %4711 = vmatprep.mubr.msk.bf16.mxu0 %vm598_vm0, %v427_v52  ;;  %4748 = vmatprep.subr.bf16.mxu1 %v5353_v0  ;;  %v439_v56 = vpack.c.bf16 %v221_v50, %v219_v49 }
 0x190   :  { %v1013_v59 = vpop.f32.mrb[68].mxu0 }
 0x191   :  { %v1015_v60 = vpop.f32.mrb[69].mxu0 }
 0x192   :  { %v1016_v62 = vpop.f32.mrb[70].mxu0  ;;  %v220_v60 = vld [vmem:[%s9707_s0 + $0x650] sm:$0xff] }
 0x193   :  { %v1018_v1 = vpop.f32.mrb[71].mxu0  ;;  %v6050_v2 = vpack.c.bf16 %v1016_v62, %v1013_v59  ;;  %v218_v59 = vld [vmem:[%s9707_s0 + $0x640] sm:$0xff]  ;;  %v225_v62 = vld [vmem:[%s9707_s0 + $0x678] sm:$0xff] }
 0x194   :  { %v438_v3 = vpack.c.bf16 %v220_v60, %v218_v59  ;;  %v240_v59 = vld [vmem:[%s9707_s0 + $0x6f0] sm:$0xff]  ;;  %v243_v60 = vld [vmem:[%s9707_s0 + $0x708] sm:$0xff] }
 0x195   :  { %1228 = vmatmul.mubr.bf16.gmra.mrb[176].mxu0 %v426_v61  ;;  %4764 = vmatpush1.bf16.msra.mxu1 %v6050_v2  ;;  %v223_v61 = vld [vmem:[%s9707_s0 + $0x668] sm:$0xff] }
 0x196   :  { %4712 = vmatprep.mubr.msk.bf16.mxu0 %vm598_vm0, %v429_v63  ;;  %4749 = vmatprep.subr.bf16.mxu1 %v5353_v0  ;;  %v441_v5 = vpack.c.bf16 %v225_v62, %v223_v61  ;;  %v245_v61 = vld [vmem:[%s9707_s0 + $0x718] sm:$0xff] }
 0x198   :  { %v1021_v7 = vpop.f32.mrb[72].mxu0 }
 0x199   :  { %v1023_v8 = vpop.f32.mrb[73].mxu0 }
 0x19a   :  { %v1024_v10 = vpop.f32.mrb[74].mxu0  ;;  %v222_v8 = vld [vmem:[%s9707_s0 + $0x660] sm:$0xff] }
 0x19b   :  { %v1026_v12 = vpop.f32.mrb[75].mxu0  ;;  %v6067_v13 = vpack.c.bf16 %v1024_v10, %v1021_v7  ;;  %v227_v10 = vld [vmem:[%s9707_s0 + $0x688] sm:$0xff] }
 0x19d   :  { %1236 = vmatmul.mubr.bf16.gmra.mrb[180].mxu0 %v428_v9  ;;  %4765 = vmatpush1.bf16.msra.mxu1 %v6067_v13  ;;  %v224_v9 = vld [vmem:[%s9707_s0 + $0x670] sm:$0xff] }
 0x19e   :  { %4713 = vmatprep.mubr.msk.bf16.mxu0 %vm598_vm0, %v431_v11  ;;  %4750 = vmatprep.subr.bf16.mxu1 %v5353_v0  ;;  %v229_v11 = vld [vmem:[%s9707_s0 + $0x698] sm:$0xff]  ;;  %v440_v15 = vpack.c.bf16 %v224_v9, %v222_v8  ;;  %v242_v8 = vld [vmem:[%s9707_s0 + $0x700] sm:$0xff]  ;;  %v244_v9 = vld [vmem:[%s9707_s0 + $0x710] sm:$0xff] }
 0x19f   :  { %v443_v17 = vpack.c.bf16 %v229_v11, %v227_v10  ;;  %v247_v10 = vld [vmem:[%s9707_s0 + $0x728] sm:$0xff]  ;;  %v249_v11 = vld [vmem:[%s9707_s0 + $0x738] sm:$0xff] }
 0x1a0   :  { %v1029_v18 = vpop.f32.mrb[76].mxu0 }
 0x1a1   :  { %v1031_v19 = vpop.f32.mrb[77].mxu0 }
 0x1a2   :  { %v1032_v21 = vpop.f32.mrb[78].mxu0 }
 0x1a3   :  { %v1034_v23 = vpop.f32.mrb[79].mxu0  ;;  %v6084_v24 = vpack.c.bf16 %v1032_v21, %v1029_v18  ;;  %v228_v21 = vld [vmem:[%s9707_s0 + $0x690] sm:$0xff] }
 0x1a4   :  { %v233_v23 = vld [vmem:[%s9707_s0 + $0x6b8] sm:$0xff] }
 0x1a5   :  { %1244 = vmatmul.mubr.bf16.gmra.mrb[184].mxu0 %v430_v20  ;;  %4766 = vmatpush1.bf16.msra.mxu1 %v6084_v24  ;;  %v226_v20 = vld [vmem:[%s9707_s0 + $0x680] sm:$0xff] }
 0x1a6   :  { %4714 = vmatprep.mubr.msk.bf16.mxu0 %vm598_vm0, %v433_v22  ;;  %4751 = vmatprep.subr.bf16.mxu1 %v5353_v0  ;;  %v231_v22 = vld [vmem:[%s9707_s0 + $0x6a8] sm:$0xff]  ;;  %v442_v27 = vpack.c.bf16 %v228_v21, %v226_v20  ;;  %v246_v21 = vld [vmem:[%s9707_s0 + $0x720] sm:$0xff] }
 0x1a8   :  { %v1037_v29 = vpop.f32.mrb[80].mxu0 }
 0x1a9   :  { %v1039_v30 = vpop.f32.mrb[81].mxu0 }
 0x1aa   :  { %v1040_v32 = vpop.f32.mrb[82].mxu0 }
 0x1ab   :  { %v1042_v34 = vpop.f32.mrb[83].mxu0  ;;  %v6101_v35 = vpack.c.bf16 %v1040_v32, %v1037_v29  ;;  %v445_v29 = vpack.c.bf16 %v233_v23, %v231_v22  ;;  %v230_v32 = vld [vmem:[%s9707_s0 + $0x6a0] sm:$0xff]  ;;  %v248_v22 = vld [vmem:[%s9707_s0 + $0x730] sm:$0xff]  ;;  %v251_v23 = vld [vmem:[%s9707_s0 + $0x748] sm:$0xff] }
 0x1ac   :  { %v235_v34 = vld [vmem:[%s9707_s0 + $0x6c8] sm:$0xff] }
 0x1ad   :  { %1252 = vmatmul.mubr.bf16.gmra.mrb[188].mxu0 %v432_v31  ;;  %4767 = vmatpush1.bf16.msra.mxu1 %v6101_v35 }
 0x1ae   :  { %4715 = vmatprep.mubr.msk.bf16.mxu0 %vm598_vm0, %v435_v33  ;;  %4752 = vmatprep.subr.bf16.mxu1 %v5353_v0  ;;  %v232_v33 = vld [vmem:[%s9707_s0 + $0x6b0] sm:$0xff] }
 0x1af   :  { %v444_v39 = vpack.c.bf16 %v232_v33, %v230_v32 }
 0x1b0   :  { %v1045_v40 = vpop.f32.mrb[84].mxu0 }
 0x1b1   :  { %v1047_v41 = vpop.f32.mrb[85].mxu0 }
 0x1b2   :  { %v1048_v43 = vpop.f32.mrb[86].mxu0  ;;  %v447_v41 = vpack.c.bf16 %v237_v36, %v235_v34  ;;  %v250_v34 = vld [vmem:[%s9707_s0 + $0x740] sm:$0xff]  ;;  %v252_v36 = vld [vmem:[%s9707_s0 + $0x750] sm:$0xff] }
 0x1b3   :  { %v1050_v45 = vpop.f32.mrb[87].mxu0  ;;  %v6118_v46 = vpack.c.bf16 %v1048_v43, %v1045_v40 }
 0x1b4   :  { %v236_v45 = vld [vmem:[%s9707_s0 + $0x6d0] sm:$0xff] }
 0x1b5   :  { %1260 = vmatmul.mubr.bf16.gmra.mrb[192].mxu0 %v434_v42  ;;  %4768 = vmatpush1.bf16.msra.mxu1 %v6118_v46 }
 0x1b6   :  { %4716 = vmatprep.mubr.msk.bf16.mxu0 %vm598_vm0, %v437_v44  ;;  %4753 = vmatprep.subr.bf16.mxu1 %v5353_v0  ;;  %v234_v44 = vld [vmem:[%s9707_s0 + $0x6c0] sm:$0xff] }
 0x1b8   :  { %v1053_v51 = vpop.f32.mrb[88].mxu0 }
 0x1b9   :  { %v1055_v52 = vpop.f32.mrb[89].mxu0 }
 0x1ba   :  { %v1056_v55 = vpop.f32.mrb[90].mxu0 }
 0x1bb   :  { %v1058_v57 = vpop.f32.mrb[91].mxu0  ;;  %v6135_v58 = vpack.c.bf16 %v1056_v55, %v1053_v51  ;;  %v446_v51 = vpack.c.bf16 %v236_v45, %v234_v44  ;;  %v1928_v44 = vld [vmem:[%s9708_s1 + $0xce0] sm:$0xff] }
 0x1bc   :  { %v238_v57 = vld [vmem:[%s9707_s0 + $0x6e0] sm:$0xff] }
 0x1bd   :  { %1268 = vmatmul.mubr.bf16.gmra.mrb[196].mxu0 %v436_v53  ;;  %4769 = vmatpush1.bf16.msra.mxu1 %v6135_v58  ;;  %v449_v53 = vpack.c.bf16 %v241_v48, %v239_v47  ;;  %v1939_v48 = vld [vmem:[%s9708_s1 + $0xd38] sm:$0xff] }
 0x1be   :  { %4717 = vmatprep.mubr.msk.bf16.mxu0 %vm598_vm0, %v439_v56  ;;  %4754 = vmatprep.subr.bf16.mxu1 %v5353_v0 }
 0x1c0   :  { %v1061_v63 = vpop.f32.mrb[92].mxu0 }
 0x1c1   :  { %v1063_v1 = vpop.f32.mrb[93].mxu0 }
 0x1c2   :  { %v1064_v4 = vpop.f32.mrb[94].mxu0  ;;  %v448_v1 = vpack.c.bf16 %v240_v59, %v238_v57  ;;  %v256_v57 = vld [vmem:[%s9707_s0 + $0x770] sm:$0xff]  ;;  %v259_v59 = vld [vmem:[%s9707_s0 + $0x788] sm:$0xff] }
 0x1c3   :  { %v1066_v6 = vpop.f32.mrb[95].mxu0  ;;  %v6152_v7 = vpack.c.bf16 %v1064_v4, %v1061_v63  ;;  %v451_v4 = vpack.c.bf16 %v245_v61, %v243_v60  ;;  %v261_v60 = vld [vmem:[%s9707_s0 + $0x798] sm:$0xff] }
 0x1c5   :  { %1276 = vmatmul.mubr.bf16.gmra.mrb[200].mxu0 %v438_v3  ;;  %4770 = vmatpush1.bf16.msra.mxu1 %v6152_v7 }
 0x1c6   :  { %4718 = vmatprep.mubr.msk.bf16.mxu0 %vm598_vm0, %v441_v5  ;;  %4755 = vmatprep.subr.bf16.mxu1 %v5353_v0 }
 0x1c8   :  { %v1069_v12 = vpop.f32.mrb[96].mxu0 }
 0x1c9   :  { %v1071_v14 = vpop.f32.mrb[97].mxu0 }
 0x1ca   :  { %v1072_v16 = vpop.f32.mrb[98].mxu0 }
 0x1cb   :  { %v1074_v18 = vpop.f32.mrb[99].mxu0  ;;  %v6169_v19 = vpack.c.bf16 %v1072_v16, %v1069_v12 }
 0x1cd   :  { %1284 = vmatmul.mubr.bf16.gmra.mrb[204].mxu0 %v440_v15  ;;  %4771 = vmatpush1.bf16.msra.mxu1 %v6169_v19  ;;  %v450_v15 = vpack.c.bf16 %v244_v9, %v242_v8  ;;  %v1959_v8 = vld [vmem:[%s9708_s1 + $0xdd8] sm:$0xff]  ;;  %v1969_v9 = vld [vmem:[%s9708_s1 + $0xe28] sm:$0xff] }
 0x1ce   :  { %4719 = vmatprep.mubr.msk.bf16.mxu0 %vm598_vm0, %v443_v17  ;;  %4756 = vmatprep.subr.bf16.mxu1 %v5353_v0  ;;  %v453_v17 = vpack.c.bf16 %v249_v11, %v247_v10 }
 0x1d0   :  { %v1077_v25 = vpop.f32.mrb[100].mxu0 }
 0x1d1   :  { %v1079_v26 = vpop.f32.mrb[101].mxu0 }
 0x1d2   :  { %v1080_v28 = vpop.f32.mrb[102].mxu0 }
 0x1d3   :  { %v1082_v30 = vpop.f32.mrb[103].mxu0  ;;  %v6186_v31 = vpack.c.bf16 %v1080_v28, %v1077_v25  ;;  %v253_v25 = vld [vmem:[%s9707_s0 + $0x758] sm:$0xff]  ;;  %v452_v28 = vpack.c.bf16 %v248_v22, %v246_v21 }
 0x1d4   :  { %v455_v30 = vpack.c.bf16 %v253_v25, %v251_v23  ;;  %v1958_v25 = vld [vmem:[%s9708_s1 + $0xdd0] sm:$0xff] }
 0x1d5   :  { %1292 = vmatmul.mubr.bf16.gmra.mrb[208].mxu0 %v442_v27  ;;  %4772 = vmatpush1.bf16.msra.mxu1 %v6186_v31 }
 0x1d6   :  { %4720 = vmatprep.mubr.msk.bf16.mxu0 %vm598_vm0, %v445_v29  ;;  %4757 = vmatprep.subr.bf16.mxu1 %v5353_v0 }
 0x1d8   :  { %v1085_v37 = vpop.f32.mrb[104].mxu0 }
 0x1d9   :  { %v1087_v38 = vpop.f32.mrb[105].mxu0 }
 0x1da   :  { %v1088_v40 = vpop.f32.mrb[106].mxu0  ;;  %v257_v38 = vld [vmem:[%s9707_s0 + $0x778] sm:$0xff] }
 0x1db   :  { %v1090_v42 = vpop.f32.mrb[107].mxu0  ;;  %v6203_v43 = vpack.c.bf16 %v1088_v40, %v1085_v37  ;;  %v255_v37 = vld [vmem:[%s9707_s0 + $0x768] sm:$0xff] }
 0x1dc   :  { %v1918_v42 = vld [vmem:[%s9708_s1 + $0xc90] sm:$0xff]  ;;  %v457_v47 = vpack.c.bf16 %v257_v38, %v255_v37  ;;  %v262_v38 = vld [vmem:[%s9707_s0 + $0x7a0] sm:$0xff] }
 0x1dd   :  { %1300 = vmatmul.mubr.bf16.gmra.mrb[212].mxu0 %v444_v39  ;;  %4773 = vmatpush1.bf16.msra.mxu1 %v6203_v43 }
 0x1de   :  { %4721 = vmatprep.mubr.msk.bf16.mxu0 %vm598_vm0, %v447_v41  ;;  %4758 = vmatprep.subr.bf16.mxu1 %v5353_v0  ;;  %v454_v41 = vpack.c.bf16 %v252_v36, %v250_v34 }
 0x1e0   :  { %v1093_v49 = vpop.f32.mrb[108].mxu0 }
 0x1e1   :  { %v1095_v50 = vpop.f32.mrb[109].mxu0 }
 0x1e2   :  { %v1096_v52 = vpop.f32.mrb[110].mxu0 }
 0x1e3   :  { %v1098_v55 = vpop.f32.mrb[111].mxu0  ;;  %v6220_v56 = vpack.c.bf16 %v1096_v52, %v1093_v49  ;;  %v1949_v49 = vld [vmem:[%s9708_s1 + $0xd88] sm:$0xff]  ;;  %v2518_v52 = vpack.c.bf16 %v1928_v44, %v1918_v42 }
 0x1e4   :  { %v254_v55 = vld [vmem:[%s9707_s0 + $0x760] sm:$0xff] }
 0x1e5   :  { %1308 = vmatmul.mubr.bf16.gmra.mrb[216].mxu0 %v446_v51  ;;  %4774 = vmatpush1.bf16.msra.mxu1 %v6220_v56 }
 0x1e6   :  { %4722 = vmatprep.mubr.msk.bf16.mxu0 %vm598_vm0, %v449_v53  ;;  %4759 = vmatprep.subr.bf16.mxu1 %v5353_v0  ;;  %v2529_v53 = vpack.c.bf16 %v1949_v49, %v1939_v48  ;;  %v1988_v48 = vld [vmem:[%s9708_s1 + $0xec0] sm:$0xff] }
 0x1e8   :  { %v1101_v62 = vpop.f32.mrb[112].mxu0 }
 0x1e9   :  { %v1103_v63 = vpop.f32.mrb[113].mxu0 }
 0x1ea   :  { %v1104_v3 = vpop.f32.mrb[114].mxu0  ;;  %v456_v63 = vpack.c.bf16 %v256_v57, %v254_v55 }
 0x1eb   :  { %v1106_v5 = vpop.f32.mrb[115].mxu0  ;;  %v6237_v6 = vpack.c.bf16 %v1104_v3, %v1101_v62  ;;  %v1948_v3 = vld [vmem:[%s9708_s1 + $0xd80] sm:$0xff] }
 0x1ec   :  { %v459_v5 = vpack.c.bf16 %v261_v60, %v259_v59 }
 0x1ed   :  { %1316 = vmatmul.mubr.bf16.gmra.mrb[220].mxu0 %v448_v1  ;;  %4775 = vmatpush1.bf16.msra.mxu1 %v6237_v6  ;;  %v1938_v1 = vld [vmem:[%s9708_s1 + $0xd30] sm:$0xff] }
 0x1ee   :  { %4723 = vmatprep.mubr.msk.bf16.mxu0 %vm598_vm0, %v451_v4  ;;  %4760 = vmatprep.subr.bf16.mxu1 %v5353_v0 }
 0x1f0   :  { %v1109_v12 = vpop.f32.mrb[116].mxu0 }
 0x1f1   :  { %v1111_v14 = vpop.f32.mrb[117].mxu0 }
 0x1f2   :  { %v1112_v16 = vpop.f32.mrb[118].mxu0  ;;  %v2539_v14 = vpack.c.bf16 %v1969_v9, %v1959_v8  ;;  %v1998_v8 = vld [vmem:[%s9708_s1 + $0xf10] sm:$0xff]  ;;  %v2008_v9 = vld [vmem:[%s9708_s1 + $0xf60] sm:$0xff] }
 0x1f3   :  { %v1114_v18 = vpop.f32.mrb[119].mxu0  ;;  %v6254_v20 = vpack.c.bf16 %v1112_v16, %v1109_v12  ;;  %v2528_v12 = vpack.c.bf16 %v1948_v3, %v1938_v1  ;;  %v260_v16 = vld [vmem:[%s9707_s0 + $0x790] sm:$0xff]  ;;  %v273_v1 = vld [vmem:[%s9707_s0 + $0x7f8] sm:$0xff] }
 0x1f4   :  { %v265_v18 = vld [vmem:[%s9707_s0 + $0x7b8] sm:$0xff] }
 0x1f5   :  { %1324 = vmatmul.mubr.bf16.gmra.mrb[224].mxu0 %v450_v15  ;;  %4776 = vmatpush1.bf16.msra.mxu1 %v6254_v20  ;;  %v258_v15 = vld [vmem:[%s9707_s0 + $0x780] sm:$0xff] }
 0x1f6   :  { %4724 = vmatprep.mubr.msk.bf16.mxu0 %vm598_vm0, %v453_v17  ;;  %4761 = vmatprep.subr.bf16.mxu1 %v5353_v0  ;;  %v263_v17 = vld [vmem:[%s9707_s0 + $0x7a8] sm:$0xff]  ;;  %v458_v23 = vpack.c.bf16 %v260_v16, %v258_v15 }
 0x1f8   :  { %v1117_v26 = vpop.f32.mrb[120].mxu0 }
 0x1f9   :  { %v1119_v27 = vpop.f32.mrb[121].mxu0 }
 0x1fa   :  { %v1120_v29 = vpop.f32.mrb[122].mxu0 }
 0x1fb   :  { %v1122_v32 = vpop.f32.mrb[123].mxu0  ;;  %v6271_v33 = vpack.c.bf16 %v1120_v29, %v1117_v26  ;;  %v1968_v26 = vld [vmem:[%s9708_s1 + $0xe20] sm:$0xff]  ;;  %v1979_v29 = vld [vmem:[%s9708_s1 + $0xe78] sm:$0xff] }
 0x1fc   :  { %v2538_v36 = vpack.c.bf16 %v1968_v26, %v1958_v25  ;;  %v277_v25 = vld [vmem:[%s9707_s0 + $0x818] sm:$0xff] }
 0x1fd   :  { %1332 = vmatmul.mubr.bf16.gmra.mrb[228].mxu0 %v452_v28  ;;  %4777 = vmatpush1.bf16.msra.mxu1 %v6271_v33  ;;  %v461_v28 = vpack.c.bf16 %v265_v18, %v263_v17  ;;  %v2558_v17 = vpack.c.bf16 %v2008_v9, %v1998_v8  ;;  %v285_v8 = vld [vmem:[%s9707_s0 + $0x858] sm:$0xff] }
 0x1fe   :  { %4725 = vmatprep.mubr.msk.bf16.mxu0 %vm598_vm0, %v455_v30  ;;  %4762 = vmatprep.subr.bf16.mxu1 %v5353_v0  ;;  %v1989_v30 = vld [vmem:[%s9708_s1 + $0xec8] sm:$0xff] }
 0x1ff   :  { %v2549_v37 = vpack.c.bf16 %v1989_v30, %v1979_v29  ;;  %v2018_v29 = vld [vmem:[%s9708_s1 + $0xfb0] sm:$0xff]  ;;  %v2028_v30 = vld [vmem:[%s9708_s1 + $0x1000] sm:$0xff] }
 0x200   :  { %v1125_v39 = vpop.f32.mrb[124].mxu0 }
 0x201   :  { %v1127_v40 = vpop.f32.mrb[125].mxu0 }
 0x202   :  { %v1128_v45 = vpop.f32.mrb[126].mxu0  ;;  %v267_v40 = vld [vmem:[%s9707_s0 + $0x7c8] sm:$0xff] }
 0x203   :  { %v1130_v50 = vpop.f32.mrb[127].mxu0  ;;  %v6300_v51 = vpack.c.bf16 %v1128_v45, %v1125_v39  ;;  %v264_v39 = vld [vmem:[%s9707_s0 + $0x7b0] sm:$0xff] }
 0x204   :  { %v460_v45 = vpack.c.bf16 %v264_v39, %v262_v38 }
 0x205   :  { %1340 = vmatmul.mubr.bf16.gmra.mrb[232].mxu0 %v454_v41  ;;  %4778 = vmatpush1.bf16.msra.mxu1 %v6300_v51  ;;  %v269_v41 = vld [vmem:[%s9707_s0 + $0x7d8] sm:$0xff] }
 0x206   :  { %4726 = vmatprep.mubr.msk.bf16.mxu0 %vm598_vm0, %v457_v47  ;;  %3502 = vmatprep.subr.bf16.mxu1 %v5353_v0  ;;  %v1978_v47 = vld [vmem:[%s9708_s1 + $0xe70] sm:$0xff]  ;;  %v463_v50 = vpack.c.bf16 %v269_v41, %v267_v40  ;;  %v2568_v40 = vpack.c.bf16 %v2028_v30, %v2018_v29  ;;  %v289_v29 = vld [vmem:[%s9707_s0 + $0x878] sm:$0xff] }
 0x207   :  { %v2548_v59 = vpack.c.bf16 %v1988_v48, %v1978_v47  ;;  %v281_v47 = vld [vmem:[%s9707_s0 + $0x838] sm:$0xff] }
 0x208   :  { %v1133_v61 = vpop.f32.mrb[128].mxu0  ;;  %3342 = vmatmul.mubr.bf16.vlgmr.msra.gmra.mrb[0].mxu1 %v2518_v52  ;;  %v1999_v52 = vld [vmem:[%s9708_s1 + $0xf18] sm:$0xff] }
 0x209   :  { %v1135_v62 = vpop.f32.mrb[129].mxu0  ;;  %3349 = vmatprep.mubr.bf16.mxu1 %v2529_v53  ;;  %v2009_v53 = vld [vmem:[%s9708_s1 + $0xf68] sm:$0xff] }
 0x20a   :  { %v1136_v4 = vpop.f32.mrb[130].mxu0  ;;  %v2559_v60 = vpack.c.bf16 %v2009_v53, %v1999_v52  ;;  %v268_v62 = vld [vmem:[%s9707_s0 + $0x7d0] sm:$0xff]  ;;  %v2048_v53 = vld [vmem:[%s9708_s1 + $0x10a0] sm:$0xff] }
 0x20b   :  { %v2748_v10 = vpack.c.bf16 %v1136_v4, %v1133_v61  ;;  %v1138_v11 = vpop.f32.mrb[131].mxu0  ;;  %v266_v61 = vld [vmem:[%s9707_s0 + $0x7c0] sm:$0xff]  ;;  %v2038_v52 = vld [vmem:[%s9708_s1 + $0x1050] sm:$0xff] }
 0x20d   :  { %1348 = vmatmul.mubr.bf16.gmra.mrb[236].mxu0 %v456_v63  ;;  %3503 = vmatpush1.bf16.msra.mxu1 %v2748_v10  ;;  %v271_v63 = vld [vmem:[%s9707_s0 + $0x7e8] sm:$0xff] }
 0x20e   :  { %4727 = vmatprep.mubr.msk.bf16.mxu0 %vm598_vm0, %v459_v5  ;;  %3504 = vmatprep.subr.bf16.mxu1 %v5353_v0  ;;  %v462_v5 = vpack.c.bf16 %v268_v62, %v266_v61  ;;  %v465_v11 = vpack.c.bf16 %v273_v1, %v271_v63  ;;  %v2578_v63 = vpack.c.bf16 %v2048_v53, %v2038_v52  ;;  %v293_v52 = vld [vmem:[%s9707_s0 + $0x898] sm:$0xff] }
 0x210   :  { %v1141_v21 = vpop.f32.mrb[132].mxu0  ;;  %3350 = vmatmul.mubr.bf16.gmra.mrb[4].mxu1 %v2528_v12  ;;  %v2019_v12 = vld [vmem:[%s9708_s1 + $0xfb8] sm:$0xff] }
 0x211   :  { %v1143_v22 = vpop.f32.mrb[133].mxu0  ;;  %3357 = vmatprep.mubr.bf16.mxu1 %v2539_v14  ;;  %v2029_v14 = vld [vmem:[%s9708_s1 + $0x1008] sm:$0xff] }
 0x212   :  { %v1144_v27 = vpop.f32.mrb[134].mxu0  ;;  %v2569_v18 = vpack.c.bf16 %v2029_v14, %v2019_v12  ;;  %v272_v22 = vld [vmem:[%s9707_s0 + $0x7f0] sm:$0xff]  ;;  %v2068_v12 = vld [vmem:[%s9708_s1 + $0x1140] sm:$0xff] }
 0x213   :  { %v2749_v32 = vpack.c.bf16 %v1144_v27, %v1141_v21  ;;  %v1146_v34 = vpop.f32.mrb[135].mxu0  ;;  %v270_v21 = vld [vmem:[%s9707_s0 + $0x7e0] sm:$0xff] }
 0x214   :  { %v464_v27 = vpack.c.bf16 %v272_v22, %v270_v21 }
 0x215   :  { %1356 = vmatmul.mubr.bf16.gmra.mrb[240].mxu0 %v458_v23  ;;  %3505 = vmatpush1.bf16.msra.mxu1 %v2749_v32  ;;  %v275_v23 = vld [vmem:[%s9707_s0 + $0x808] sm:$0xff] }
 0x216   :  { %4728 = vmatprep.mubr.msk.bf16.mxu0 %vm598_vm0, %v461_v28  ;;  %3506 = vmatprep.subr.bf16.mxu1 %v5353_v0  ;;  %v467_v34 = vpack.c.bf16 %v277_v25, %v275_v23 }
 0x218   :  { %3358 = vmatmul.mubr.bf16.gmra.mrb[8].mxu1 %v2538_v36  ;;  %v1149_v42 = vpop.f32.mrb[136].mxu0  ;;  %v2039_v36 = vld [vmem:[%s9708_s1 + $0x1058] sm:$0xff] }
 0x219   :  { %v1151_v44 = vpop.f32.mrb[137].mxu0  ;;  %3365 = vmatprep.mubr.bf16.mxu1 %v2549_v37  ;;  %v2049_v37 = vld [vmem:[%s9708_s1 + $0x10a8] sm:$0xff] }
 0x21a   :  { %v1152_v49 = vpop.f32.mrb[138].mxu0  ;;  %v2579_v41 = vpack.c.bf16 %v2049_v37, %v2039_v36  ;;  %v276_v44 = vld [vmem:[%s9707_s0 + $0x810] sm:$0xff]  ;;  %v2088_v36 = vld [vmem:[%s9708_s1 + $0x11e0] sm:$0xff] }
 0x21b   :  { %v2750_v55 = vpack.c.bf16 %v1152_v49, %v1149_v42  ;;  %v1154_v57 = vpop.f32.mrb[139].mxu0  ;;  %v274_v42 = vld [vmem:[%s9707_s0 + $0x800] sm:$0xff] }
 0x21c   :  { %v466_v49 = vpack.c.bf16 %v276_v44, %v274_v42 }
 0x21d   :  { %1364 = vmatmul.mubr.bf16.gmra.mrb[244].mxu0 %v460_v45  ;;  %3507 = vmatpush1.bf16.msra.mxu1 %v2750_v55  ;;  %v279_v45 = vld [vmem:[%s9707_s0 + $0x828] sm:$0xff] }
 0x21e   :  { %4729 = vmatprep.mubr.msk.bf16.mxu0 %vm598_vm0, %v463_v50  ;;  %3508 = vmatprep.subr.bf16.mxu1 %v5353_v0  ;;  %v469_v57 = vpack.c.bf16 %v281_v47, %v279_v45 }
 0x220   :  { %3366 = vmatmul.mubr.bf16.gmra.mrb[12].mxu1 %v2548_v59  ;;  %v1157_v3 = vpop.f32.mrb[140].mxu0  ;;  %v2059_v59 = vld [vmem:[%s9708_s1 + $0x10f8] sm:$0xff] }
 0x221   :  { %v1159_v4 = vpop.f32.mrb[141].mxu0  ;;  %3373 = vmatprep.mubr.bf16.mxu1 %v2559_v60  ;;  %v2069_v60 = vld [vmem:[%s9708_s1 + $0x1148] sm:$0xff] }
 0x222   :  { %v1160_v10 = vpop.f32.mrb[142].mxu0  ;;  %v2589_v1 = vpack.c.bf16 %v2069_v60, %v2059_v59  ;;  %v280_v4 = vld [vmem:[%s9707_s0 + $0x830] sm:$0xff]  ;;  %v2108_v59 = vld [vmem:[%s9708_s1 + $0x1280] sm:$0xff] }
 0x223   :  { %v2751_v15 = vpack.c.bf16 %v1160_v10, %v1157_v3  ;;  %v1162_v16 = vpop.f32.mrb[143].mxu0  ;;  %v278_v3 = vld [vmem:[%s9707_s0 + $0x820] sm:$0xff] }
 0x224   :  { %v468_v10 = vpack.c.bf16 %v280_v4, %v278_v3 }
 0x225   :  { %1372 = vmatmul.mubr.bf16.gmra.mrb[248].mxu0 %v462_v5  ;;  %3509 = vmatpush1.bf16.msra.mxu1 %v2751_v15  ;;  %v283_v5 = vld [vmem:[%s9707_s0 + $0x848] sm:$0xff] }
 0x226   :  { %4730 = vmatprep.mubr.msk.bf16.mxu0 %vm598_vm0, %v465_v11  ;;  %3510 = vmatprep.subr.bf16.mxu1 %v5353_v0  ;;  %v2058_v11 = vld [vmem:[%s9708_s1 + $0x10f0] sm:$0xff]  ;;  %v471_v16 = vpack.c.bf16 %v285_v8, %v283_v5 }
 0x227   :  { %v2588_v23 = vpack.c.bf16 %v2068_v12, %v2058_v11  ;;  %v295_v11 = vld [vmem:[%s9707_s0 + $0x8a8] sm:$0xff]  ;;  %v297_v12 = vld [vmem:[%s9707_s0 + $0x8b8] sm:$0xff] }
 0x228   :  { %3374 = vmatmul.mubr.bf16.gmra.mrb[16].mxu1 %v2558_v17  ;;  %v1165_v26 = vpop.f32.mrb[144].mxu0  ;;  %v2079_v17 = vld [vmem:[%s9708_s1 + $0x1198] sm:$0xff] }
 0x229   :  { %v1167_v28 = vpop.f32.mrb[145].mxu0  ;;  %3381 = vmatprep.mubr.bf16.mxu1 %v2569_v18  ;;  %v2089_v18 = vld [vmem:[%s9708_s1 + $0x11e8] sm:$0xff] }
 0x22a   :  { %v1168_v32 = vpop.f32.mrb[146].mxu0  ;;  %v2599_v25 = vpack.c.bf16 %v2089_v18, %v2079_v17  ;;  %v287_v28 = vld [vmem:[%s9707_s0 + $0x868] sm:$0xff]  ;;  %v2128_v17 = vld [vmem:[%s9708_s1 + $0x1320] sm:$0xff] }
 0x22b   :  { %v2752_v38 = vpack.c.bf16 %v1168_v32, %v1165_v26  ;;  %v1170_v39 = vpop.f32.mrb[147].mxu0  ;;  %v282_v26 = vld [vmem:[%s9707_s0 + $0x840] sm:$0xff] }
 0x22d   :  { %1380 = vmatmul.mubr.bf16.gmra.mrb[252].mxu0 %v464_v27  ;;  %3511 = vmatpush1.bf16.msra.mxu1 %v2752_v38  ;;  %v284_v27 = vld [vmem:[%s9707_s0 + $0x850] sm:$0xff]  ;;  %v473_v38 = vpack.c.bf16 %v289_v29, %v287_v28 }
 0x22e   :  { %4731 = vmatprep.mubr.msk.bf16.mxu0 %vm598_vm0, %v467_v34  ;;  %3512 = vmatprep.subr.bf16.mxu1 %v5353_v0  ;;  %v470_v32 = vpack.c.bf16 %v284_v27, %v282_v26  ;;  %v2078_v34 = vld [vmem:[%s9708_s1 + $0x1190] sm:$0xff] }
 0x22f   :  { %v2598_v45 = vpack.c.bf16 %v2088_v36, %v2078_v34  ;;  %v299_v34 = vld [vmem:[%s9707_s0 + $0x8c8] sm:$0xff]  ;;  %v301_v36 = vld [vmem:[%s9707_s0 + $0x8d8] sm:$0xff] }
 0x230   :  { %3382 = vmatmul.mubr.bf16.gmra.mrb[20].mxu1 %v2568_v40  ;;  %v1173_v48 = vpop.f32.mrb[148].mxu0  ;;  %v2099_v40 = vld [vmem:[%s9708_s1 + $0x1238] sm:$0xff] }
 0x231   :  { %3389 = vmatprep.mubr.bf16.mxu1 %v2579_v41  ;;  %v1175_v50 = vpop.f32.mrb[149].mxu0  ;;  %v2109_v41 = vld [vmem:[%s9708_s1 + $0x1288] sm:$0xff] }
 0x232   :  { %v1176_v55 = vpop.f32.mrb[150].mxu0  ;;  %v2609_v47 = vpack.c.bf16 %v2109_v41, %v2099_v40  ;;  %v291_v50 = vld [vmem:[%s9707_s0 + $0x888] sm:$0xff]  ;;  %v2148_v40 = vld [vmem:[%s9708_s1 + $0x13c0] sm:$0xff] }
 0x233   :  { %v2753_v61 = vpack.c.bf16 %v1176_v55, %v1173_v48  ;;  %v1178_v62 = vpop.f32.mrb[151].mxu0  ;;  %v286_v48 = vld [vmem:[%s9707_s0 + $0x860] sm:$0xff] }
 0x235   :  { %1388 = vmatmul.mubr.bf16.gmra.mrb[0].mxu0 %v466_v49  ;;  %3513 = vmatpush1.bf16.msra.mxu1 %v2753_v61  ;;  %v288_v49 = vld [vmem:[%s9707_s0 + $0x870] sm:$0xff]  ;;  %v475_v61 = vpack.c.bf16 %v293_v52, %v291_v50 }
 0x236   :  { %4732 = vmatprep.mubr.msk.bf16.mxu0 %vm598_vm0, %v469_v57  ;;  %3514 = vmatprep.subr.bf16.mxu1 %v5353_v0  ;;  %v472_v55 = vpack.c.bf16 %v288_v49, %v286_v48  ;;  %v2098_v57 = vld [vmem:[%s9708_s1 + $0x1230] sm:$0xff] }
 0x237   :  { %v2608_v5 = vpack.c.bf16 %v2108_v59, %v2098_v57  ;;  %v303_v57 = vld [vmem:[%s9707_s0 + $0x8e8] sm:$0xff]  ;;  %v305_v59 = vld [vmem:[%s9707_s0 + $0x8f8] sm:$0xff] }
 0x238   :  { %3390 = vmatmul.mubr.bf16.gmra.mrb[24].mxu1 %v2578_v63  ;;  %v1181_v9 = vpop.f32.mrb[152].mxu0  ;;  %v2119_v63 = vld [vmem:[%s9708_s1 + $0x12d8] sm:$0xff] }
 0x239   :  { %3397 = vmatprep.mubr.bf16.mxu1 %v2589_v1  ;;  %v1183_v14 = vpop.f32.mrb[153].mxu0  ;;  %v2129_v1 = vld [vmem:[%s9708_s1 + $0x1328] sm:$0xff] }
 0x23a   :  { %v1184_v15 = vpop.f32.mrb[154].mxu0  ;;  %v2619_v8 = vpack.c.bf16 %v2129_v1, %v2119_v63  ;;  %v2168_v63 = vld [vmem:[%s9708_s1 + $0x1460] sm:$0xff] }
 0x23b   :  { %v2754_v21 = vpack.c.bf16 %v1184_v15, %v1181_v9  ;;  %v1186_v22 = vpop.f32.mrb[155].mxu0  ;;  %v290_v9 = vld [vmem:[%s9707_s0 + $0x880] sm:$0xff] }
 0x23c   :  { %v2139_v22 = vld [vmem:[%s9708_s1 + $0x1378] sm:$0xff] }
 0x23d   :  { %1396 = vmatmul.mubr.bf16.gmra.mrb[4].mxu0 %v468_v10  ;;  %3515 = vmatpush1.bf16.msra.mxu1 %v2754_v21  ;;  %v292_v10 = vld [vmem:[%s9707_s0 + $0x890] sm:$0xff]  ;;  %v477_v21 = vpack.c.bf16 %v297_v12, %v295_v11 }
 0x23e   :  { %4733 = vmatprep.mubr.msk.bf16.mxu0 %vm598_vm0, %v471_v16  ;;  %3516 = vmatprep.subr.bf16.mxu1 %v5353_v0  ;;  %v474_v15 = vpack.c.bf16 %v292_v10, %v290_v9  ;;  %v2118_v16 = vld [vmem:[%s9708_s1 + $0x12d0] sm:$0xff] }
 0x23f   :  { %v2618_v28 = vpack.c.bf16 %v2128_v17, %v2118_v16  ;;  %v307_v16 = vld [vmem:[%s9707_s0 + $0x908] sm:$0xff]  ;;  %v309_v17 = vld [vmem:[%s9707_s0 + $0x918] sm:$0xff] }
 0x240   :  { %3398 = vmatmul.mubr.bf16.gmra.mrb[28].mxu1 %v2588_v23  ;;  %v1189_v30 = vpop.f32.mrb[156].mxu0  ;;  %v2149_v23 = vld [vmem:[%s9708_s1 + $0x13c8] sm:$0xff] }
 0x241   :  { %3405 = vmatprep.mubr.bf16.mxu1 %v2599_v25  ;;  %v1191_v37 = vpop.f32.mrb[157].mxu0  ;;  %v2629_v29 = vpack.c.bf16 %v2149_v23, %v2139_v22  ;;  %v2178_v22 = vld [vmem:[%s9708_s1 + $0x14b0] sm:$0xff]  ;;  %v2188_v23 = vld [vmem:[%s9708_s1 + $0x1500] sm:$0xff] }
 0x242   :  { %v1192_v39 = vpop.f32.mrb[158].mxu0 }
 0x243   :  { %v2755_v42 = vpack.c.bf16 %v1192_v39, %v1189_v30  ;;  %v1194_v44 = vpop.f32.mrb[159].mxu0  ;;  %v294_v30 = vld [vmem:[%s9707_s0 + $0x8a0] sm:$0xff]  ;;  %v2138_v39 = vld [vmem:[%s9708_s1 + $0x1370] sm:$0xff] }
 0x244   :  { %v2159_v44 = vld [vmem:[%s9708_s1 + $0x1418] sm:$0xff]  ;;  %v2628_v50 = vpack.c.bf16 %v2148_v40, %v2138_v39  ;;  %v311_v39 = vld [vmem:[%s9707_s0 + $0x928] sm:$0xff] }
 0x245   :  { %1404 = vmatmul.mubr.bf16.gmra.mrb[8].mxu0 %v470_v32  ;;  %3517 = vmatpush1.bf16.msra.mxu1 %v2755_v42  ;;  %v296_v32 = vld [vmem:[%s9707_s0 + $0x8b0] sm:$0xff]  ;;  %v479_v42 = vpack.c.bf16 %v301_v36, %v299_v34  ;;  %v2648_v34 = vpack.c.bf16 %v2188_v23, %v2178_v22  ;;  %v313_v40 = vld [vmem:[%s9707_s0 + $0x938] sm:$0xff]  ;;  %v319_v22 = vld [vmem:[%s9707_s0 + $0x968] sm:$0xff] }
 0x246   :  { %4734 = vmatprep.mubr.msk.bf16.mxu0 %vm598_vm0, %v473_v38  ;;  %3518 = vmatprep.subr.bf16.mxu1 %v5353_v0  ;;  %v476_v38 = vpack.c.bf16 %v296_v32, %v294_v30  ;;  %v321_v23 = vld [vmem:[%s9707_s0 + $0x978] sm:$0xff] }
 0x248   :  { %3406 = vmatmul.mubr.bf16.gmra.mrb[32].mxu1 %v2598_v45  ;;  %v1197_v53 = vpop.f32.mrb[160].mxu0  ;;  %v2169_v45 = vld [vmem:[%s9708_s1 + $0x1468] sm:$0xff] }
 0x249   :  { %3413 = vmatprep.mubr.bf16.mxu1 %v2609_v47  ;;  %v1199_v60 = vpop.f32.mrb[161].mxu0  ;;  %v2639_v52 = vpack.c.bf16 %v2169_v45, %v2159_v44  ;;  %v2198_v44 = vld [vmem:[%s9708_s1 + $0x1550] sm:$0xff]  ;;  %v2208_v45 = vld [vmem:[%s9708_s1 + $0x15a0] sm:$0xff] }
 0x24a   :  { %v1200_v62 = vpop.f32.mrb[162].mxu0 }
 0x24b   :  { %v2756_v3 = vpack.c.bf16 %v1200_v62, %v1197_v53  ;;  %v1202_v4 = vpop.f32.mrb[163].mxu0  ;;  %v298_v53 = vld [vmem:[%s9707_s0 + $0x8c0] sm:$0xff]  ;;  %v2158_v62 = vld [vmem:[%s9708_s1 + $0x1410] sm:$0xff] }
 0x24c   :  { %v2179_v4 = vld [vmem:[%s9708_s1 + $0x14b8] sm:$0xff]  ;;  %v2638_v11 = vpack.c.bf16 %v2168_v63, %v2158_v62  ;;  %v315_v62 = vld [vmem:[%s9707_s0 + $0x948] sm:$0xff] }
 0x24d   :  { %1412 = vmatmul.mubr.bf16.gmra.mrb[12].mxu0 %v472_v55  ;;  %3519 = vmatpush1.bf16.msra.mxu1 %v2756_v3  ;;  %v300_v55 = vld [vmem:[%s9707_s0 + $0x8d0] sm:$0xff]  ;;  %v481_v3 = vpack.c.bf16 %v305_v59, %v303_v57  ;;  %v2658_v57 = vpack.c.bf16 %v2208_v45, %v2198_v44  ;;  %v317_v63 = vld [vmem:[%s9707_s0 + $0x958] sm:$0xff]  ;;  %v323_v44 = vld [vmem:[%s9707_s0 + $0x988] sm:$0xff] }
 0x24e   :  { %4735 = vmatprep.mubr.msk.bf16.mxu0 %vm598_vm0, %v475_v61  ;;  %3520 = vmatprep.subr.bf16.mxu1 %v5353_v0  ;;  %v478_v61 = vpack.c.bf16 %v300_v55, %v298_v53  ;;  %v325_v45 = vld [vmem:[%s9707_s0 + $0x998] sm:$0xff] }
 0x250   :  { %3414 = vmatmul.mubr.bf16.gmra.mrb[36].mxu1 %v2608_v5  ;;  %v1205_v14 = vpop.f32.mrb[164].mxu0  ;;  %v2189_v5 = vld [vmem:[%s9708_s1 + $0x1508] sm:$0xff] }
 0x251   :  { %3421 = vmatprep.mubr.bf16.mxu1 %v2619_v8  ;;  %v1207_v18 = vpop.f32.mrb[165].mxu0  ;;  %v2649_v12 = vpack.c.bf16 %v2189_v5, %v2179_v4  ;;  %v2218_v4 = vld [vmem:[%s9708_s1 + $0x15f0] sm:$0xff]  ;;  %v2228_v5 = vld [vmem:[%s9708_s1 + $0x1640] sm:$0xff] }
 0x252   :  { %v1208_v25 = vpop.f32.mrb[166].mxu0 }
 0x253   :  { %v2757_v26 = vpack.c.bf16 %v1208_v25, %v1205_v14  ;;  %v1210_v27 = vpop.f32.mrb[167].mxu0  ;;  %v302_v14 = vld [vmem:[%s9707_s0 + $0x8e0] sm:$0xff] }
 0x254   :  { %v2199_v27 = vld [vmem:[%s9708_s1 + $0x1558] sm:$0xff] }
 0x255   :  { %1420 = vmatmul.mubr.bf16.gmra.mrb[16].mxu0 %v474_v15  ;;  %3521 = vmatpush1.bf16.msra.mxu1 %v2757_v26  ;;  %v304_v15 = vld [vmem:[%s9707_s0 + $0x8f0] sm:$0xff]  ;;  %v483_v26 = vpack.c.bf16 %v309_v17, %v307_v16  ;;  %v2668_v16 = vpack.c.bf16 %v2228_v5, %v2218_v4  ;;  %v327_v4 = vld [vmem:[%s9707_s0 + $0x9a8] sm:$0xff]  ;;  %v329_v5 = vld [vmem:[%s9707_s0 + $0x9b8] sm:$0xff] }
 0x256   :  { %4736 = vmatprep.mubr.msk.bf16.mxu0 %vm598_vm0, %v477_v21  ;;  %3522 = vmatprep.subr.bf16.mxu1 %v5353_v0  ;;  %v480_v21 = vpack.c.bf16 %v304_v15, %v302_v14 }
 0x258   :  { %3422 = vmatmul.mubr.bf16.gmra.mrb[40].mxu1 %v2618_v28  ;;  %v1213_v37 = vpop.f32.mrb[168].mxu0  ;;  %v2209_v28 = vld [vmem:[%s9708_s1 + $0x15a8] sm:$0xff] }
 0x259   :  { %3429 = vmatprep.mubr.bf16.mxu1 %v2629_v29  ;;  %v1215_v41 = vpop.f32.mrb[169].mxu0  ;;  %v2659_v36 = vpack.c.bf16 %v2209_v28, %v2199_v27  ;;  %v2238_v27 = vld [vmem:[%s9708_s1 + $0x1690] sm:$0xff]  ;;  %v2248_v28 = vld [vmem:[%s9708_s1 + $0x16e0] sm:$0xff] }
 0x25a   :  { %v1216_v47 = vpop.f32.mrb[170].mxu0 }
 0x25b   :  { %v2758_v48 = vpack.c.bf16 %v1216_v47, %v1213_v37  ;;  %v1218_v49 = vpop.f32.mrb[171].mxu0  ;;  %v306_v37 = vld [vmem:[%s9707_s0 + $0x900] sm:$0xff] }
 0x25c   :  { %v2219_v49 = vld [vmem:[%s9708_s1 + $0x15f8] sm:$0xff] }
 0x25d   :  { %1428 = vmatmul.mubr.bf16.gmra.mrb[20].mxu0 %v476_v38  ;;  %3523 = vmatpush1.bf16.msra.mxu1 %v2758_v48  ;;  %v308_v38 = vld [vmem:[%s9707_s0 + $0x910] sm:$0xff]  ;;  %v485_v48 = vpack.c.bf16 %v313_v40, %v311_v39  ;;  %v2678_v39 = vpack.c.bf16 %v2248_v28, %v2238_v27  ;;  %v331_v27 = vld [vmem:[%s9707_s0 + $0x9c8] sm:$0xff]  ;;  %v333_v28 = vld [vmem:[%s9707_s0 + $0x9d8] sm:$0xff] }
 0x25e   :  { %4737 = vmatprep.mubr.msk.bf16.mxu0 %vm598_vm0, %v479_v42  ;;  %3524 = vmatprep.subr.bf16.mxu1 %v5353_v0  ;;  %v482_v42 = vpack.c.bf16 %v308_v38, %v306_v37 }
 0x260   :  { %3430 = vmatmul.mubr.bf16.gmra.mrb[44].mxu1 %v2628_v50  ;;  %v1221_v60 = vpop.f32.mrb[172].mxu0  ;;  %v2229_v50 = vld [vmem:[%s9708_s1 + $0x1648] sm:$0xff] }
 0x261   :  { %3437 = vmatprep.mubr.bf16.mxu1 %v2639_v52  ;;  %v1223_v1 = vpop.f32.mrb[173].mxu0  ;;  %v2669_v59 = vpack.c.bf16 %v2229_v50, %v2219_v49  ;;  %v2258_v49 = vld [vmem:[%s9708_s1 + $0x1730] sm:$0xff]  ;;  %v2268_v50 = vld [vmem:[%s9708_s1 + $0x1780] sm:$0xff] }
 0x262   :  { %v1224_v8 = vpop.f32.mrb[174].mxu0 }
 0x263   :  { %v2759_v9 = vpack.c.bf16 %v1224_v8, %v1221_v60  ;;  %v1226_v10 = vpop.f32.mrb[175].mxu0  ;;  %v310_v60 = vld [vmem:[%s9707_s0 + $0x920] sm:$0xff] }
 0x264   :  { %v2239_v10 = vld [vmem:[%s9708_s1 + $0x1698] sm:$0xff] }
 0x265   :  { %1436 = vmatmul.mubr.bf16.gmra.mrb[24].mxu0 %v478_v61  ;;  %3525 = vmatpush1.bf16.msra.mxu1 %v2759_v9  ;;  %v312_v61 = vld [vmem:[%s9707_s0 + $0x930] sm:$0xff]  ;;  %v487_v9 = vpack.c.bf16 %v317_v63, %v315_v62  ;;  %v2688_v62 = vpack.c.bf16 %v2268_v50, %v2258_v49  ;;  %v335_v50 = vld [vmem:[%s9707_s0 + $0x9e8] sm:$0xff] }
 0x266   :  { %4738 = vmatprep.mubr.msk.bf16.mxu0 %vm598_vm0, %v481_v3  ;;  %3526 = vmatprep.subr.bf16.mxu1 %v5353_v0  ;;  %v484_v3 = vpack.c.bf16 %v312_v61, %v310_v60  ;;  %v332_v49 = vld [vmem:[%s9707_s0 + $0x9d0] sm:$0xff] }
 0x268   :  { %3438 = vmatmul.mubr.bf16.gmra.mrb[48].mxu1 %v2638_v11  ;;  %v1229_v18 = vpop.f32.mrb[176].mxu0  ;;  %v2249_v11 = vld [vmem:[%s9708_s1 + $0x16e8] sm:$0xff] }
 0x269   :  { %3445 = vmatprep.mubr.bf16.mxu1 %v2649_v12  ;;  %v1231_v25 = vpop.f32.mrb[177].mxu0  ;;  %v2679_v17 = vpack.c.bf16 %v2249_v11, %v2239_v10  ;;  %v2278_v10 = vld [vmem:[%s9708_s1 + $0x17d0] sm:$0xff]  ;;  %v2288_v11 = vld [vmem:[%s9708_s1 + $0x1820] sm:$0xff] }
 0x26a   :  { %v1232_v29 = vpop.f32.mrb[178].mxu0 }
 0x26b   :  { %v2760_v30 = vpack.c.bf16 %v1232_v29, %v1229_v18  ;;  %v1234_v32 = vpop.f32.mrb[179].mxu0  ;;  %v314_v18 = vld [vmem:[%s9707_s0 + $0x940] sm:$0xff] }
 0x26c   :  { %v2259_v32 = vld [vmem:[%s9708_s1 + $0x1738] sm:$0xff] }
 0x26d   :  { %1444 = vmatmul.mubr.bf16.gmra.mrb[28].mxu0 %v480_v21  ;;  %3527 = vmatpush1.bf16.msra.mxu1 %v2760_v30  ;;  %v316_v21 = vld [vmem:[%s9707_s0 + $0x950] sm:$0xff]  ;;  %v489_v30 = vpack.c.bf16 %v321_v23, %v319_v22  ;;  %v2698_v22 = vpack.c.bf16 %v2288_v11, %v2278_v10 }
 0x26e   :  { %4739 = vmatprep.mubr.msk.bf16.mxu0 %vm598_vm0, %v483_v26  ;;  %3528 = vmatprep.subr.bf16.mxu1 %v5353_v0  ;;  %v486_v26 = vpack.c.bf16 %v316_v21, %v314_v18 }
 0x270   :  { %3446 = vmatmul.mubr.bf16.gmra.mrb[52].mxu1 %v2648_v34  ;;  %v1237_v41 = vpop.f32.mrb[180].mxu0  ;;  %v2269_v34 = vld [vmem:[%s9708_s1 + $0x1788] sm:$0xff] }
 0x271   :  { %3453 = vmatprep.mubr.bf16.mxu1 %v2659_v36  ;;  %v1239_v47 = vpop.f32.mrb[181].mxu0  ;;  %v2689_v40 = vpack.c.bf16 %v2269_v34, %v2259_v32  ;;  %v2298_v32 = vld [vmem:[%s9708_s1 + $0x1870] sm:$0xff]  ;;  %v2308_v34 = vld [vmem:[%s9708_s1 + $0x18c0] sm:$0xff] }
 0x272   :  { %v1240_v52 = vpop.f32.mrb[182].mxu0 }
 0x273   :  { %v2761_v53 = vpack.c.bf16 %v1240_v52, %v1237_v41  ;;  %v1242_v55 = vpop.f32.mrb[183].mxu0  ;;  %v318_v41 = vld [vmem:[%s9707_s0 + $0x960] sm:$0xff] }
 0x274   :  { %v2279_v55 = vld [vmem:[%s9708_s1 + $0x17d8] sm:$0xff] }
 0x275   :  { %1452 = vmatmul.mubr.bf16.gmra.mrb[32].mxu0 %v482_v42  ;;  %3529 = vmatpush1.bf16.msra.mxu1 %v2761_v53  ;;  %v320_v42 = vld [vmem:[%s9707_s0 + $0x970] sm:$0xff]  ;;  %v491_v53 = vpack.c.bf16 %v325_v45, %v323_v44  ;;  %v2708_v44 = vpack.c.bf16 %v2308_v34, %v2298_v32  ;;  %v1516_v34 = vld [vmem:[%s9708_s1] sm:$0xff] }
 0x276   :  { %4740 = vmatprep.mubr.msk.bf16.mxu0 %vm598_vm0, %v485_v48  ;;  %3530 = vmatprep.subr.bf16.mxu1 %v5353_v0  ;;  %v488_v48 = vpack.c.bf16 %v320_v42, %v318_v41 }
 0x278   :  { %3454 = vmatmul.mubr.bf16.gmra.mrb[56].mxu1 %v2658_v57  ;;  %v1245_v1 = vpop.f32.mrb[184].mxu0  ;;  %v2289_v57 = vld [vmem:[%s9708_s1 + $0x1828] sm:$0xff] }
 0x279   :  { %3461 = vmatprep.mubr.bf16.mxu1 %v2669_v59  ;;  %v1247_v8 = vpop.f32.mrb[185].mxu0  ;;  %v2699_v63 = vpack.c.bf16 %v2289_v57, %v2279_v55  ;;  %v1520_v57 = vld [vmem:[%s9708_s1 + $0x20] sm:$0xff] }
 0x27a   :  { %v1248_v12 = vpop.f32.mrb[186].mxu0 }
 0x27b   :  { %v2762_v14 = vpack.c.bf16 %v1248_v12, %v1245_v1  ;;  %v1250_v15 = vpop.f32.mrb[187].mxu0  ;;  %v322_v1 = vld [vmem:[%s9707_s0 + $0x980] sm:$0xff] }
 0x27c   :  { %v2299_v15 = vld [vmem:[%s9708_s1 + $0x1878] sm:$0xff] }
 0x27d   :  { %1460 = vmatmul.mubr.bf16.gmra.mrb[36].mxu0 %v484_v3  ;;  %3531 = vmatpush1.bf16.msra.mxu1 %v2762_v14  ;;  %v324_v3 = vld [vmem:[%s9707_s0 + $0x990] sm:$0xff]  ;;  %v493_v14 = vpack.c.bf16 %v329_v5, %v327_v4 }
 0x27e   :  { %4741 = vmatprep.mubr.msk.bf16.mxu0 %vm598_vm0, %v487_v9  ;;  %3532 = vmatprep.subr.bf16.mxu1 %v5353_v0  ;;  %v490_v9 = vpack.c.bf16 %v324_v3, %v322_v1  ;;  %v1541_v1 = vld [vmem:[%s9708_s1 + $0xc8] sm:$0xff]  ;;  %v1551_v3 = vld [vmem:[%s9708_s1 + $0x118] sm:$0xff] }
 0x27f   :  { %v2331_v11 = vpack.c.bf16 %v1551_v3, %v1541_v1  ;;  %v1600_v3 = vld [vmem:[%s9708_s1 + $0x2a0] sm:$0xff] }
 0x280   :  { %3462 = vmatmul.mubr.bf16.gmra.mrb[60].mxu1 %v2668_v16  ;;  %v1253_v25 = vpop.f32.mrb[188].mxu0  ;;  %v2309_v16 = vld [vmem:[%s9708_s1 + $0x18c8] sm:$0xff] }
 0x281   :  { %3469 = vmatprep.mubr.bf16.mxu1 %v2679_v17  ;;  %v1255_v29 = vpop.f32.mrb[189].mxu0  ;;  %v2709_v23 = vpack.c.bf16 %v2309_v16, %v2299_v15  ;;  %v1517_v15 = vld [vmem:[%s9708_s1 + $0x8] sm:$0xff]  ;;  %v1527_v16 = vld [vmem:[%s9708_s1 + $0x58] sm:$0xff] }
 0x282   :  { %v1256_v36 = vpop.f32.mrb[190].mxu0 }
 0x283   :  { %v2763_v37 = vpack.c.bf16 %v1256_v36, %v1253_v25  ;;  %v1258_v38 = vpop.f32.mrb[191].mxu0  ;;  %v326_v25 = vld [vmem:[%s9707_s0 + $0x9a0] sm:$0xff] }
 0x284   :  { %v1521_v38 = vld [vmem:[%s9708_s1 + $0x28] sm:$0xff] }
 0x285   :  { %1468 = vmatmul.mubr.bf16.gmra.mrb[40].mxu0 %v486_v26  ;;  %3533 = vmatpush1.bf16.msra.mxu1 %v2763_v37  ;;  %v328_v26 = vld [vmem:[%s9707_s0 + $0x9b0] sm:$0xff]  ;;  %v495_v37 = vpack.c.bf16 %v333_v28, %v331_v27  ;;  %v2317_v27 = vpack.c.bf16 %v1527_v16, %v1517_v15  ;;  %v1561_v28 = vld [vmem:[%s9708_s1 + $0x168] sm:$0xff]  ;;  %v1620_v16 = vld [vmem:[%s9708_s1 + $0x340] sm:$0xff] }
 0x286   :  { %4742 = vmatprep.mubr.msk.bf16.mxu0 %vm598_vm0, %v489_v30  ;;  %3855 = vmatprep.subr.bf16.mxu1 %v5353_v0  ;;  %v492_v30 = vpack.c.bf16 %v328_v26, %v326_v25  ;;  %v1550_v25 = vld [vmem:[%s9708_s1 + $0x110] sm:$0xff] }
 0x288   :  { %3470 = vmatmul.mubr.bf16.gmra.mrb[64].mxu1 %v2678_v39  ;;  %v6733_v47 = vpop.f32.mrb[192].mxu0  ;;  %v1531_v39 = vld [vmem:[%s9708_s1 + $0x78] sm:$0xff] }
 0x289   :  { %3477 = vmatprep.mubr.bf16.mxu1 %v2689_v40  ;;  %v1263_v52 = vpop.f32.mrb[193].mxu0  ;;  %v2321_v45 = vpack.c.bf16 %v1531_v39, %v1521_v38  ;;  %v1581_v39 = vld [vmem:[%s9708_s1 + $0x208] sm:$0xff] }
 0x28a   :  { %v6747_v59 = vpop.f32.mrb[194].mxu0  ;;  %v337_v52 = vld [vmem:[%s9707_s0 + $0x9f8] sm:$0xff] }
 0x28b   :  { %v2764_v60 = vpack.c.bf16 %v6747_v59, %v6733_v47  ;;  %v1266_v61 = vpop.f32.mrb[195].mxu0  ;;  %v1571_v47 = vld [vmem:[%s9708_s1 + $0x1b8] sm:$0xff] }
 0x28c   :  { %v1530_v61 = vld [vmem:[%s9708_s1 + $0x70] sm:$0xff]  ;;  %v2341_v32 = vpack.c.bf16 %v1571_v47, %v1561_v28 }
 0x28d   :  { %1476 = vmatmul.mubr.bf16.gmra.mrb[44].mxu0 %v488_v48  ;;  %v330_v48 = vld [vmem:[%s9707_s0 + $0x9c0] sm:$0xff]  ;;  %v2320_v10 = vpack.c.bf16 %v1530_v61, %v1520_v57 }
 0x28e   :  { %4743 = vmatprep.mubr.msk.bf16.mxu0 %vm598_vm0, %v491_v53  ;;  %v494_v55 = vpack.c.bf16 %v332_v49, %v330_v48 }
 0x290   :  { %3478 = vmatmul.mubr.bf16.gmra.mrb[68].mxu1 %v2688_v62  ;;  %v6764_v8 = vpop.f32.mrb[196].mxu0 }
 0x291   :  { %3485 = vmatprep.mubr.bf16.mxu1 %v2699_v63  ;;  %v1271_v12 = vpop.f32.mrb[197].mxu0  ;;  %v497_v63 = vpack.c.bf16 %v337_v52, %v335_v50  ;;  %v1580_v50 = vld [vmem:[%s9708_s1 + $0x200] sm:$0xff]  ;;  %v1590_v52 = vld [vmem:[%s9708_s1 + $0x250] sm:$0xff] }
 0x292   :  { %v6778_v17 = vpop.f32.mrb[198].mxu0  ;;  %v334_v12 = vld [vmem:[%s9707_s0 + $0x9e0] sm:$0xff] }
 0x293   :  { %v2765_v18 = vpack.c.bf16 %v6778_v17, %v6764_v8  ;;  %v1274_v21 = vpop.f32.mrb[199].mxu0  ;;  %v1560_v8 = vld [vmem:[%s9708_s1 + $0x160] sm:$0xff]  ;;  %v1570_v17 = vld [vmem:[%s9708_s1 + $0x1b0] sm:$0xff] }
 0x294   :  { %v2340_v48 = vpack.c.bf16 %v1570_v17, %v1560_v8  ;;  %v1567_v8 = vld [vmem:[%s9708_s1 + $0x198] sm:$0xff] }
 0x295   :  { %1484 = vmatmul.mubr.bf16.gmra.mrb[48].mxu0 %v490_v9 }
 0x296   :  { %4744 = vmatprep.mubr.msk.bf16.mxu0 %vm598_vm0, %v493_v14  ;;  %v336_v14 = vld [vmem:[%s9707_s0 + $0x9f0] sm:$0xff] }
 0x298   :  { %3486 = vmatmul.mubr.bf16.gmra.mrb[72].mxu1 %v2698_v22  ;;  %v6795_v29 = vpop.f32.mrb[200].mxu0  ;;  %v496_v22 = vpack.c.bf16 %v336_v14, %v334_v12 }
 0x299   :  { %3493 = vmatprep.mubr.bf16.mxu1 %v2709_v23  ;;  %v1279_v36 = vpop.f32.mrb[201].mxu0  ;;  %v1540_v23 = vld [vmem:[%s9708_s1 + $0xc0] sm:$0xff] }
 0x29a   :  { %v1280_v40 = vpop.f32.mrb[202].mxu0  ;;  %v1526_v36 = vld [vmem:[%s9708_s1 + $0x50] sm:$0xff] }
 0x29b   :  { %v2766_v41 = vpack.c.bf16 %v1280_v40, %v6795_v29  ;;  %v1282_v42 = vpop.f32.mrb[203].mxu0  ;;  %v2316_v38 = vpack.c.bf16 %v1526_v36, %v1516_v34  ;;  %v1591_v40 = vld [vmem:[%s9708_s1 + $0x258] sm:$0xff]  ;;  %v1640_v34 = vld [vmem:[%s9708_s1 + $0x3e0] sm:$0xff]  ;;  %v1650_v36 = vld [vmem:[%s9708_s1 + $0x430] sm:$0xff] }
 0x29c   :  { %v2351_v49 = vpack.c.bf16 %v1591_v40, %v1581_v39  ;;  %v2380_v39 = vpack.c.bf16 %v1650_v36, %v1640_v34  ;;  %v1637_v34 = vld [vmem:[%s9708_s1 + $0x3c8] sm:$0xff]  ;;  %v1647_v36 = vld [vmem:[%s9708_s1 + $0x418] sm:$0xff] }
 0x29d   :  { %1492 = vmatmul.mubr.bf16.gmra.mrb[52].mxu0 %v492_v30  ;;  %v2330_v30 = vpack.c.bf16 %v1550_v25, %v1540_v23  ;;  %v1651_v23 = vld [vmem:[%s9708_s1 + $0x438] sm:$0xff] }
 0x29e   :  { %4745 = vmatprep.mubr.msk.bf16.mxu0 %vm598_vm0, %v495_v37 }
 0x2a0   :  { %3494 = vmatmul.mubr.bf16.gmra.mrb[76].mxu1 %v2708_v44  ;;  %v1285_v53 = vpop.f32.mrb[204].mxu0 }
 0x2a1   :  { %3534 = vmatprep.mubr.bf16.mxu1 %v2321_v45  ;;  %v1287_v62 = vpop.f32.mrb[205].mxu0 }
 0x2a2   :  { %v1288_v4 = vpop.f32.mrb[206].mxu0 }
 0x2a3   :  { %v2767_v5 = vpack.c.bf16 %v1288_v4, %v1285_v53  ;;  %v1290_v9 = vpop.f32.mrb[207].mxu0  ;;  %v1610_v4 = vld [vmem:[%s9708_s1 + $0x2f0] sm:$0xff] }
 0x2a4   :  { %v1631_v9 = vld [vmem:[%s9708_s1 + $0x398] sm:$0xff]  ;;  %v2360_v14 = vpack.c.bf16 %v1610_v4, %v1600_v3  ;;  %v1690_v3 = vld [vmem:[%s9708_s1 + $0x570] sm:$0xff]  ;;  %v1701_v4 = vld [vmem:[%s9708_s1 + $0x5c8] sm:$0xff] }
 0x2a5   :  { %1500 = vmatmul.mubr.bf16.gmra.mrb[56].mxu0 %v494_v55  ;;  %v1611_v55 = vld [vmem:[%s9708_s1 + $0x2f8] sm:$0xff] }
 0x2a6   :  { %4746 = vmatprep.mubr.msk.bf16.mxu0 %vm598_vm0, %v497_v63  ;;  %v2350_v63 = vpack.c.bf16 %v1590_v52, %v1580_v50  ;;  %v1577_v52 = vld [vmem:[%s9708_s1 + $0x1e8] sm:$0xff] }
 0x2a8   :  { %3535 = vmatmul.mubr.bf16.vlgmr.msra.gmra.mrb[80].mxu1 %v2320_v10  ;;  %v1293_v21 = vpop.f32.mrb[208].mxu0 }
 0x2a9   :  { %3856 = vmatpush1.bf16.msra.mxu1 %v2764_v60  ;;  %3542 = vmatprep.mubr.bf16.mxu1 %v2331_v11  ;;  %v1295_v26 = vpop.f32.mrb[209].mxu0 }
 0x2aa   :  { %3857 = vmatprep.subr.bf16.mxu1 %v5353_v0  ;;  %v1296_v59 = vpop.f32.mrb[210].mxu0  ;;  %v1537_v26 = vld [vmem:[%s9708_s1 + $0xa8] sm:$0xff] }
 0x2ab   :  { %v2768_v60 = vpack.c.bf16 %v1296_v59, %v1293_v21  ;;  %v1298_v29 = vpop.f32.mrb[211].mxu0  ;;  %v1630_v21 = vld [vmem:[%s9708_s1 + $0x390] sm:$0xff] }
 0x2ac   :  { %v2370_v29 = vpack.c.bf16 %v1630_v21, %v1620_v16  ;;  %v1710_v16 = vld [vmem:[%s9708_s1 + $0x610] sm:$0xff]  ;;  %v1721_v21 = vld [vmem:[%s9708_s1 + $0x668] sm:$0xff] }
 0x2ad   :  { %1508 = vmatmul.mubr.bf16.gmra.mrb[60].mxu0 %v496_v22  ;;  %3858 = vmatpush1.bf16.msra.mxu1 %v2765_v18  ;;  %v1641_v22 = vld [vmem:[%s9708_s1 + $0x3e8] sm:$0xff] }
 0x2ae   :  { %2828 = vmatprep.mubr.bf16.mxu0 %v2317_v27  ;;  %3859 = vmatprep.subr.bf16.mxu1 %v5353_v0  ;;  %v1547_v27 = vld [vmem:[%s9708_s1 + $0xf8] sm:$0xff] }
 0x2af   :  { %v2327_v59 = vpack.c.bf16 %v1547_v27, %v1537_v26 }
 0x2b0   :  { %3543 = vmatmul.mubr.bf16.gmra.mrb[84].mxu1 %v2330_v30  ;;  %v1301_v37 = vpop.f32.mrb[212].mxu0 }
 0x2b1   :  { %3550 = vmatprep.mubr.bf16.mxu1 %v2341_v32  ;;  %3860 = vmatpush1.bf16.msra.mxu1 %v2766_v41  ;;  %v1303_v18 = vpop.f32.mrb[213].mxu0  ;;  %v2381_v32 = vpack.c.bf16 %v1651_v23, %v1641_v22  ;;  %v1617_v23 = vld [vmem:[%s9708_s1 + $0x328] sm:$0xff] }
 0x2b2   :  { %3861 = vmatprep.subr.bf16.mxu1 %v5353_v0  ;;  %v1304_v42 = vpop.f32.mrb[214].mxu0  ;;  %v1556_v18 = vld [vmem:[%s9708_s1 + $0x140] sm:$0xff] }
 0x2b3   :  { %v2769_v44 = vpack.c.bf16 %v1304_v42, %v1301_v37  ;;  %v1306_v45 = vpop.f32.mrb[215].mxu0  ;;  %v1661_v37 = vld [vmem:[%s9708_s1 + $0x488] sm:$0xff] }
 0x2b4   :  { %v1660_v45 = vld [vmem:[%s9708_s1 + $0x480] sm:$0xff] }
 0x2b5   :  { %2829 = vmatmul.mubr.bf16.vlgmr.msra.gmra.mrb[64].mxu0 %v2316_v38  ;;  %3862 = vmatpush1.bf16.msra.mxu1 %v2767_v5  ;;  %v1557_v38 = vld [vmem:[%s9708_s1 + $0x148] sm:$0xff] }
 0x2b6   :  { %3150 = vmatpush1.bf16.msra.mxu0 %v6033_v54  ;;  %3863 = vmatprep.subr.bf16.mxu1 %v5353_v0  ;;  %v1601_v54 = vld [vmem:[%s9708_s1 + $0x2a8] sm:$0xff]  ;;  %v2337_v17 = vpack.c.bf16 %v1567_v8, %v1557_v38 }
 0x2b7   :  { %3151 = vmatprep.subr.bf16.mxu0 %v5353_v0  ;;  %v2361_v1 = vpack.c.bf16 %v1611_v55, %v1601_v54  ;;  %2836 = vmatprep.mubr.bf16.mxu0 %v2327_v59 }
 0x2b8   :  { %3551 = vmatmul.mubr.bf16.gmra.mrb[88].mxu1 %v2340_v48  ;;  %v1309_v41 = vpop.f32.mrb[216].mxu0  ;;  %v1670_v48 = vld [vmem:[%s9708_s1 + $0x4d0] sm:$0xff] }
 0x2b9   :  { %3558 = vmatprep.mubr.bf16.mxu1 %v2351_v49  ;;  %3864 = vmatpush1.bf16.msra.mxu1 %v2768_v60  ;;  %v1311_v53 = vpop.f32.mrb[217].mxu0  ;;  %v1546_v60 = vld [vmem:[%s9708_s1 + $0xf0] sm:$0xff]  ;;  %v1681_v49 = vld [vmem:[%s9708_s1 + $0x528] sm:$0xff] }
 0x2ba   :  { %3152 = vmatpush1.bf16.msra.mxu0 %v6050_v2  ;;  %3865 = vmatprep.subr.bf16.mxu1 %v5353_v0  ;;  %v1312_v57 = vpop.f32.mrb[218].mxu0  ;;  %v1587_v53 = vld [vmem:[%s9708_s1 + $0x238] sm:$0xff] }
 0x2bb   :  { %3153 = vmatprep.subr.bf16.mxu0 %v5353_v0  ;;  %v2770_v61 = vpack.c.bf16 %v1312_v57, %v1309_v41  ;;  %v1314_v62 = vpop.f32.mrb[219].mxu0  ;;  %v2347_v57 = vpack.c.bf16 %v1587_v53, %v1577_v52  ;;  %v1760_v53 = vld [vmem:[%s9708_s1 + $0x7a0] sm:$0xff] }
 0x2bc   :  { %v2390_v62 = vpack.c.bf16 %v1670_v48, %v1660_v45  ;;  %v1656_v48 = vld [vmem:[%s9708_s1 + $0x460] sm:$0xff] }
 0x2bd   :  { %3866 = vmatpush1.bf16.msra.mxu1 %v2769_v44 }
 0x2be   :  { %3154 = vmatpush1.bf16.msra.mxu0 %v6067_v13  ;;  %3867 = vmatprep.subr.bf16.mxu1 %v5353_v0  ;;  %v1621_v13 = vld [vmem:[%s9708_s1 + $0x348] sm:$0xff] }
 0x2bf   :  { %3155 = vmatprep.subr.bf16.mxu0 %v5353_v0  ;;  %v2371_v15 = vpack.c.bf16 %v1631_v9, %v1621_v13  ;;  %v1607_v13 = vld [vmem:[%s9708_s1 + $0x2d8] sm:$0xff] }
 0x2c0   :  { %3559 = vmatmul.mubr.bf16.gmra.mrb[92].mxu1 %v2350_v63  ;;  %v1317_v2 = vpop.f32.mrb[220].mxu0 }
 0x2c1   :  { %3566 = vmatprep.mubr.bf16.mxu1 %v2361_v1  ;;  %3868 = vmatpush1.bf16.msra.mxu1 %v2770_v61  ;;  %v1319_v5 = vpop.f32.mrb[221].mxu0  ;;  %v1586_v61 = vld [vmem:[%s9708_s1 + $0x230] sm:$0xff] }
 0x2c2   :  { %3156 = vmatpush1.bf16.msra.mxu0 %v6084_v24  ;;  %v1320_v10 = vpop.f32.mrb[222].mxu0  ;;  %3869 = vmatprep.subr.bf16.mxu1 %v5353_v0  ;;  %v1597_v5 = vld [vmem:[%s9708_s1 + $0x288] sm:$0xff] }
 0x2c3   :  { %3157 = vmatprep.subr.bf16.mxu0 %v5353_v0  ;;  %v2771_v11 = vpack.c.bf16 %v1320_v10, %v1317_v2  ;;  %v1322_v12 = vpop.f32.mrb[223].mxu0  ;;  %v1680_v2 = vld [vmem:[%s9708_s1 + $0x520] sm:$0xff]  ;;  %v2357_v9 = vpack.c.bf16 %v1607_v13, %v1597_v5 }
 0x2c4   :  { %v1596_v10 = vld [vmem:[%s9708_s1 + $0x280] sm:$0xff] }
 0x2c5   :  { %3870 = vmatpush1.bf16.msra.mxu1 %v2771_v11  ;;  %v2400_v11 = vpack.c.bf16 %v1690_v3, %v1680_v2 }
 0x2c6   :  { %3158 = vmatpush1.bf16.msra.mxu0 %v6101_v35  ;;  %3871 = vmatprep.subr.bf16.mxu1 %v5353_v0 }
 0x2c7   :  { %3159 = vmatprep.subr.bf16.mxu0 %v5353_v0 }
 0x2c8   :  { %3567 = vmatmul.mubr.bf16.gmra.mrb[96].mxu1 %v2360_v14  ;;  %v1325_v24 = vpop.f32.mrb[224].mxu0 }
 0x2c9   :  { %3574 = vmatprep.mubr.bf16.mxu1 %v2371_v15  ;;  %v1327_v35 = vpop.f32.mrb[225].mxu0 }
 0x2ca   :  { %3160 = vmatpush1.bf16.msra.mxu0 %v6118_v46  ;;  %v1328_v25 = vpop.f32.mrb[226].mxu0  ;;  %v1536_v46 = vld [vmem:[%s9708_s1 + $0xa0] sm:$0xff] }
 0x2cb   :  { %3161 = vmatprep.subr.bf16.mxu0 %v5353_v0  ;;  %v2772_v28 = vpack.c.bf16 %v1328_v25, %v1325_v24  ;;  %v1330_v47 = vpop.f32.mrb[227].mxu0  ;;  %v2326_v30 = vpack.c.bf16 %v1546_v60, %v1536_v46  ;;  %v1700_v24 = vld [vmem:[%s9708_s1 + $0x5c0] sm:$0xff]  ;;  %v1627_v25 = vld [vmem:[%s9708_s1 + $0x378] sm:$0xff] }
 0x2cc   :  { %v1626_v47 = vld [vmem:[%s9708_s1 + $0x370] sm:$0xff]  ;;  %v2410_v59 = vpack.c.bf16 %v1710_v16, %v1700_v24  ;;  %v1696_v16 = vld [vmem:[%s9708_s1 + $0x5a0] sm:$0xff] }
 0x2cd   :  { %3872 = vmatpush1.bf16.msra.mxu1 %v2772_v28  ;;  %2837 = vmatmul.mubr.bf16.gmra.mrb[68].mxu0 %v2326_v30  ;;  %v2367_v28 = vpack.c.bf16 %v1627_v25, %v1617_v23  ;;  %v1730_v30 = vld [vmem:[%s9708_s1 + $0x6b0] sm:$0xff]  ;;  %v1800_v25 = vld [vmem:[%s9708_s1 + $0x8e0] sm:$0xff] }
 0x2ce   :  { %3162 = vmatpush1.bf16.msra.mxu0 %v6135_v58  ;;  %3873 = vmatprep.subr.bf16.mxu1 %v5353_v0  ;;  %v1671_v58 = vld [vmem:[%s9708_s1 + $0x4d8] sm:$0xff] }
 0x2cf   :  { %3163 = vmatprep.subr.bf16.mxu0 %v5353_v0  ;;  %v2391_v42 = vpack.c.bf16 %v1671_v58, %v1661_v37  ;;  %2844 = vmatprep.mubr.bf16.mxu0 %v2337_v17  ;;  %v2377_v37 = vpack.c.bf16 %v1647_v36, %v1637_v34  ;;  %v1636_v58 = vld [vmem:[%s9708_s1 + $0x3c0] sm:$0xff] }
 0x2d0   :  { %3575 = vmatmul.mubr.bf16.gmra.mrb[100].mxu1 %v2370_v29  ;;  %v1333_v44 = vpop.f32.mrb[228].mxu0  ;;  %v1720_v29 = vld [vmem:[%s9708_s1 + $0x660] sm:$0xff] }
 0x2d1   :  { %3582 = vmatprep.mubr.bf16.mxu1 %v2381_v32  ;;  %v1335_v41 = vpop.f32.mrb[229].mxu0  ;;  %v1741_v32 = vld [vmem:[%s9708_s1 + $0x708] sm:$0xff]  ;;  %v2420_v38 = vpack.c.bf16 %v1730_v30, %v1720_v29 }
 0x2d2   :  { %3164 = vmatpush1.bf16.msra.mxu0 %v6152_v7  ;;  %v1566_v7 = vld [vmem:[%s9708_s1 + $0x190] sm:$0xff]  ;;  %v1336_v50 = vpop.f32.mrb[230].mxu0 }
 0x2d3   :  { %3165 = vmatprep.subr.bf16.mxu0 %v5353_v0  ;;  %v2336_v40 = vpack.c.bf16 %v1566_v7, %v1556_v18  ;;  %v2773_v54 = vpack.c.bf16 %v1336_v50, %v1333_v44  ;;  %v1338_v55 = vpop.f32.mrb[231].mxu0  ;;  %v1740_v18 = vld [vmem:[%s9708_s1 + $0x700] sm:$0xff]  ;;  %v1750_v7 = vld [vmem:[%s9708_s1 + $0x750] sm:$0xff]  ;;  %v1667_v44 = vld [vmem:[%s9708_s1 + $0x4b8] sm:$0xff] }
 0x2d4   :  { %v2430_v41 = vpack.c.bf16 %v1750_v7, %v1740_v18  ;;  %v1781_v55 = vld [vmem:[%s9708_s1 + $0x848] sm:$0xff]  ;;  %v1747_v18 = vld [vmem:[%s9708_s1 + $0x738] sm:$0xff] }
 0x2d5   :  { %2845 = vmatmul.mubr.bf16.gmra.mrb[72].mxu0 %v2336_v40  ;;  %3874 = vmatpush1.bf16.msra.mxu1 %v2773_v54  ;;  %v1771_v40 = vld [vmem:[%s9708_s1 + $0x7f8] sm:$0xff]  ;;  %v1770_v54 = vld [vmem:[%s9708_s1 + $0x7f0] sm:$0xff] }
 0x2d6   :  { %3166 = vmatpush1.bf16.msra.mxu0 %v6169_v19  ;;  %v1691_v19 = vld [vmem:[%s9708_s1 + $0x578] sm:$0xff]  ;;  %2852 = vmatprep.mubr.bf16.mxu0 %v2347_v57  ;;  %v2440_v5 = vpack.c.bf16 %v1770_v54, %v1760_v53  ;;  %v1756_v54 = vld [vmem:[%s9708_s1 + $0x780] sm:$0xff] }
 0x2d7   :  { %3167 = vmatprep.subr.bf16.mxu0 %v5353_v0  ;;  %v2401_v1 = vpack.c.bf16 %v1691_v19, %v1681_v49  ;;  %3875 = vmatprep.subr.bf16.mxu1 %v5353_v0  ;;  %v1666_v49 = vld [vmem:[%s9708_s1 + $0x4b0] sm:$0xff] }
 0x2d8   :  { %3583 = vmatmul.mubr.bf16.gmra.mrb[104].mxu1 %v2380_v39  ;;  %v1341_v15 = vpop.f32.mrb[232].mxu0  ;;  %v1761_v39 = vld [vmem:[%s9708_s1 + $0x7a8] sm:$0xff]  ;;  %v2386_v19 = vpack.c.bf16 %v1666_v49, %v1656_v48  ;;  %v1840_v48 = vld [vmem:[%s9708_s1 + $0xa20] sm:$0xff]  ;;  %v1850_v49 = vld [vmem:[%s9708_s1 + $0xa70] sm:$0xff] }
 0x2d9   :  { %3590 = vmatprep.mubr.bf16.mxu1 %v2391_v42  ;;  %v1343_v22 = vpop.f32.mrb[233].mxu0  ;;  %v1657_v42 = vld [vmem:[%s9708_s1 + $0x468] sm:$0xff]  ;;  %v2441_v50 = vpack.c.bf16 %v1771_v40, %v1761_v39  ;;  %v1736_v39 = vld [vmem:[%s9708_s1 + $0x6e0] sm:$0xff]  ;;  %v1746_v40 = vld [vmem:[%s9708_s1 + $0x730] sm:$0xff] }
 0x2da   :  { %3168 = vmatpush1.bf16.msra.mxu0 %v6186_v31  ;;  %v1576_v31 = vld [vmem:[%s9708_s1 + $0x1e0] sm:$0xff]  ;;  %v1344_v35 = vpop.f32.mrb[234].mxu0  ;;  %v2387_v45 = vpack.c.bf16 %v1667_v44, %v1657_v42  ;;  %v2426_v44 = vpack.c.bf16 %v1746_v40, %v1736_v39  ;;  %v1930_v40 = vld [vmem:[%s9708_s1 + $0xcf0] sm:$0xff] }
 0x2db   :  { %3169 = vmatprep.subr.bf16.mxu0 %v5353_v0  ;;  %v2346_v63 = vpack.c.bf16 %v1586_v61, %v1576_v31  ;;  %v2774_v26 = vpack.c.bf16 %v1344_v35, %v1341_v15  ;;  %v1346_v27 = vpop.f32.mrb[235].mxu0  ;;  %v1791_v31 = vld [vmem:[%s9708_s1 + $0x898] sm:$0xff]  ;;  %v1920_v39 = vld [vmem:[%s9708_s1 + $0xca0] sm:$0xff] }
 0x2dc   :  { %v1707_v15 = vld [vmem:[%s9708_s1 + $0x5f8] sm:$0xff]  ;;  %v1821_v27 = vld [vmem:[%s9708_s1 + $0x988] sm:$0xff] }
 0x2dd   :  { %2853 = vmatmul.mubr.bf16.gmra.mrb[76].mxu0 %v2346_v63  ;;  %3876 = vmatpush1.bf16.msra.mxu1 %v2774_v26  ;;  %v1687_v63 = vld [vmem:[%s9708_s1 + $0x558] sm:$0xff]  ;;  %v1810_v26 = vld [vmem:[%s9708_s1 + $0x930] sm:$0xff] }
 0x2de   :  { %3170 = vmatpush1.bf16.msra.mxu0 %v6203_v43  ;;  %v1711_v43 = vld [vmem:[%s9708_s1 + $0x618] sm:$0xff]  ;;  %2860 = vmatprep.mubr.bf16.mxu0 %v2357_v9  ;;  %v2451_v9 = vpack.c.bf16 %v1791_v31, %v1781_v55  ;;  %v2460_v34 = vpack.c.bf16 %v1810_v26, %v1800_v25  ;;  %v1766_v55 = vld [vmem:[%s9708_s1 + $0x7d0] sm:$0xff]  ;;  %v1796_v26 = vld [vmem:[%s9708_s1 + $0x8c0] sm:$0xff] }
 0x2df   :  { %3171 = vmatprep.subr.bf16.mxu0 %v5353_v0  ;;  %v2411_v14 = vpack.c.bf16 %v1711_v43, %v1701_v4  ;;  %3877 = vmatprep.subr.bf16.mxu1 %v5353_v0  ;;  %v1676_v4 = vld [vmem:[%s9708_s1 + $0x500] sm:$0xff]  ;;  %v1686_v43 = vld [vmem:[%s9708_s1 + $0x550] sm:$0xff]  ;;  %v2436_v31 = vpack.c.bf16 %v1766_v55, %v1756_v54 }
 0x2e0   :  { %3591 = vmatmul.mubr.bf16.gmra.mrb[108].mxu1 %v2390_v62  ;;  %v1349_v52 = vpop.f32.mrb[236].mxu0  ;;  %v1677_v62 = vld [vmem:[%s9708_s1 + $0x508] sm:$0xff]  ;;  %v2396_v13 = vpack.c.bf16 %v1686_v43, %v1676_v4  ;;  %v1891_v4 = vld [vmem:[%s9708_s1 + $0xbb8] sm:$0xff]  ;;  %v1940_v54 = vld [vmem:[%s9708_s1 + $0xd40] sm:$0xff] }
 0x2e1   :  { %3598 = vmatprep.mubr.bf16.mxu1 %v2401_v1  ;;  %v1351_v57 = vpop.f32.mrb[237].mxu0  ;;  %v2397_v3 = vpack.c.bf16 %v1687_v63, %v1677_v62  ;;  %v1860_v63 = vld [vmem:[%s9708_s1 + $0xac0] sm:$0xff]  ;;  %v1950_v55 = vld [vmem:[%s9708_s1 + $0xd90] sm:$0xff] }
 0x2e2   :  { %3172 = vmatpush1.bf16.msra.mxu0 %v6220_v56  ;;  %v1606_v56 = vld [vmem:[%s9708_s1 + $0x2d0] sm:$0xff]  ;;  %v1352_v61 = vpop.f32.mrb[238].mxu0  ;;  %v2480_v57 = vpack.c.bf16 %v1850_v49, %v1840_v48  ;;  %v1847_v48 = vld [vmem:[%s9708_s1 + $0xa58] sm:$0xff] }
 0x2e3   :  { %3173 = vmatprep.subr.bf16.mxu0 %v5353_v0  ;;  %v2356_v12 = vpack.c.bf16 %v1606_v56, %v1596_v10  ;;  %v2775_v1 = vpack.c.bf16 %v1352_v61, %v1349_v52  ;;  %v1354_v2 = vpop.f32.mrb[239].mxu0  ;;  %v1780_v10 = vld [vmem:[%s9708_s1 + $0x840] sm:$0xff]  ;;  %v1790_v56 = vld [vmem:[%s9708_s1 + $0x890] sm:$0xff]  ;;  %v1767_v52 = vld [vmem:[%s9708_s1 + $0x7d8] sm:$0xff] }
 0x2e4   :  { %v2450_v22 = vpack.c.bf16 %v1790_v56, %v1780_v10  ;;  %v1881_v2 = vld [vmem:[%s9708_s1 + $0xb68] sm:$0xff] }
 0x2e5   :  { %2861 = vmatmul.mubr.bf16.gmra.mrb[80].mxu0 %v2356_v12  ;;  %3878 = vmatpush1.bf16.msra.mxu1 %v2775_v1  ;;  %v1811_v12 = vld [vmem:[%s9708_s1 + $0x938] sm:$0xff]  ;;  %v1870_v1 = vld [vmem:[%s9708_s1 + $0xb10] sm:$0xff] }
 0x2e6   :  { %3174 = vmatpush1.bf16.msra.mxu0 %v6237_v6  ;;  %v1731_v6 = vld [vmem:[%s9708_s1 + $0x6b8] sm:$0xff]  ;;  %2868 = vmatprep.mubr.bf16.mxu0 %v2367_v28 }
 0x2e7   :  { %3175 = vmatprep.subr.bf16.mxu0 %v5353_v0  ;;  %v2421_v60 = vpack.c.bf16 %v1731_v6, %v1721_v21  ;;  %3879 = vmatprep.subr.bf16.mxu1 %v5353_v0  ;;  %v1706_v21 = vld [vmem:[%s9708_s1 + $0x5f0] sm:$0xff] }
 0x2e8   :  { %3599 = vmatmul.mubr.bf16.gmra.mrb[112].mxu1 %v2400_v11  ;;  %v1801_v11 = vld [vmem:[%s9708_s1 + $0x8e8] sm:$0xff]  ;;  %v2406_v6 = vpack.c.bf16 %v1706_v21, %v1696_v16  ;;  %v1357_v23 = vpop.f32.mrb[240].mxu0  ;;  %v1880_v16 = vld [vmem:[%s9708_s1 + $0xb60] sm:$0xff]  ;;  %v1890_v21 = vld [vmem:[%s9708_s1 + $0xbb0] sm:$0xff] }
 0x2e9   :  { %3606 = vmatprep.mubr.bf16.mxu1 %v2411_v14  ;;  %v1697_v14 = vld [vmem:[%s9708_s1 + $0x5a8] sm:$0xff]  ;;  %v2461_v35 = vpack.c.bf16 %v1811_v12, %v1801_v11  ;;  %v1359_v28 = vpop.f32.mrb[241].mxu0  ;;  %v1776_v11 = vld [vmem:[%s9708_s1 + $0x820] sm:$0xff]  ;;  %v1786_v12 = vld [vmem:[%s9708_s1 + $0x870] sm:$0xff] }
 0x2ea   :  { %3176 = vmatpush1.bf16.msra.mxu0 %v6254_v20  ;;  %v1616_v20 = vld [vmem:[%s9708_s1 + $0x320] sm:$0xff]  ;;  %v2407_v24 = vpack.c.bf16 %v1707_v15, %v1697_v14  ;;  %v2490_v14 = vpack.c.bf16 %v1870_v1, %v1860_v63  ;;  %v2446_v15 = vpack.c.bf16 %v1786_v12, %v1776_v11  ;;  %v2500_v28 = vpack.c.bf16 %v1890_v21, %v1880_v16  ;;  %v1991_v11 = vld [vmem:[%s9708_s1 + $0xed8] sm:$0xff] }
 0x2eb   :  { %3177 = vmatprep.subr.bf16.mxu0 %v5353_v0  ;;  %v2366_v46 = vpack.c.bf16 %v1626_v47, %v1616_v20  ;;  %v1831_v20 = vld [vmem:[%s9708_s1 + $0x9d8] sm:$0xff]  ;;  %v1360_v47 = vpop.f32.mrb[242].mxu0  ;;  %v1856_v1 = vld [vmem:[%s9708_s1 + $0xaa0] sm:$0xff] }
 0x2ec   :  { %v1362_v29 = vpop.f32.mrb[243].mxu0 }
 0x2ed   :  { %2869 = vmatmul.mubr.bf16.gmra.mrb[84].mxu0 %v2366_v46  ;;  %v1727_v46 = vld [vmem:[%s9708_s1 + $0x698] sm:$0xff]  ;;  %v1921_v29 = vld [vmem:[%s9708_s1 + $0xca8] sm:$0xff] }
 0x2ee   :  { %3178 = vmatpush1.bf16.msra.mxu0 %v6271_v33  ;;  %v1751_v33 = vld [vmem:[%s9708_s1 + $0x758] sm:$0xff]  ;;  %2876 = vmatprep.mubr.bf16.mxu0 %v2377_v37  ;;  %v2471_v37 = vpack.c.bf16 %v1831_v20, %v1821_v27  ;;  %v1806_v27 = vld [vmem:[%s9708_s1 + $0x910] sm:$0xff] }
 0x2ef   :  { %3179 = vmatprep.subr.bf16.mxu0 %v5353_v0  ;;  %v2431_v17 = vpack.c.bf16 %v1751_v33, %v1741_v32  ;;  %v1716_v32 = vld [vmem:[%s9708_s1 + $0x640] sm:$0xff]  ;;  %v1726_v33 = vld [vmem:[%s9708_s1 + $0x690] sm:$0xff]  ;;  %v2456_v20 = vpack.c.bf16 %v1806_v27, %v1796_v26 }
 0x2f0   :  { %3607 = vmatmul.mubr.bf16.gmra.mrb[116].mxu1 %v2410_v59  ;;  %v1717_v59 = vld [vmem:[%s9708_s1 + $0x648] sm:$0xff]  ;;  %v2416_v36 = vpack.c.bf16 %v1726_v33, %v1716_v32  ;;  %v1365_v62 = vpop.f32.mrb[244].mxu0  ;;  %v1931_v32 = vld [vmem:[%s9708_s1 + $0xcf8] sm:$0xff]  ;;  %v1980_v26 = vld [vmem:[%s9708_s1 + $0xe80] sm:$0xff] }
 0x2f1   :  { %3614 = vmatprep.mubr.bf16.mxu1 %v2421_v60  ;;  %v2776_v60 = vpack.c.bf16 %v1360_v47, %v1357_v23  ;;  %v2417_v30 = vpack.c.bf16 %v1727_v46, %v1717_v59  ;;  %v1807_v23 = vld [vmem:[%s9708_s1 + $0x918] sm:$0xff]  ;;  %v1900_v46 = vld [vmem:[%s9708_s1 + $0xc00] sm:$0xff]  ;;  %v1990_v27 = vld [vmem:[%s9708_s1 + $0xed0] sm:$0xff] }
 0x2f2   :  { %3180 = vmatpush1.bf16.msra.mxu0 %v6300_v51  ;;  %v1646_v51 = vld [vmem:[%s9708_s1 + $0x410] sm:$0xff] }
 0x2f3   :  { %v2376_v8 = vpack.c.bf16 %v1646_v51, %v1636_v58  ;;  %3880 = vmatpush1.bf16.msra.mxu1 %v2776_v60  ;;  %v1820_v58 = vld [vmem:[%s9708_s1 + $0x980] sm:$0xff]  ;;  %v1830_v51 = vld [vmem:[%s9708_s1 + $0x9d0] sm:$0xff] }
 0x2f4   :  { %3881 = vmatprep.subr.bf16.mxu1 %v5353_v0  ;;  %v2470_v42 = vpack.c.bf16 %v1830_v51, %v1820_v58  ;;  %v1910_v60 = vld [vmem:[%s9708_s1 + $0xc50] sm:$0xff] }
 0x2f5   :  { %2877 = vmatmul.mubr.bf16.gmra.mrb[88].mxu0 %v2376_v8  ;;  %v1851_v8 = vld [vmem:[%s9708_s1 + $0xa78] sm:$0xff] }
 0x2f6   :  { %2884 = vmatprep.mubr.bf16.mxu0 %v2387_v45 }
 0x2f8   :  { %3615 = vmatmul.mubr.bf16.gmra.mrb[120].mxu1 %v2420_v38  ;;  %v1841_v38 = vld [vmem:[%s9708_s1 + $0xa28] sm:$0xff] }
 0x2f9   :  { %3622 = vmatprep.mubr.bf16.mxu1 %v2431_v17  ;;  %v1737_v17 = vld [vmem:[%s9708_s1 + $0x6e8] sm:$0xff]  ;;  %v2481_v45 = vpack.c.bf16 %v1851_v8, %v1841_v38  ;;  %v1816_v38 = vld [vmem:[%s9708_s1 + $0x960] sm:$0xff]  ;;  %v1826_v8 = vld [vmem:[%s9708_s1 + $0x9b0] sm:$0xff] }
 0x2fa   :  { %v2427_v7 = vpack.c.bf16 %v1747_v18, %v1737_v17  ;;  %v2510_v17 = vpack.c.bf16 %v1910_v60, %v1900_v46  ;;  %v2466_v18 = vpack.c.bf16 %v1826_v8, %v1816_v38  ;;  %v1896_v60 = vld [vmem:[%s9708_s1 + $0xbe0] sm:$0xff]  ;;  %v2031_v38 = vld [vmem:[%s9708_s1 + $0x1018] sm:$0xff] }
 0x2fd   :  { %2885 = vmatmul.mubr.bf16.gmra.mrb[92].mxu0 %v2386_v19  ;;  %v1871_v19 = vld [vmem:[%s9708_s1 + $0xb18] sm:$0xff] }
 0x2fe   :  { %2892 = vmatprep.mubr.bf16.mxu0 %v2397_v3  ;;  %v1367_v3 = vpop.f32.mrb[245].mxu0 }
 0x2ff   :  { %v1368_v43 = vpop.f32.mrb[246].mxu0  ;;  %v2530_v3 = vpack.c.bf16 %v1950_v55, %v1940_v54  ;;  %v1947_v54 = vld [vmem:[%s9708_s1 + $0xd78] sm:$0xff] }
 0x300   :  { %3623 = vmatmul.mubr.bf16.gmra.mrb[124].mxu1 %v2430_v41  ;;  %v1861_v41 = vld [vmem:[%s9708_s1 + $0xac8] sm:$0xff]  ;;  %v1370_v10 = vpop.f32.mrb[247].mxu0 }
 0x301   :  { %3630 = vmatprep.mubr.bf16.mxu1 %v2441_v50  ;;  %v1757_v50 = vld [vmem:[%s9708_s1 + $0x788] sm:$0xff]  ;;  %v2491_v61 = vpack.c.bf16 %v1871_v19, %v1861_v41  ;;  %v1373_v59 = vpop.f32.mrb[248].mxu0  ;;  %v1836_v41 = vld [vmem:[%s9708_s1 + $0xa00] sm:$0xff]  ;;  %v1846_v19 = vld [vmem:[%s9708_s1 + $0xa50] sm:$0xff] }
 0x302   :  { %v2437_v53 = vpack.c.bf16 %v1767_v52, %v1757_v50  ;;  %v2520_v50 = vpack.c.bf16 %v1930_v40, %v1920_v39  ;;  %v2476_v52 = vpack.c.bf16 %v1846_v19, %v1836_v41  ;;  %v1981_v10 = vld [vmem:[%s9708_s1 + $0xe88] sm:$0xff]  ;;  %v2020_v41 = vld [vmem:[%s9708_s1 + $0xfc0] sm:$0xff]  ;;  %v2030_v19 = vld [vmem:[%s9708_s1 + $0x1010] sm:$0xff] }
 0x305   :  { %2893 = vmatmul.mubr.bf16.gmra.mrb[96].mxu0 %v2396_v13  ;;  %v1787_v13 = vld [vmem:[%s9708_s1 + $0x878] sm:$0xff] }
 0x306   :  { %2900 = vmatprep.mubr.bf16.mxu0 %v2407_v24  ;;  %v2501_v24 = vpack.c.bf16 %v1891_v4, %v1881_v2  ;;  %v1866_v2 = vld [vmem:[%s9708_s1 + $0xaf0] sm:$0xff] }
 0x307   :  { %v2486_v4 = vpack.c.bf16 %v1866_v2, %v1856_v1  ;;  %v2040_v1 = vld [vmem:[%s9708_s1 + $0x1060] sm:$0xff]  ;;  %v2050_v2 = vld [vmem:[%s9708_s1 + $0x10b0] sm:$0xff] }
 0x308   :  { %3631 = vmatmul.mubr.bf16.gmra.mrb[128].mxu1 %v2440_v5  ;;  %v1777_v5 = vld [vmem:[%s9708_s1 + $0x828] sm:$0xff] }
 0x309   :  { %3638 = vmatprep.mubr.bf16.mxu1 %v2451_v9  ;;  %v2777_v9 = vpack.c.bf16 %v1368_v43, %v1365_v62  ;;  %v2447_v56 = vpack.c.bf16 %v1787_v13, %v1777_v5  ;;  %v1867_v62 = vld [vmem:[%s9708_s1 + $0xaf8] sm:$0xff]  ;;  %v1960_v13 = vld [vmem:[%s9708_s1 + $0xde0] sm:$0xff] }
 0x30b   :  { %3882 = vmatpush1.bf16.msra.mxu1 %v2777_v9  ;;  %v1970_v9 = vld [vmem:[%s9708_s1 + $0xe30] sm:$0xff] }
 0x30c   :  { %3883 = vmatprep.subr.bf16.mxu1 %v5353_v0 }
 0x30d   :  { %2901 = vmatmul.mubr.bf16.gmra.mrb[100].mxu0 %v2406_v6  ;;  %v1911_v6 = vld [vmem:[%s9708_s1 + $0xc58] sm:$0xff] }
 0x30e   :  { %2908 = vmatprep.mubr.bf16.mxu0 %v2417_v30  ;;  %v1375_v30 = vpop.f32.mrb[249].mxu0 }
 0x30f   :  { %v1376_v33 = vpop.f32.mrb[250].mxu0  ;;  %v2550_v30 = vpack.c.bf16 %v1990_v27, %v1980_v26 }
 0x310   :  { %3639 = vmatmul.mubr.bf16.gmra.mrb[132].mxu1 %v2450_v22  ;;  %v1901_v22 = vld [vmem:[%s9708_s1 + $0xc08] sm:$0xff]  ;;  %v1378_v58 = vpop.f32.mrb[251].mxu0 }
 0x311   :  { %3646 = vmatprep.mubr.bf16.mxu1 %v2461_v35  ;;  %v1797_v35 = vld [vmem:[%s9708_s1 + $0x8c8] sm:$0xff]  ;;  %v2511_v47 = vpack.c.bf16 %v1911_v6, %v1901_v22  ;;  %v1381_v5 = vpop.f32.mrb[252].mxu0  ;;  %v1876_v22 = vld [vmem:[%s9708_s1 + $0xb40] sm:$0xff]  ;;  %v1886_v6 = vld [vmem:[%s9708_s1 + $0xb90] sm:$0xff] }
 0x312   :  { %v2457_v25 = vpack.c.bf16 %v1807_v23, %v1797_v35  ;;  %v2540_v35 = vpack.c.bf16 %v1970_v9, %v1960_v13  ;;  %v2496_v23 = vpack.c.bf16 %v1886_v6, %v1876_v22  ;;  %v2021_v58 = vld [vmem:[%s9708_s1 + $0xfc8] sm:$0xff]  ;;  %v1956_v9 = vld [vmem:[%s9708_s1 + $0xdc0] sm:$0xff]  ;;  %v2091_v22 = vld [vmem:[%s9708_s1 + $0x11f8] sm:$0xff] }
 0x315   :  { %2909 = vmatmul.mubr.bf16.gmra.mrb[104].mxu0 %v2416_v36  ;;  %v1827_v36 = vld [vmem:[%s9708_s1 + $0x9b8] sm:$0xff] }
 0x316   :  { %2916 = vmatprep.mubr.bf16.mxu0 %v2427_v7  ;;  %v2521_v7 = vpack.c.bf16 %v1931_v32, %v1921_v29  ;;  %v1906_v29 = vld [vmem:[%s9708_s1 + $0xc30] sm:$0xff] }
 0x317   :  { %v2506_v32 = vpack.c.bf16 %v1906_v29, %v1896_v60  ;;  %v2080_v60 = vld [vmem:[%s9708_s1 + $0x11a0] sm:$0xff]  ;;  %v2090_v29 = vld [vmem:[%s9708_s1 + $0x11f0] sm:$0xff] }
 0x318   :  { %3647 = vmatmul.mubr.bf16.gmra.mrb[136].mxu1 %v2460_v34  ;;  %v1817_v34 = vld [vmem:[%s9708_s1 + $0x968] sm:$0xff] }
 0x319   :  { %3654 = vmatprep.mubr.bf16.mxu1 %v2471_v37  ;;  %v2778_v37 = vpack.c.bf16 %v1376_v33, %v1373_v59  ;;  %v2467_v51 = vpack.c.bf16 %v1827_v36, %v1817_v34  ;;  %v1907_v59 = vld [vmem:[%s9708_s1 + $0xc38] sm:$0xff]  ;;  %v2000_v36 = vld [vmem:[%s9708_s1 + $0xf20] sm:$0xff] }
 0x31b   :  { %3884 = vmatpush1.bf16.msra.mxu1 %v2778_v37  ;;  %v2010_v37 = vld [vmem:[%s9708_s1 + $0xf70] sm:$0xff] }
 0x31c   :  { %3885 = vmatprep.subr.bf16.mxu1 %v5353_v0 }
 0x31d   :  { %2917 = vmatmul.mubr.bf16.gmra.mrb[108].mxu0 %v2426_v44  ;;  %v1951_v44 = vld [vmem:[%s9708_s1 + $0xd98] sm:$0xff] }
 0x31e   :  { %2924 = vmatprep.mubr.bf16.mxu0 %v2437_v53 }
 0x320   :  { %3655 = vmatmul.mubr.bf16.gmra.mrb[140].mxu1 %v2470_v42  ;;  %v1941_v42 = vld [vmem:[%s9708_s1 + $0xd48] sm:$0xff] }
 0x321   :  { %3662 = vmatprep.mubr.bf16.mxu1 %v2481_v45  ;;  %v1837_v45 = vld [vmem:[%s9708_s1 + $0xa08] sm:$0xff]  ;;  %v2531_v53 = vpack.c.bf16 %v1951_v44, %v1941_v42  ;;  %v1916_v42 = vld [vmem:[%s9708_s1 + $0xc80] sm:$0xff]  ;;  %v1926_v44 = vld [vmem:[%s9708_s1 + $0xcd0] sm:$0xff] }
 0x322   :  { %v2477_v49 = vpack.c.bf16 %v1847_v48, %v1837_v45  ;;  %v2560_v45 = vpack.c.bf16 %v2010_v37, %v2000_v36  ;;  %v2516_v48 = vpack.c.bf16 %v1926_v44, %v1916_v42  ;;  %v2007_v36 = vld [vmem:[%s9708_s1 + $0xf58] sm:$0xff]  ;;  %v2110_v42 = vld [vmem:[%s9708_s1 + $0x1290] sm:$0xff]  ;;  %v2121_v44 = vld [vmem:[%s9708_s1 + $0x12e8] sm:$0xff] }
 0x325   :  { %2925 = vmatmul.mubr.bf16.gmra.mrb[112].mxu0 %v2436_v31  ;;  %v1971_v31 = vld [vmem:[%s9708_s1 + $0xe38] sm:$0xff] }
 0x326   :  { %2932 = vmatprep.mubr.bf16.mxu0 %v2447_v56  ;;  %v1383_v56 = vpop.f32.mrb[253].mxu0 }
 0x327   :  { %v1384_v12 = vpop.f32.mrb[254].mxu0  ;;  %v2580_v56 = vpack.c.bf16 %v2050_v2, %v2040_v1  ;;  %v2141_v1 = vld [vmem:[%s9708_s1 + $0x1388] sm:$0xff]  ;;  %v2151_v2 = vld [vmem:[%s9708_s1 + $0x13d8] sm:$0xff] }
 0x328   :  { %3663 = vmatmul.mubr.bf16.gmra.mrb[144].mxu1 %v2480_v57  ;;  %v1961_v57 = vld [vmem:[%s9708_s1 + $0xde8] sm:$0xff]  ;;  %v1386_v16 = vpop.f32.mrb[255].mxu0 }
 0x329   :  { %3670 = vmatprep.mubr.bf16.mxu1 %v2491_v61  ;;  %v1857_v61 = vld [vmem:[%s9708_s1 + $0xaa8] sm:$0xff]  ;;  %v2541_v43 = vpack.c.bf16 %v1971_v31, %v1961_v57  ;;  %v7411_v34 = vpop.f32.mrb[0].mxu0  ;;  %v1936_v57 = vld [vmem:[%s9708_s1 + $0xd20] sm:$0xff]  ;;  %v1946_v31 = vld [vmem:[%s9708_s1 + $0xd70] sm:$0xff] }
 0x32a   :  { %v2487_v63 = vpack.c.bf16 %v1867_v62, %v1857_v61  ;;  %v2570_v61 = vpack.c.bf16 %v2030_v19, %v2020_v41  ;;  %v2526_v62 = vpack.c.bf16 %v1946_v31, %v1936_v57  ;;  %v2081_v16 = vld [vmem:[%s9708_s1 + $0x11a8] sm:$0xff]  ;;  %v2027_v19 = vld [vmem:[%s9708_s1 + $0xff8] sm:$0xff] }
 0x32b   :  { %v2017_v41 = vld [vmem:[%s9708_s1 + $0xfa8] sm:$0xff] }
 0x32d   :  { %2933 = vmatmul.mubr.bf16.gmra.mrb[116].mxu0 %v2446_v15  ;;  %v1887_v15 = vld [vmem:[%s9708_s1 + $0xb98] sm:$0xff] }
 0x32e   :  { %2940 = vmatprep.mubr.bf16.mxu0 %v2457_v25  ;;  %v2551_v25 = vpack.c.bf16 %v1991_v11, %v1981_v10  ;;  %v1966_v10 = vld [vmem:[%s9708_s1 + $0xe10] sm:$0xff] }
 0x32f   :  { %v2536_v11 = vpack.c.bf16 %v1966_v10, %v1956_v9 }
 0x330   :  { %3671 = vmatmul.mubr.bf16.gmra.mrb[148].mxu1 %v2490_v14  ;;  %v1877_v14 = vld [vmem:[%s9708_s1 + $0xb48] sm:$0xff] }
 0x331   :  { %3678 = vmatprep.mubr.bf16.mxu1 %v2501_v24  ;;  %v2779_v24 = vpack.c.bf16 %v1384_v12, %v1381_v5  ;;  %v2497_v21 = vpack.c.bf16 %v1887_v15, %v1877_v14  ;;  %v1967_v5 = vld [vmem:[%s9708_s1 + $0xe18] sm:$0xff]  ;;  %v2060_v15 = vld [vmem:[%s9708_s1 + $0x1100] sm:$0xff] }
 0x333   :  { %3886 = vmatpush1.bf16.msra.mxu1 %v2779_v24  ;;  %v2070_v24 = vld [vmem:[%s9708_s1 + $0x1150] sm:$0xff] }
 0x334   :  { %4208 = vmatprep.subr.bf16.mxu1 %v5353_v0 }
 0x335   :  { %2941 = vmatmul.mubr.bf16.gmra.mrb[120].mxu0 %v2456_v20  ;;  %v2011_v20 = vld [vmem:[%s9708_s1 + $0xf78] sm:$0xff] }
 0x336   :  { %2948 = vmatprep.mubr.bf16.mxu0 %v2467_v51  ;;  %v1391_v51 = vpop.f32.mrb[1].mxu0 }
 0x337   :  { %v7425_v8 = vpop.f32.mrb[2].mxu0  ;;  %v2006_v51 = vld [vmem:[%s9708_s1 + $0xf50] sm:$0xff] }
 0x338   :  { %3679 = vmatmul.mubr.bf16.gmra.mrb[152].mxu1 %v2500_v28  ;;  %v2001_v28 = vld [vmem:[%s9708_s1 + $0xf28] sm:$0xff]  ;;  %v1394_v39 = vpop.f32.mrb[3].mxu0 }
 0x339   :  { %3686 = vmatprep.mubr.bf16.mxu1 %v2511_v47  ;;  %v1897_v47 = vld [vmem:[%s9708_s1 + $0xbe8] sm:$0xff]  ;;  %v2561_v33 = vpack.c.bf16 %v2011_v20, %v2001_v28  ;;  %v7489_v14 = vpop.f32.mrb[4].mxu0  ;;  %v1976_v28 = vld [vmem:[%s9708_s1 + $0xe60] sm:$0xff]  ;;  %v1986_v20 = vld [vmem:[%s9708_s1 + $0xeb0] sm:$0xff] }
 0x33a   :  { %v2507_v46 = vpack.c.bf16 %v1907_v59, %v1897_v47  ;;  %v2590_v47 = vpack.c.bf16 %v2070_v24, %v2060_v15  ;;  %v2546_v59 = vpack.c.bf16 %v1986_v20, %v1976_v28  ;;  %v2161_v15 = vld [vmem:[%s9708_s1 + $0x1428] sm:$0xff]  ;;  %v2171_v24 = vld [vmem:[%s9708_s1 + $0x1478] sm:$0xff] }
 0x33b   :  { %v2641_v28 = vpack.c.bf16 %v2171_v24, %v2161_v15 }
 0x33d   :  { %2949 = vmatmul.mubr.bf16.gmra.mrb[124].mxu0 %v2466_v18  ;;  %v1927_v18 = vld [vmem:[%s9708_s1 + $0xcd8] sm:$0xff] }
 0x33e   :  { %2956 = vmatprep.mubr.bf16.mxu0 %v2477_v49  ;;  %v2571_v49 = vpack.c.bf16 %v2031_v38, %v2021_v58  ;;  %v1996_v58 = vld [vmem:[%s9708_s1 + $0xf00] sm:$0xff]  ;;  %v2600_v38 = vpack.c.bf16 %v2090_v29, %v2080_v60  ;;  %v2191_v29 = vld [vmem:[%s9708_s1 + $0x1518] sm:$0xff] }
 0x340   :  { %3687 = vmatmul.mubr.bf16.gmra.mrb[156].mxu1 %v2510_v17  ;;  %v1917_v17 = vld [vmem:[%s9708_s1 + $0xc88] sm:$0xff] }
 0x341   :  { %3694 = vmatprep.mubr.bf16.mxu1 %v2521_v7  ;;  %v2780_v7 = vpack.c.bf16 %v7425_v8, %v7411_v34  ;;  %v2517_v40 = vpack.c.bf16 %v1927_v18, %v1917_v17  ;;  %v2556_v17 = vpack.c.bf16 %v2006_v51, %v1996_v58  ;;  %v2076_v51 = vld [vmem:[%s9708_s1 + $0x1180] sm:$0xff]  ;;  %v2257_v34 = vld [vmem:[%s9708_s1 + $0x1728] sm:$0xff]  ;;  %v2267_v8 = vld [vmem:[%s9708_s1 + $0x1778] sm:$0xff] }
 0x345   :  { %2957 = vmatmul.mubr.bf16.gmra.mrb[128].mxu0 %v2476_v52  ;;  %v2051_v52 = vld [vmem:[%s9708_s1 + $0x10b8] sm:$0xff] }
 0x346   :  { %2964 = vmatprep.mubr.bf16.mxu0 %v2487_v63 }
 0x348   :  { %3695 = vmatmul.mubr.bf16.gmra.mrb[0].mxu1 %v2520_v50  ;;  %v2041_v50 = vld [vmem:[%s9708_s1 + $0x1068] sm:$0xff] }
 0x349   :  { %3702 = vmatprep.mubr.bf16.mxu1 %v2531_v53  ;;  %v1937_v53 = vld [vmem:[%s9708_s1 + $0xd28] sm:$0xff]  ;;  %v2581_v63 = vpack.c.bf16 %v2051_v52, %v2041_v50 }
 0x34a   :  { %v2527_v55 = vpack.c.bf16 %v1947_v54, %v1937_v53  ;;  %v2567_v53 = vpack.c.bf16 %v2027_v19, %v2017_v41  ;;  %v2016_v54 = vld [vmem:[%s9708_s1 + $0xfa0] sm:$0xff]  ;;  %v2097_v41 = vld [vmem:[%s9708_s1 + $0x1228] sm:$0xff]  ;;  %v2107_v19 = vld [vmem:[%s9708_s1 + $0x1278] sm:$0xff] }
 0x34d   :  { %2965 = vmatmul.mubr.bf16.gmra.mrb[132].mxu0 %v2486_v4  ;;  %v2071_v4 = vld [vmem:[%s9708_s1 + $0x1158] sm:$0xff] }
 0x34e   :  { %2972 = vmatprep.mubr.bf16.mxu0 %v2497_v21  ;;  %v1399_v21 = vpop.f32.mrb[5].mxu0 }
 0x34f   :  { %v7503_v6 = vpop.f32.mrb[6].mxu0  ;;  %v2067_v21 = vld [vmem:[%s9708_s1 + $0x1138] sm:$0xff] }
 0x350   :  { %3703 = vmatmul.mubr.bf16.gmra.mrb[4].mxu1 %v2530_v3  ;;  %v2061_v3 = vld [vmem:[%s9708_s1 + $0x1108] sm:$0xff]  ;;  %v1402_v26 = vpop.f32.mrb[7].mxu0 }
 0x351   :  { %3710 = vmatprep.mubr.bf16.mxu1 %v2541_v43  ;;  %v1957_v43 = vld [vmem:[%s9708_s1 + $0xdc8] sm:$0xff]  ;;  %v2591_v12 = vpack.c.bf16 %v2071_v4, %v2061_v3  ;;  %v7543_v39 = vpop.f32.mrb[8].mxu0  ;;  %v2047_v4 = vld [vmem:[%s9708_s1 + $0x1098] sm:$0xff] }
 0x352   :  { %v2537_v13 = vpack.c.bf16 %v1967_v5, %v1957_v43  ;;  %v2037_v3 = vld [vmem:[%s9708_s1 + $0x1048] sm:$0xff]  ;;  %v2036_v5 = vld [vmem:[%s9708_s1 + $0x1040] sm:$0xff] }
 0x353   :  { %v2577_v43 = vpack.c.bf16 %v2047_v4, %v2037_v3  ;;  %v2231_v3 = vld [vmem:[%s9708_s1 + $0x1658] sm:$0xff] }
 0x355   :  { %2973 = vmatmul.mubr.bf16.gmra.mrb[136].mxu0 %v2496_v23  ;;  %v1987_v23 = vld [vmem:[%s9708_s1 + $0xeb8] sm:$0xff] }
 0x356   :  { %2980 = vmatprep.mubr.bf16.mxu0 %v2507_v46  ;;  %v2601_v46 = vpack.c.bf16 %v2091_v22, %v2081_v16  ;;  %v2057_v16 = vld [vmem:[%s9708_s1 + $0x10e8] sm:$0xff] }
 0x357   :  { %v2587_v22 = vpack.c.bf16 %v2067_v21, %v2057_v16  ;;  %v2220_v16 = vld [vmem:[%s9708_s1 + $0x1600] sm:$0xff]  ;;  %v2230_v21 = vld [vmem:[%s9708_s1 + $0x1650] sm:$0xff] }
 0x358   :  { %3711 = vmatmul.mubr.bf16.gmra.mrb[8].mxu1 %v2540_v35  ;;  %v1977_v35 = vld [vmem:[%s9708_s1 + $0xe68] sm:$0xff] }
 0x359   :  { %3718 = vmatprep.mubr.bf16.mxu1 %v2551_v25  ;;  %v2781_v25 = vpack.c.bf16 %v7503_v6, %v7489_v14  ;;  %v2547_v27 = vpack.c.bf16 %v1987_v23, %v1977_v35  ;;  %v2056_v35 = vld [vmem:[%s9708_s1 + $0x10e0] sm:$0xff]  ;;  %v2066_v23 = vld [vmem:[%s9708_s1 + $0x1130] sm:$0xff]  ;;  %v1583_v14 = vld [vmem:[%s9708_s1 + $0x218] sm:$0xff] }
 0x35d   :  { %2981 = vmatmul.mubr.bf16.gmra.mrb[140].mxu0 %v2506_v32  ;;  %v2111_v32 = vld [vmem:[%s9708_s1 + $0x1298] sm:$0xff] }
 0x35e   :  { %2988 = vmatprep.mubr.bf16.mxu0 %v2517_v40  ;;  %v2100_v40 = vld [vmem:[%s9708_s1 + $0x1240] sm:$0xff] }
 0x35f   :  { %v2610_v57 = vpack.c.bf16 %v2110_v42, %v2100_v40  ;;  %v2180_v42 = vld [vmem:[%s9708_s1 + $0x14c0] sm:$0xff] }
 0x360   :  { %3719 = vmatmul.mubr.bf16.gmra.mrb[12].mxu1 %v2550_v30  ;;  %v2101_v30 = vld [vmem:[%s9708_s1 + $0x1248] sm:$0xff] }
 0x361   :  { %3726 = vmatprep.mubr.bf16.mxu1 %v2561_v33  ;;  %v1997_v33 = vld [vmem:[%s9708_s1 + $0xf08] sm:$0xff]  ;;  %v2611_v18 = vpack.c.bf16 %v2111_v32, %v2101_v30 }
 0x362   :  { %v2557_v37 = vpack.c.bf16 %v2007_v36, %v1997_v33  ;;  %v2077_v32 = vld [vmem:[%s9708_s1 + $0x1188] sm:$0xff]  ;;  %v2087_v33 = vld [vmem:[%s9708_s1 + $0x11d8] sm:$0xff] }
 0x363   :  { %v2597_v58 = vpack.c.bf16 %v2087_v33, %v2077_v32  ;;  %v2250_v32 = vld [vmem:[%s9708_s1 + $0x16f0] sm:$0xff]  ;;  %v2261_v33 = vld [vmem:[%s9708_s1 + $0x1748] sm:$0xff] }
 0x365   :  { %2989 = vmatmul.mubr.bf16.gmra.mrb[144].mxu0 %v2516_v48  ;;  %v2131_v48 = vld [vmem:[%s9708_s1 + $0x1338] sm:$0xff] }
 0x366   :  { %2996 = vmatprep.mubr.bf16.mxu0 %v2527_v55  ;;  %v2026_v55 = vld [vmem:[%s9708_s1 + $0xff0] sm:$0xff] }
 0x367   :  { %v2566_v31 = vpack.c.bf16 %v2026_v55, %v2016_v54  ;;  %v2106_v54 = vld [vmem:[%s9708_s1 + $0x1270] sm:$0xff] }
 0x368   :  { %3727 = vmatmul.mubr.bf16.gmra.mrb[16].mxu1 %v2560_v45  ;;  %v1407_v45 = vpop.f32.mrb[9].mxu0 }
 0x369   :  { %3734 = vmatprep.mubr.bf16.mxu1 %v2571_v49  ;;  %v7557_v49 = vpop.f32.mrb[10].mxu0  ;;  %v2201_v45 = vld [vmem:[%s9708_s1 + $0x1568] sm:$0xff] }
 0x36a   :  { %v2782_v50 = vpack.c.bf16 %v7557_v49, %v7543_v39  ;;  %v1410_v52 = vpop.f32.mrb[11].mxu0 }
 0x36b   :  { %v7621_v20 = vpop.f32.mrb[12].mxu0  ;;  %v2607_v52 = vpack.c.bf16 %v2107_v19, %v2097_v41  ;;  %v2270_v41 = vld [vmem:[%s9708_s1 + $0x1790] sm:$0xff]  ;;  %v2281_v19 = vld [vmem:[%s9708_s1 + $0x17e8] sm:$0xff] }
 0x36c   :  { %v1415_v60 = vpop.f32.mrb[13].mxu0 }
 0x36d   :  { %2997 = vmatmul.mubr.bf16.gmra.mrb[148].mxu0 %v2526_v62  ;;  %v2120_v62 = vld [vmem:[%s9708_s1 + $0x12e0] sm:$0xff]  ;;  %v7635_v30 = vpop.f32.mrb[14].mxu0 }
 0x36e   :  { %3004 = vmatprep.mubr.bf16.mxu0 %v2537_v13  ;;  %v2046_v13 = vld [vmem:[%s9708_s1 + $0x1090] sm:$0xff]  ;;  %v2783_v36 = vpack.c.bf16 %v7635_v30, %v7621_v20  ;;  %v1613_v20 = vld [vmem:[%s9708_s1 + $0x308] sm:$0xff] }
 0x36f   :  { %v2576_v10 = vpack.c.bf16 %v2046_v13, %v2036_v5  ;;  %v2127_v5 = vld [vmem:[%s9708_s1 + $0x1318] sm:$0xff]  ;;  %v2297_v30 = vld [vmem:[%s9708_s1 + $0x1868] sm:$0xff] }
 0x370   :  { %3735 = vmatmul.mubr.bf16.gmra.mrb[20].mxu1 %v2570_v61  ;;  %v2621_v61 = vpack.c.bf16 %v2131_v48, %v2121_v44  ;;  %v2190_v44 = vld [vmem:[%s9708_s1 + $0x1510] sm:$0xff]  ;;  %v2211_v48 = vld [vmem:[%s9708_s1 + $0x15b8] sm:$0xff] }
 0x371   :  { %3742 = vmatprep.mubr.bf16.mxu1 %v2581_v63  ;;  %v2130_v63 = vld [vmem:[%s9708_s1 + $0x1330] sm:$0xff]  ;;  %v2650_v55 = vpack.c.bf16 %v2190_v44, %v2180_v42 }
 0x372   :  { %v2620_v9 = vpack.c.bf16 %v2130_v63, %v2120_v62  ;;  %v2200_v62 = vld [vmem:[%s9708_s1 + $0x1560] sm:$0xff]  ;;  %v2210_v63 = vld [vmem:[%s9708_s1 + $0x15b0] sm:$0xff] }
 0x375   :  { %3005 = vmatmul.mubr.bf16.gmra.mrb[152].mxu0 %v2536_v11  ;;  %v2140_v11 = vld [vmem:[%s9708_s1 + $0x1380] sm:$0xff] }
 0x376   :  { %3012 = vmatprep.mubr.bf16.mxu0 %v2547_v27  ;;  %v2586_v27 = vpack.c.bf16 %v2066_v23, %v2056_v35  ;;  %v2251_v35 = vld [vmem:[%s9708_s1 + $0x16f8] sm:$0xff]  ;;  %v2137_v23 = vld [vmem:[%s9708_s1 + $0x1368] sm:$0xff] }
 0x378   :  { %3743 = vmatmul.mubr.bf16.gmra.mrb[24].mxu1 %v2580_v56  ;;  %v2631_v56 = vpack.c.bf16 %v2151_v2, %v2141_v1  ;;  %v2221_v1 = vld [vmem:[%s9708_s1 + $0x1608] sm:$0xff] }
 0x379   :  { %3750 = vmatprep.mubr.bf16.mxu1 %v2591_v12  ;;  %v2150_v12 = vld [vmem:[%s9708_s1 + $0x13d0] sm:$0xff]  ;;  %v2671_v24 = vpack.c.bf16 %v2231_v3, %v2221_v1  ;;  %v2176_v1 = vld [vmem:[%s9708_s1 + $0x14a0] sm:$0xff] }
 0x37a   :  { %v2630_v26 = vpack.c.bf16 %v2150_v12, %v2140_v11  ;;  %v2126_v11 = vld [vmem:[%s9708_s1 + $0x1310] sm:$0xff]  ;;  %v2660_v12 = vpack.c.bf16 %v2210_v63, %v2200_v62 }
 0x37d   :  { %3013 = vmatmul.mubr.bf16.gmra.mrb[156].mxu0 %v2546_v59  ;;  %v2170_v59 = vld [vmem:[%s9708_s1 + $0x1470] sm:$0xff] }
 0x37e   :  { %3020 = vmatprep.mubr.bf16.mxu0 %v2557_v37  ;;  %v1418_v37 = vpop.f32.mrb[15].mxu0 }
 0x37f   :  { %v2271_v37 = vld [vmem:[%s9708_s1 + $0x1798] sm:$0xff] }
 0x380   :  { %3751 = vmatmul.mubr.bf16.gmra.mrb[28].mxu1 %v2590_v47  ;;  %v2160_v47 = vld [vmem:[%s9708_s1 + $0x1420] sm:$0xff]  ;;  %v2691_v44 = vpack.c.bf16 %v2271_v37, %v2261_v33 }
 0x381   :  { %3758 = vmatprep.mubr.bf16.mxu1 %v2601_v46  ;;  %v2181_v46 = vld [vmem:[%s9708_s1 + $0x14c8] sm:$0xff] }
 0x382   :  { %v2651_v40 = vpack.c.bf16 %v2191_v29, %v2181_v46  ;;  %v2240_v29 = vld [vmem:[%s9708_s1 + $0x16a0] sm:$0xff] }
 0x385   :  { %3021 = vmatmul.mubr.bf16.gmra.mrb[160].mxu0 %v2556_v17  ;;  %v2640_v17 = vpack.c.bf16 %v2170_v59, %v2160_v47  ;;  %v2146_v47 = vld [vmem:[%s9708_s1 + $0x13b0] sm:$0xff]  ;;  %v2670_v59 = vpack.c.bf16 %v2230_v21, %v2220_v16  ;;  %v2196_v16 = vld [vmem:[%s9708_s1 + $0x1540] sm:$0xff] }
 0x386   :  { %3028 = vmatprep.mubr.bf16.mxu0 %v2567_v53  ;;  %v2096_v53 = vld [vmem:[%s9708_s1 + $0x1220] sm:$0xff]  ;;  %v2206_v21 = vld [vmem:[%s9708_s1 + $0x1590] sm:$0xff] }
 0x388   :  { %3759 = vmatmul.mubr.bf16.gmra.mrb[32].mxu1 %v2600_v38  ;;  %v2086_v38 = vld [vmem:[%s9708_s1 + $0x11d0] sm:$0xff] }
 0x389   :  { %3766 = vmatprep.mubr.bf16.mxu1 %v2611_v18  ;;  %v2596_v18 = vpack.c.bf16 %v2086_v38, %v2076_v51  ;;  %v2167_v51 = vld [vmem:[%s9708_s1 + $0x1458] sm:$0xff] }
 0x38d   :  { %3029 = vmatmul.mubr.bf16.gmra.mrb[164].mxu0 %v2566_v31  ;;  %v2661_v31 = vpack.c.bf16 %v2211_v48, %v2201_v45  ;;  %v2260_v48 = vld [vmem:[%s9708_s1 + $0x1740] sm:$0xff] }
 0x38e   :  { %3036 = vmatprep.mubr.bf16.mxu0 %v2577_v43  ;;  %v2117_v43 = vld [vmem:[%s9708_s1 + $0x12c8] sm:$0xff]  ;;  %v2690_v3 = vpack.c.bf16 %v2270_v41, %v2260_v48  ;;  %v1543_v48 = vld [vmem:[%s9708_s1 + $0xd8] sm:$0xff] }
 0x38f   :  { %v1553_v41 = vld [vmem:[%s9708_s1 + $0x128] sm:$0xff] }
 0x390   :  { %3767 = vmatmul.mubr.bf16.gmra.mrb[36].mxu1 %v2610_v57  ;;  %v2606_v57 = vpack.c.bf16 %v2106_v54, %v2096_v53  ;;  %v2291_v53 = vld [vmem:[%s9708_s1 + $0x1838] sm:$0xff] }
 0x391   :  { %3774 = vmatprep.mubr.bf16.mxu1 %v2621_v61  ;;  %v7675_v61 = vpop.f32.mrb[16].mxu0 }
 0x392   :  { %v1423_v2 = vpop.f32.mrb[17].mxu0 }
 0x393   :  { %v7689_v4 = vpop.f32.mrb[18].mxu0  ;;  %v2186_v2 = vld [vmem:[%s9708_s1 + $0x14f0] sm:$0xff] }
 0x394   :  { %v2784_v13 = vpack.c.bf16 %v7689_v4, %v7675_v61  ;;  %v2296_v61 = vld [vmem:[%s9708_s1 + $0x1860] sm:$0xff]  ;;  %v2306_v4 = vld [vmem:[%s9708_s1 + $0x18b0] sm:$0xff] }
 0x395   :  { %3037 = vmatmul.mubr.bf16.gmra.mrb[168].mxu0 %v2576_v10  ;;  %v2617_v10 = vpack.c.bf16 %v2127_v5, %v2117_v43  ;;  %v2646_v43 = vpack.c.bf16 %v2186_v2, %v2176_v1  ;;  %v2701_v5 = vpack.c.bf16 %v2291_v53, %v2281_v19  ;;  %v2237_v19 = vld [vmem:[%s9708_s1 + $0x1688] sm:$0xff]  ;;  %v2333_v1 = vpack.c.bf16 %v1553_v41, %v1543_v48  ;;  %v1542_v2 = vld [vmem:[%s9708_s1 + $0xd0] sm:$0xff] }
 0x396   :  { %3044 = vmatprep.mubr.bf16.mxu0 %v2587_v22  ;;  %v2241_v22 = vld [vmem:[%s9708_s1 + $0x16a8] sm:$0xff] }
 0x397   :  { %v2681_v60 = vpack.c.bf16 %v2251_v35, %v2241_v22  ;;  %v2656_v35 = vpack.c.bf16 %v2206_v21, %v2196_v16  ;;  %v1572_v16 = vld [vmem:[%s9708_s1 + $0x1c0] sm:$0xff] }
 0x398   :  { %3775 = vmatmul.mubr.bf16.gmra.mrb[40].mxu1 %v2620_v9  ;;  %v1426_v9 = vpop.f32.mrb[19].mxu0 }
 0x399   :  { %3782 = vmatprep.mubr.bf16.mxu1 %v2631_v56  ;;  %v2116_v56 = vld [vmem:[%s9708_s1 + $0x12c0] sm:$0xff]  ;;  %v7753_v45 = vpop.f32.mrb[20].mxu0 }
 0x39a   :  { %v2616_v15 = vpack.c.bf16 %v2126_v11, %v2116_v56  ;;  %v2280_v9 = vld [vmem:[%s9708_s1 + $0x17e0] sm:$0xff]  ;;  %v2301_v56 = vld [vmem:[%s9708_s1 + $0x1888] sm:$0xff]  ;;  %v2311_v11 = vld [vmem:[%s9708_s1 + $0x18d8] sm:$0xff] }
 0x39d   :  { %3045 = vmatmul.mubr.bf16.gmra.mrb[172].mxu0 %v2586_v27 }
 0x39e   :  { %3052 = vmatprep.mubr.bf16.mxu0 %v2597_v58  ;;  %v2157_v58 = vld [vmem:[%s9708_s1 + $0x1408] sm:$0xff] }
 0x39f   :  { %v2637_v38 = vpack.c.bf16 %v2167_v51, %v2157_v58  ;;  %v2216_v51 = vld [vmem:[%s9708_s1 + $0x15e0] sm:$0xff] }
 0x3a0   :  { %3783 = vmatmul.mubr.bf16.gmra.mrb[44].mxu1 %v2630_v26  ;;  %v2147_v26 = vld [vmem:[%s9708_s1 + $0x13b8] sm:$0xff] }
 0x3a1   :  { %3790 = vmatprep.mubr.bf16.mxu1 %v2641_v28  ;;  %v2627_v27 = vpack.c.bf16 %v2147_v26, %v2137_v23  ;;  %v2136_v28 = vld [vmem:[%s9708_s1 + $0x1360] sm:$0xff]  ;;  %v2711_v23 = vpack.c.bf16 %v2311_v11, %v2301_v56 }
 0x3a2   :  { %v2626_v46 = vpack.c.bf16 %v2146_v47, %v2136_v28  ;;  %v2310_v28 = vld [vmem:[%s9708_s1 + $0x18d0] sm:$0xff]  ;;  %v1523_v47 = vld [vmem:[%s9708_s1 + $0x38] sm:$0xff] }
 0x3a5   :  { %3053 = vmatmul.mubr.bf16.gmra.mrb[176].mxu0 %v2596_v18  ;;  %v2166_v18 = vld [vmem:[%s9708_s1 + $0x1450] sm:$0xff] }
 0x3a6   :  { %3060 = vmatprep.mubr.bf16.mxu0 %v2607_v52  ;;  %v1431_v52 = vpop.f32.mrb[21].mxu0 }
 0x3a7   :  { %v7767_v54 = vpop.f32.mrb[22].mxu0  ;;  %v2247_v52 = vld [vmem:[%s9708_s1 + $0x16d8] sm:$0xff] }
 0x3a8   :  { %3791 = vmatmul.mubr.bf16.gmra.mrb[48].mxu1 %v2640_v17  ;;  %v2156_v17 = vld [vmem:[%s9708_s1 + $0x1400] sm:$0xff]  ;;  %v1434_v62 = vpop.f32.mrb[23].mxu0  ;;  %v2677_v53 = vpack.c.bf16 %v2247_v52, %v2237_v19 }
 0x3a9   :  { %3798 = vmatprep.mubr.bf16.mxu1 %v2651_v40  ;;  %v2680_v40 = vpack.c.bf16 %v2250_v32, %v2240_v29  ;;  %v2636_v42 = vpack.c.bf16 %v2166_v18, %v2156_v17  ;;  %v7807_v26 = vpop.f32.mrb[24].mxu0  ;;  %v2217_v29 = vld [vmem:[%s9708_s1 + $0x15e8] sm:$0xff]  ;;  %v2227_v32 = vld [vmem:[%s9708_s1 + $0x1638] sm:$0xff] }
 0x3aa   :  { %v2667_v58 = vpack.c.bf16 %v2227_v32, %v2217_v29  ;;  %v1592_v29 = vld [vmem:[%s9708_s1 + $0x260] sm:$0xff]  ;;  %v1603_v32 = vld [vmem:[%s9708_s1 + $0x2b8] sm:$0xff] }
 0x3ad   :  { %3061 = vmatmul.mubr.bf16.gmra.mrb[180].mxu0 %v2606_v57  ;;  %v2187_v57 = vld [vmem:[%s9708_s1 + $0x14f8] sm:$0xff] }
 0x3ae   :  { %3068 = vmatprep.mubr.bf16.mxu0 %v2617_v10  ;;  %v2290_v10 = vld [vmem:[%s9708_s1 + $0x1830] sm:$0xff] }
 0x3af   :  { %v2700_v22 = vpack.c.bf16 %v2290_v10, %v2280_v9  ;;  %v2256_v9 = vld [vmem:[%s9708_s1 + $0x1720] sm:$0xff]  ;;  %v2266_v10 = vld [vmem:[%s9708_s1 + $0x1770] sm:$0xff] }
 0x3b0   :  { %3799 = vmatmul.mubr.bf16.gmra.mrb[52].mxu1 %v2650_v55  ;;  %v2177_v55 = vld [vmem:[%s9708_s1 + $0x14a8] sm:$0xff]  ;;  %v2686_v11 = vpack.c.bf16 %v2266_v10, %v2256_v9  ;;  %v1642_v9 = vld [vmem:[%s9708_s1 + $0x3f0] sm:$0xff]  ;;  %v1652_v10 = vld [vmem:[%s9708_s1 + $0x440] sm:$0xff] }
 0x3b1   :  { %3806 = vmatprep.mubr.bf16.mxu1 %v2661_v31  ;;  %v2785_v31 = vpack.c.bf16 %v7767_v54, %v7753_v45  ;;  %v2647_v63 = vpack.c.bf16 %v2187_v57, %v2177_v55  ;;  %v2236_v55 = vld [vmem:[%s9708_s1 + $0x1680] sm:$0xff]  ;;  %v2246_v57 = vld [vmem:[%s9708_s1 + $0x16d0] sm:$0xff]  ;;  %v1623_v45 = vld [vmem:[%s9708_s1 + $0x358] sm:$0xff] }
 0x3b5   :  { %3069 = vmatmul.mubr.bf16.gmra.mrb[184].mxu0 %v2616_v15  ;;  %v2207_v15 = vld [vmem:[%s9708_s1 + $0x1598] sm:$0xff] }
 0x3b6   :  { %3076 = vmatprep.mubr.bf16.mxu0 %v2627_v27  ;;  %v2300_v27 = vld [vmem:[%s9708_s1 + $0x1880] sm:$0xff] }
 0x3b7   :  { %v2710_v17 = vpack.c.bf16 %v2310_v28, %v2300_v27  ;;  %v2286_v27 = vld [vmem:[%s9708_s1 + $0x1810] sm:$0xff] }
 0x3b8   :  { %3807 = vmatmul.mubr.bf16.gmra.mrb[56].mxu1 %v2660_v12  ;;  %v2197_v12 = vld [vmem:[%s9708_s1 + $0x1548] sm:$0xff] }
 0x3b9   :  { %3814 = vmatprep.mubr.bf16.mxu1 %v2671_v24  ;;  %v2657_v24 = vpack.c.bf16 %v2207_v15, %v2197_v12 }
 0x3bd   :  { %3077 = vmatmul.mubr.bf16.gmra.mrb[188].mxu0 %v2626_v46  ;;  %v1533_v46 = vld [vmem:[%s9708_s1 + $0x88] sm:$0xff] }
 0x3be   :  { %3084 = vmatprep.mubr.bf16.mxu0 %v2637_v38  ;;  %v2226_v38 = vld [vmem:[%s9708_s1 + $0x1630] sm:$0xff] }
 0x3bf   :  { %v2666_v18 = vpack.c.bf16 %v2226_v38, %v2216_v51  ;;  %v2363_v51 = vpack.c.bf16 %v1613_v20, %v1603_v32  ;;  %v1578_v32 = vld [vmem:[%s9708_s1 + $0x1f0] sm:$0xff]  ;;  %v1588_v20 = vld [vmem:[%s9708_s1 + $0x240] sm:$0xff] }
 0x3c0   :  { %3815 = vmatmul.mubr.bf16.gmra.mrb[60].mxu1 %v2670_v59  ;;  %v1439_v59 = vpop.f32.mrb[25].mxu0 }
 0x3c1   :  { %3822 = vmatprep.mubr.bf16.mxu1 %v2681_v60  ;;  %v7821_v60 = vpop.f32.mrb[26].mxu0 }
 0x3c2   :  { %v2786_v33 = vpack.c.bf16 %v7821_v60, %v7807_v26  ;;  %v1442_v37 = vpop.f32.mrb[27].mxu0  ;;  %v1518_v60 = vld [vmem:[%s9708_s1 + $0x10] sm:$0xff] }
 0x3c3   :  { %v7893_v15 = vpop.f32.mrb[28].mxu0 }
 0x3c4   :  { %v1447_v6 = vpop.f32.mrb[29].mxu0 }
 0x3c5   :  { %3085 = vmatmul.mubr.bf16.gmra.mrb[192].mxu0 %v2636_v42  ;;  %v1522_v42 = vld [vmem:[%s9708_s1 + $0x30] sm:$0xff]  ;;  %v1448_v21 = vpop.f32.mrb[30].mxu0  ;;  %v2382_v6 = vpack.c.bf16 %v1652_v10, %v1642_v9  ;;  %v1649_v9 = vld [vmem:[%s9708_s1 + $0x428] sm:$0xff] }
 0x3c6   :  { %3092 = vmatprep.mubr.bf16.mxu0 %v2647_v63  ;;  %v2676_v63 = vpack.c.bf16 %v2246_v57, %v2236_v55  ;;  %v1450_v39 = vpop.f32.mrb[31].mxu0  ;;  %v1622_v55 = vld [vmem:[%s9708_s1 + $0x350] sm:$0xff]  ;;  %v1632_v57 = vld [vmem:[%s9708_s1 + $0x3a0] sm:$0xff] }
 0x3c7   :  { %v1453_v38 = vpop.f32.mrb[32].mxu0  ;;  %v1683_v39 = vld [vmem:[%s9708_s1 + $0x538] sm:$0xff] }
 0x3c8   :  { %3823 = vmatmul.mubr.bf16.gmra.mrb[64].mxu1 %v2680_v40  ;;  %v2323_v40 = vpack.c.bf16 %v1533_v46, %v1523_v47  ;;  %v1582_v46 = vld [vmem:[%s9708_s1 + $0x210] sm:$0xff]  ;;  %v1455_v54 = vpop.f32.mrb[33].mxu0 }
 0x3c9   :  { %3830 = vmatprep.mubr.bf16.mxu1 %v2691_v44  ;;  %v1532_v44 = vld [vmem:[%s9708_s1 + $0x80] sm:$0xff] }
 0x3ca   :  { %v2322_v62 = vpack.c.bf16 %v1532_v44, %v1522_v42  ;;  %v1519_v42 = vld [vmem:[%s9708_s1 + $0x18] sm:$0xff]  ;;  %v1529_v44 = vld [vmem:[%s9708_s1 + $0x68] sm:$0xff] }
 0x3cb   :  { %v2319_v26 = vpack.c.bf16 %v1529_v44, %v1519_v42  ;;  %v1702_v44 = vld [vmem:[%s9708_s1 + $0x5d0] sm:$0xff] }
 0x3cd   :  { %3093 = vmatmul.mubr.bf16.gmra.mrb[196].mxu0 %v2646_v43  ;;  %v1563_v43 = vld [vmem:[%s9708_s1 + $0x178] sm:$0xff] }
 0x3ce   :  { %3100 = vmatprep.mubr.bf16.mxu0 %v2657_v24  ;;  %v1562_v24 = vld [vmem:[%s9708_s1 + $0x170] sm:$0xff] }
 0x3cf   :  { %v2342_v28 = vpack.c.bf16 %v1572_v16, %v1562_v24  ;;  %v1558_v16 = vld [vmem:[%s9708_s1 + $0x150] sm:$0xff] }
 0x3d0   :  { %3831 = vmatmul.mubr.bf16.gmra.mrb[68].mxu1 %v2690_v3  ;;  %v1552_v3 = vld [vmem:[%s9708_s1 + $0x120] sm:$0xff] }
 0x3d1   :  { %3838 = vmatprep.mubr.bf16.mxu1 %v2701_v5  ;;  %v1573_v5 = vld [vmem:[%s9708_s1 + $0x1c8] sm:$0xff]  ;;  %v2332_v56 = vpack.c.bf16 %v1552_v3, %v1542_v2 }
 0x3d2   :  { %v2343_v12 = vpack.c.bf16 %v1573_v5, %v1563_v43  ;;  %v1549_v2 = vld [vmem:[%s9708_s1 + $0x108] sm:$0xff]  ;;  %v1538_v43 = vld [vmem:[%s9708_s1 + $0xb0] sm:$0xff]  ;;  %v1548_v5 = vld [vmem:[%s9708_s1 + $0x100] sm:$0xff] }
 0x3d5   :  { %3101 = vmatmul.mubr.bf16.gmra.mrb[200].mxu0 %v2656_v35  ;;  %v2287_v35 = vld [vmem:[%s9708_s1 + $0x1818] sm:$0xff] }
 0x3d6   :  { %3108 = vmatprep.mubr.bf16.mxu0 %v2667_v58  ;;  %v2706_v58 = vpack.c.bf16 %v2306_v4, %v2296_v61  ;;  %v1682_v61 = vld [vmem:[%s9708_s1 + $0x530] sm:$0xff]  ;;  %v1692_v4 = vld [vmem:[%s9708_s1 + $0x580] sm:$0xff] }
 0x3d7   :  { %v2402_v54 = vpack.c.bf16 %v1692_v4, %v1682_v61 }
 0x3d8   :  { %3839 = vmatmul.mubr.bf16.gmra.mrb[72].mxu1 %v2700_v22  ;;  %v2277_v22 = vld [vmem:[%s9708_s1 + $0x17c8] sm:$0xff] }
 0x3d9   :  { %3846 = vmatprep.mubr.bf16.mxu1 %v2711_v23  ;;  %v2787_v23 = vpack.c.bf16 %v1448_v21, %v7893_v15  ;;  %v2697_v49 = vpack.c.bf16 %v2287_v35, %v2277_v22  ;;  %v1569_v15 = vld [vmem:[%s9708_s1 + $0x1a8] sm:$0xff]  ;;  %v1662_v35 = vld [vmem:[%s9708_s1 + $0x490] sm:$0xff] }
 0x3dd   :  { %3109 = vmatmul.mubr.bf16.gmra.mrb[204].mxu0 %v2666_v18  ;;  %v1612_v18 = vld [vmem:[%s9708_s1 + $0x300] sm:$0xff] }
 0x3de   :  { %3116 = vmatprep.mubr.bf16.mxu0 %v2677_v53 }
 0x3e0   :  { %3847 = vmatmul.mubr.bf16.gmra.mrb[76].mxu1 %v2710_v17  ;;  %v1602_v17 = vld [vmem:[%s9708_s1 + $0x2b0] sm:$0xff] }
 0x3e1   :  { %3887 = vmatprep.mubr.bf16.mxu1 %v2323_v40  ;;  %v1456_v40 = vpop.f32.mrb[34].mxu0  ;;  %v2362_v19 = vpack.c.bf16 %v1612_v18, %v1602_v17  ;;  %v1598_v18 = vld [vmem:[%s9708_s1 + $0x290] sm:$0xff] }
 0x3e2   :  { %v2788_v48 = vpack.c.bf16 %v1456_v40, %v1453_v38  ;;  %v1458_v41 = vpop.f32.mrb[35].mxu0  ;;  %v1609_v38 = vld [vmem:[%s9708_s1 + $0x2e8] sm:$0xff] }
 0x3e3   :  { %v1461_v22 = vpop.f32.mrb[36].mxu0  ;;  %v1723_v41 = vld [vmem:[%s9708_s1 + $0x678] sm:$0xff] }
 0x3e5   :  { %3117 = vmatmul.mubr.bf16.gmra.mrb[208].mxu0 %v2676_v63  ;;  %v1653_v63 = vld [vmem:[%s9708_s1 + $0x448] sm:$0xff] }
 0x3e8   :  { %3888 = vmatmul.mubr.bf16.vlgmr.msra.gmra.mrb[80].mxu1 %v2322_v62  ;;  %v1643_v62 = vld [vmem:[%s9708_s1 + $0x3f8] sm:$0xff] }
 0x3e9   :  { %4209 = vmatpush1.bf16.msra.mxu1 %v2780_v7  ;;  %3895 = vmatprep.mubr.bf16.mxu1 %v2333_v1  ;;  %v2687_v7 = vpack.c.bf16 %v2267_v8, %v2257_v34  ;;  %v1539_v1 = vld [vmem:[%s9708_s1 + $0xb8] sm:$0xff]  ;;  %v2372_v34 = vpack.c.bf16 %v1632_v57, %v1622_v55  ;;  %v2328_v8 = vpack.c.bf16 %v1548_v5, %v1538_v43  ;;  %v1722_v43 = vld [vmem:[%s9708_s1 + $0x670] sm:$0xff]  ;;  %v1732_v5 = vld [vmem:[%s9708_s1 + $0x6c0] sm:$0xff] }
 0x3ea   :  { %4210 = vmatprep.subr.bf16.mxu1 %v5353_v0  ;;  %v2329_v3 = vpack.c.bf16 %v1549_v2, %v1539_v1 }
 0x3eb   :  { %3124 = vmatprep.mubr.bf16.mxu0 %v2687_v7  ;;  %v2383_v7 = vpack.c.bf16 %v1653_v63, %v1643_v62  ;;  %v1618_v62 = vld [vmem:[%s9708_s1 + $0x330] sm:$0xff]  ;;  %v1628_v63 = vld [vmem:[%s9708_s1 + $0x380] sm:$0xff] }
 0x3ec   :  { %v2368_v2 = vpack.c.bf16 %v1628_v63, %v1618_v62  ;;  %v1833_v62 = vld [vmem:[%s9708_s1 + $0x9e8] sm:$0xff] }
 0x3ed   :  { %4211 = vmatpush1.bf16.msra.mxu1 %v2781_v25  ;;  %3125 = vmatmul.mubr.bf16.gmra.mrb[212].mxu0 %v2686_v11  ;;  %v1593_v25 = vld [vmem:[%s9708_s1 + $0x268] sm:$0xff] }
 0x3ee   :  { %4212 = vmatprep.subr.bf16.mxu1 %v5353_v0  ;;  %v2353_v59 = vpack.c.bf16 %v1593_v25, %v1583_v14  ;;  %3132 = vmatprep.mubr.bf16.mxu0 %v2697_v49  ;;  %v1673_v11 = vld [vmem:[%s9708_s1 + $0x4e8] sm:$0xff]  ;;  %v1568_v14 = vld [vmem:[%s9708_s1 + $0x1a0] sm:$0xff]  ;;  %v1463_v49 = vpop.f32.mrb[37].mxu0 }
 0x3ef   :  { %v2338_v25 = vpack.c.bf16 %v1568_v14, %v1558_v16  ;;  %v1742_v16 = vld [vmem:[%s9708_s1 + $0x710] sm:$0xff]  ;;  %v1752_v14 = vld [vmem:[%s9708_s1 + $0x760] sm:$0xff] }
 0x3f0   :  { %3896 = vmatmul.mubr.bf16.gmra.mrb[84].mxu1 %v2332_v56  ;;  %v1663_v56 = vld [vmem:[%s9708_s1 + $0x498] sm:$0xff]  ;;  %v2432_v49 = vpack.c.bf16 %v1752_v14, %v1742_v16  ;;  %v1749_v16 = vld [vmem:[%s9708_s1 + $0x748] sm:$0xff] }
 0x3f1   :  { %3903 = vmatprep.mubr.bf16.mxu1 %v2343_v12  ;;  %4213 = vmatpush1.bf16.msra.mxu1 %v2782_v50  ;;  %v2276_v50 = vld [vmem:[%s9708_s1 + $0x17c0] sm:$0xff]  ;;  %v1559_v12 = vld [vmem:[%s9708_s1 + $0x158] sm:$0xff]  ;;  %v2393_v21 = vpack.c.bf16 %v1673_v11, %v1663_v56  ;;  %v1638_v56 = vld [vmem:[%s9708_s1 + $0x3d0] sm:$0xff] }
 0x3f2   :  { %4214 = vmatprep.subr.bf16.mxu1 %v5353_v0  ;;  %v2696_v47 = vpack.c.bf16 %v2286_v27, %v2276_v50  ;;  %v2339_v24 = vpack.c.bf16 %v1569_v15, %v1559_v12  ;;  %v1693_v50 = vld [vmem:[%s9708_s1 + $0x588] sm:$0xff]  ;;  %v1464_v27 = vpop.f32.mrb[38].mxu0  ;;  %v1648_v11 = vld [vmem:[%s9708_s1 + $0x420] sm:$0xff]  ;;  %v2422_v12 = vpack.c.bf16 %v1732_v5, %v1722_v43 }
 0x3f3   :  { %v2378_v15 = vpack.c.bf16 %v1648_v11, %v1638_v56  ;;  %v1822_v56 = vld [vmem:[%s9708_s1 + $0x990] sm:$0xff]  ;;  %v1832_v11 = vld [vmem:[%s9708_s1 + $0x9e0] sm:$0xff] }
 0x3f5   :  { %4215 = vmatpush1.bf16.msra.mxu1 %v2783_v36  ;;  %3133 = vmatmul.mubr.bf16.gmra.mrb[216].mxu0 %v2696_v47  ;;  %v2307_v36 = vld [vmem:[%s9708_s1 + $0x18b8] sm:$0xff]  ;;  %v1589_v47 = vld [vmem:[%s9708_s1 + $0x248] sm:$0xff] }
 0x3f6   :  { %4216 = vmatprep.subr.bf16.mxu1 %v5353_v0  ;;  %v2707_v37 = vpack.c.bf16 %v2307_v36, %v2297_v30  ;;  %v2348_v36 = vpack.c.bf16 %v1588_v20, %v1578_v32  ;;  %v1793_v32 = vld [vmem:[%s9708_s1 + $0x8a8] sm:$0xff] }
 0x3f8   :  { %3904 = vmatmul.mubr.bf16.gmra.mrb[88].mxu1 %v2342_v28  ;;  %3140 = vmatprep.mubr.bf16.mxu0 %v2707_v37  ;;  %v1579_v28 = vld [vmem:[%s9708_s1 + $0x1f8] sm:$0xff]  ;;  %v2403_v37 = vpack.c.bf16 %v1693_v50, %v1683_v39  ;;  %v1668_v39 = vld [vmem:[%s9708_s1 + $0x4c0] sm:$0xff] }
 0x3f9   :  { %3911 = vmatprep.mubr.bf16.mxu1 %v2353_v59  ;;  %4217 = vmatpush1.bf16.msra.mxu1 %v2784_v13  ;;  %v2352_v13 = vpack.c.bf16 %v1592_v29, %v1582_v46  ;;  %v2789_v59 = vpack.c.bf16 %v1464_v27, %v1461_v22  ;;  %v1466_v46 = vpop.f32.mrb[39].mxu0  ;;  %v2349_v29 = vpack.c.bf16 %v1589_v47, %v1579_v28  ;;  %v1669_v22 = vld [vmem:[%s9708_s1 + $0x4c8] sm:$0xff]  ;;  %v1762_v47 = vld [vmem:[%s9708_s1 + $0x7b0] sm:$0xff] }
 0x3fa   :  { %4218 = vmatprep.subr.bf16.mxu1 %v5353_v0  ;;  %v1469_v42 = vpop.f32.mrb[40].mxu0  ;;  %v1783_v46 = vld [vmem:[%s9708_s1 + $0x858] sm:$0xff] }
 0x3fd   :  { %4219 = vmatpush1.bf16.msra.mxu1 %v2785_v31  ;;  %3141 = vmatmul.mubr.bf16.gmra.mrb[220].mxu0 %v2706_v58  ;;  %v1633_v31 = vld [vmem:[%s9708_s1 + $0x3a8] sm:$0xff] }
 0x3fe   :  { %4220 = vmatprep.subr.bf16.mxu1 %v5353_v0  ;;  %v2373_v53 = vpack.c.bf16 %v1633_v31, %v1623_v45  ;;  %3181 = vmatprep.mubr.bf16.mxu0 %v2319_v26  ;;  %v1713_v58 = vld [vmem:[%s9708_s1 + $0x628] sm:$0xff]  ;;  %v1608_v45 = vld [vmem:[%s9708_s1 + $0x2e0] sm:$0xff]  ;;  %v1471_v26 = vpop.f32.mrb[41].mxu0 }
 0x3ff   :  { %v2358_v31 = vpack.c.bf16 %v1608_v45, %v1598_v18  ;;  %v1782_v18 = vld [vmem:[%s9708_s1 + $0x850] sm:$0xff]  ;;  %v1792_v45 = vld [vmem:[%s9708_s1 + $0x8a0] sm:$0xff] }
 0x400   :  { %3912 = vmatmul.mubr.bf16.gmra.mrb[92].mxu1 %v2352_v13  ;;  %v1703_v13 = vld [vmem:[%s9708_s1 + $0x5d8] sm:$0xff]  ;;  %v2452_v26 = vpack.c.bf16 %v1792_v45, %v1782_v18 }
 0x401   :  { %3919 = vmatprep.mubr.bf16.mxu1 %v2363_v51  ;;  %4221 = vmatpush1.bf16.msra.mxu1 %v2786_v33  ;;  %v1528_v33 = vld [vmem:[%s9708_s1 + $0x60] sm:$0xff]  ;;  %v1599_v51 = vld [vmem:[%s9708_s1 + $0x298] sm:$0xff]  ;;  %v2413_v40 = vpack.c.bf16 %v1713_v58, %v1703_v13  ;;  %v1678_v13 = vld [vmem:[%s9708_s1 + $0x510] sm:$0xff] }
 0x402   :  { %4222 = vmatprep.subr.bf16.mxu1 %v5353_v0  ;;  %v2318_v52 = vpack.c.bf16 %v1528_v33, %v1518_v60  ;;  %v2359_v17 = vpack.c.bf16 %v1609_v38, %v1599_v51  ;;  %v1733_v60 = vld [vmem:[%s9708_s1 + $0x6c8] sm:$0xff]  ;;  %v1472_v33 = vpop.f32.mrb[42].mxu0  ;;  %v1688_v58 = vld [vmem:[%s9708_s1 + $0x560] sm:$0xff] }
 0x403   :  { %v1474_v55 = vpop.f32.mrb[43].mxu0  ;;  %v2398_v38 = vpack.c.bf16 %v1688_v58, %v1678_v13  ;;  %v1893_v13 = vld [vmem:[%s9708_s1 + $0xbc8] sm:$0xff] }
 0x404   :  { %v1477_v28 = vpop.f32.mrb[44].mxu0  ;;  %v1823_v55 = vld [vmem:[%s9708_s1 + $0x998] sm:$0xff] }
 0x405   :  { %4223 = vmatpush1.bf16.msra.mxu1 %v2787_v23  ;;  %3182 = vmatmul.mubr.bf16.vlgmr.msra.gmra.mrb[64].mxu0 %v2318_v52  ;;  %v1672_v23 = vld [vmem:[%s9708_s1 + $0x4e0] sm:$0xff]  ;;  %v1629_v52 = vld [vmem:[%s9708_s1 + $0x388] sm:$0xff] }
 0x406   :  { %4224 = vmatprep.subr.bf16.mxu1 %v5353_v0  ;;  %3189 = vmatprep.mubr.bf16.mxu0 %v2329_v3  ;;  %v2392_v30 = vpack.c.bf16 %v1672_v23, %v1662_v35  ;;  %v2423_v3 = vpack.c.bf16 %v1733_v60, %v1723_v41  ;;  %v1658_v23 = vld [vmem:[%s9708_s1 + $0x470] sm:$0xff]  ;;  %v1708_v41 = vld [vmem:[%s9708_s1 + $0x600] sm:$0xff] }
 0x407   :  { %v2388_v50 = vpack.c.bf16 %v1668_v39, %v1658_v23  ;;  %v1842_v23 = vld [vmem:[%s9708_s1 + $0xa30] sm:$0xff]  ;;  %v1852_v39 = vld [vmem:[%s9708_s1 + $0xa80] sm:$0xff] }
 0x408   :  { %3920 = vmatmul.mubr.bf16.gmra.mrb[96].mxu1 %v2362_v19  ;;  %v1619_v19 = vld [vmem:[%s9708_s1 + $0x338] sm:$0xff] }
 0x409   :  { %3927 = vmatprep.mubr.bf16.mxu1 %v2373_v53  ;;  %4225 = vmatpush1.bf16.msra.mxu1 %v2788_v48  ;;  %v1712_v48 = vld [vmem:[%s9708_s1 + $0x620] sm:$0xff]  ;;  %v2790_v53 = vpack.c.bf16 %v1472_v33, %v1469_v42  ;;  %v2369_v57 = vpack.c.bf16 %v1629_v52, %v1619_v19  ;;  %v1709_v42 = vld [vmem:[%s9708_s1 + $0x608] sm:$0xff]  ;;  %v1802_v52 = vld [vmem:[%s9708_s1 + $0x8f0] sm:$0xff] }
 0x40a   :  { %4226 = vmatprep.subr.bf16.mxu1 %v5353_v0  ;;  %v2412_v1 = vpack.c.bf16 %v1712_v48, %v1702_v44  ;;  %v1698_v48 = vld [vmem:[%s9708_s1 + $0x5b0] sm:$0xff] }
 0x40b   :  { %v2408_v60 = vpack.c.bf16 %v1708_v41, %v1698_v48  ;;  %v1882_v48 = vld [vmem:[%s9708_s1 + $0xb70] sm:$0xff]  ;;  %v1892_v41 = vld [vmem:[%s9708_s1 + $0xbc0] sm:$0xff] }
 0x40d   :  { %3190 = vmatmul.mubr.bf16.gmra.mrb[68].mxu0 %v2328_v8  ;;  %4227 = vmatpush1.bf16.msra.mxu1 %v2789_v59  ;;  %v1753_v8 = vld [vmem:[%s9708_s1 + $0x768] sm:$0xff]  ;;  %v1772_v59 = vld [vmem:[%s9708_s1 + $0x800] sm:$0xff] }
 0x40e   :  { %3197 = vmatprep.mubr.bf16.mxu0 %v2339_v24  ;;  %4228 = vmatprep.subr.bf16.mxu1 %v5353_v0  ;;  %v2442_v51 = vpack.c.bf16 %v1772_v59, %v1762_v47  ;;  %v1758_v59 = vld [vmem:[%s9708_s1 + $0x790] sm:$0xff] }
 0x410   :  { %3928 = vmatmul.mubr.bf16.gmra.mrb[100].mxu1 %v2372_v34  ;;  %v1743_v34 = vld [vmem:[%s9708_s1 + $0x718] sm:$0xff] }
 0x411   :  { %3935 = vmatprep.mubr.bf16.mxu1 %v2383_v7  ;;  %4229 = vmatpush1.bf16.msra.mxu1 %v2790_v53  ;;  %v1639_v7 = vld [vmem:[%s9708_s1 + $0x3d8] sm:$0xff]  ;;  %v2433_v24 = vpack.c.bf16 %v1753_v8, %v1743_v34  ;;  %v1812_v53 = vld [vmem:[%s9708_s1 + $0x940] sm:$0xff]  ;;  %v1718_v34 = vld [vmem:[%s9708_s1 + $0x650] sm:$0xff] }
 0x412   :  { %4230 = vmatprep.subr.bf16.mxu1 %v5353_v0  ;;  %v2379_v10 = vpack.c.bf16 %v1649_v9, %v1639_v7  ;;  %v1728_v8 = vld [vmem:[%s9708_s1 + $0x6a0] sm:$0xff]  ;;  %v2462_v7 = vpack.c.bf16 %v1812_v53, %v1802_v52  ;;  %v1798_v53 = vld [vmem:[%s9708_s1 + $0x8d0] sm:$0xff] }
 0x413   :  { %v2418_v9 = vpack.c.bf16 %v1728_v8, %v1718_v34  ;;  %v1933_v34 = vld [vmem:[%s9708_s1 + $0xd08] sm:$0xff] }
 0x415   :  { %3198 = vmatmul.mubr.bf16.gmra.mrb[72].mxu0 %v2338_v25  ;;  %v1773_v25 = vld [vmem:[%s9708_s1 + $0x808] sm:$0xff] }
 0x416   :  { %3205 = vmatprep.mubr.bf16.mxu0 %v2349_v29  ;;  %v1479_v29 = vpop.f32.mrb[45].mxu0 }
 0x417   :  { %v1480_v20 = vpop.f32.mrb[46].mxu0  ;;  %v2482_v29 = vpack.c.bf16 %v1852_v39, %v1842_v23  ;;  %v1838_v39 = vld [vmem:[%s9708_s1 + $0xa10] sm:$0xff] }
 0x418   :  { %3936 = vmatmul.mubr.bf16.gmra.mrb[104].mxu1 %v2382_v6  ;;  %v1763_v6 = vld [vmem:[%s9708_s1 + $0x7b8] sm:$0xff]  ;;  %v1482_v61 = vpop.f32.mrb[47].mxu0 }
 0x419   :  { %3943 = vmatprep.mubr.bf16.mxu1 %v2393_v21  ;;  %v1659_v21 = vld [vmem:[%s9708_s1 + $0x478] sm:$0xff]  ;;  %v2443_v27 = vpack.c.bf16 %v1773_v25, %v1763_v6  ;;  %v1485_v19 = vpop.f32.mrb[48].mxu0  ;;  %v1738_v6 = vld [vmem:[%s9708_s1 + $0x6f0] sm:$0xff]  ;;  %v1748_v25 = vld [vmem:[%s9708_s1 + $0x740] sm:$0xff] }
 0x41a   :  { %v2389_v35 = vpack.c.bf16 %v1669_v22, %v1659_v21  ;;  %v2472_v21 = vpack.c.bf16 %v1832_v11, %v1822_v56  ;;  %v2428_v22 = vpack.c.bf16 %v1748_v25, %v1738_v6  ;;  %v1883_v61 = vld [vmem:[%s9708_s1 + $0xb78] sm:$0xff]  ;;  %v1922_v6 = vld [vmem:[%s9708_s1 + $0xcb0] sm:$0xff]  ;;  %v1932_v25 = vld [vmem:[%s9708_s1 + $0xd00] sm:$0xff] }
 0x41d   :  { %3206 = vmatmul.mubr.bf16.gmra.mrb[76].mxu0 %v2348_v36  ;;  %v1689_v36 = vld [vmem:[%s9708_s1 + $0x568] sm:$0xff] }
 0x41e   :  { %3213 = vmatprep.mubr.bf16.mxu0 %v2359_v17  ;;  %v2453_v17 = vpack.c.bf16 %v1793_v32, %v1783_v46  ;;  %v1768_v46 = vld [vmem:[%s9708_s1 + $0x7e0] sm:$0xff] }
 0x41f   :  { %v2438_v32 = vpack.c.bf16 %v1768_v46, %v1758_v59 }
 0x420   :  { %3944 = vmatmul.mubr.bf16.gmra.mrb[108].mxu1 %v2392_v30  ;;  %v1679_v30 = vld [vmem:[%s9708_s1 + $0x518] sm:$0xff] }
 0x421   :  { %3951 = vmatprep.mubr.bf16.mxu1 %v2403_v37  ;;  %v2791_v37 = vpack.c.bf16 %v1480_v20, %v1477_v28  ;;  %v2399_v4 = vpack.c.bf16 %v1689_v36, %v1679_v30  ;;  %v1769_v28 = vld [vmem:[%s9708_s1 + $0x7e8] sm:$0xff]  ;;  %v1862_v36 = vld [vmem:[%s9708_s1 + $0xad0] sm:$0xff] }
 0x423   :  { %4231 = vmatpush1.bf16.msra.mxu1 %v2791_v37  ;;  %v1872_v37 = vld [vmem:[%s9708_s1 + $0xb20] sm:$0xff] }
 0x424   :  { %4232 = vmatprep.subr.bf16.mxu1 %v5353_v0 }
 0x425   :  { %3214 = vmatmul.mubr.bf16.gmra.mrb[80].mxu0 %v2358_v31  ;;  %v1813_v31 = vld [vmem:[%s9708_s1 + $0x948] sm:$0xff] }
 0x426   :  { %3221 = vmatprep.mubr.bf16.mxu0 %v2369_v57  ;;  %v1487_v57 = vpop.f32.mrb[49].mxu0 }
 0x427   :  { %v1488_v63 = vpop.f32.mrb[50].mxu0  ;;  %v2502_v57 = vpack.c.bf16 %v1892_v41, %v1882_v48 }
 0x428   :  { %3952 = vmatmul.mubr.bf16.gmra.mrb[112].mxu1 %v2402_v54  ;;  %v1803_v54 = vld [vmem:[%s9708_s1 + $0x8f8] sm:$0xff]  ;;  %v1490_v43 = vpop.f32.mrb[51].mxu0 }
 0x429   :  { %3959 = vmatprep.mubr.bf16.mxu1 %v2413_v40  ;;  %v1699_v40 = vld [vmem:[%s9708_s1 + $0x5b8] sm:$0xff]  ;;  %v2463_v33 = vpack.c.bf16 %v1813_v31, %v1803_v54  ;;  %v1493_v30 = vpop.f32.mrb[52].mxu0  ;;  %v1778_v54 = vld [vmem:[%s9708_s1 + $0x830] sm:$0xff]  ;;  %v1788_v31 = vld [vmem:[%s9708_s1 + $0x880] sm:$0xff] }
 0x42a   :  { %v2409_v44 = vpack.c.bf16 %v1709_v42, %v1699_v40  ;;  %v2492_v40 = vpack.c.bf16 %v1872_v37, %v1862_v36  ;;  %v2448_v42 = vpack.c.bf16 %v1788_v31, %v1778_v54  ;;  %v1923_v43 = vld [vmem:[%s9708_s1 + $0xcb8] sm:$0xff] }
 0x42b   :  { %v1963_v36 = vld [vmem:[%s9708_s1 + $0xdf8] sm:$0xff] }
 0x42d   :  { %3222 = vmatmul.mubr.bf16.gmra.mrb[84].mxu0 %v2368_v2  ;;  %v1729_v2 = vld [vmem:[%s9708_s1 + $0x6a8] sm:$0xff] }
 0x42e   :  { %3229 = vmatprep.mubr.bf16.mxu0 %v2379_v10  ;;  %v2473_v10 = vpack.c.bf16 %v1833_v62, %v1823_v55  ;;  %v1808_v55 = vld [vmem:[%s9708_s1 + $0x920] sm:$0xff] }
 0x42f   :  { %v2458_v62 = vpack.c.bf16 %v1808_v55, %v1798_v53  ;;  %v1879_v55 = vld [vmem:[%s9708_s1 + $0xb58] sm:$0xff] }
 0x430   :  { %3960 = vmatmul.mubr.bf16.gmra.mrb[116].mxu1 %v2412_v1  ;;  %v1719_v1 = vld [vmem:[%s9708_s1 + $0x658] sm:$0xff] }
 0x431   :  { %3967 = vmatprep.mubr.bf16.mxu1 %v2423_v3  ;;  %v2792_v3 = vpack.c.bf16 %v1488_v63, %v1485_v19  ;;  %v2419_v5 = vpack.c.bf16 %v1729_v2, %v1719_v1  ;;  %v1809_v19 = vld [vmem:[%s9708_s1 + $0x928] sm:$0xff]  ;;  %v1902_v2 = vld [vmem:[%s9708_s1 + $0xc10] sm:$0xff] }
 0x433   :  { %4233 = vmatpush1.bf16.msra.mxu1 %v2792_v3  ;;  %v1912_v3 = vld [vmem:[%s9708_s1 + $0xc60] sm:$0xff] }
 0x434   :  { %4234 = vmatprep.subr.bf16.mxu1 %v5353_v0 }
 0x435   :  { %3230 = vmatmul.mubr.bf16.gmra.mrb[88].mxu0 %v2378_v15  ;;  %v1853_v15 = vld [vmem:[%s9708_s1 + $0xa88] sm:$0xff] }
 0x436   :  { %3237 = vmatprep.mubr.bf16.mxu0 %v2389_v35 }
 0x438   :  { %3968 = vmatmul.mubr.bf16.gmra.mrb[120].mxu1 %v2422_v12  ;;  %v1843_v12 = vld [vmem:[%s9708_s1 + $0xa38] sm:$0xff] }
 0x439   :  { %3975 = vmatprep.mubr.bf16.mxu1 %v2433_v24  ;;  %v1739_v24 = vld [vmem:[%s9708_s1 + $0x6f8] sm:$0xff]  ;;  %v2483_v35 = vpack.c.bf16 %v1853_v15, %v1843_v12  ;;  %v1818_v12 = vld [vmem:[%s9708_s1 + $0x970] sm:$0xff]  ;;  %v1828_v15 = vld [vmem:[%s9708_s1 + $0x9c0] sm:$0xff] }
 0x43a   :  { %v2429_v14 = vpack.c.bf16 %v1749_v16, %v1739_v24  ;;  %v2512_v24 = vpack.c.bf16 %v1912_v3, %v1902_v2  ;;  %v2468_v16 = vpack.c.bf16 %v1828_v15, %v1818_v12  ;;  %v1888_v2 = vld [vmem:[%s9708_s1 + $0xba0] sm:$0xff]  ;;  %v2003_v12 = vld [vmem:[%s9708_s1 + $0xf38] sm:$0xff] }
 0x43d   :  { %3238 = vmatmul.mubr.bf16.gmra.mrb[92].mxu0 %v2388_v50  ;;  %v1873_v50 = vld [vmem:[%s9708_s1 + $0xb28] sm:$0xff] }
 0x43e   :  { %3245 = vmatprep.mubr.bf16.mxu0 %v2399_v4  ;;  %v1495_v4 = vpop.f32.mrb[53].mxu0 }
 0x43f   :  { %v1496_v58 = vpop.f32.mrb[54].mxu0 }
 0x440   :  { %3976 = vmatmul.mubr.bf16.gmra.mrb[124].mxu1 %v2432_v49  ;;  %v1863_v49 = vld [vmem:[%s9708_s1 + $0xad8] sm:$0xff]  ;;  %v1498_v18 = vpop.f32.mrb[55].mxu0 }
 0x441   :  { %3983 = vmatprep.mubr.bf16.mxu1 %v2443_v27  ;;  %v1759_v27 = vld [vmem:[%s9708_s1 + $0x798] sm:$0xff]  ;;  %v2493_v20 = vpack.c.bf16 %v1873_v50, %v1863_v49  ;;  %v1501_v1 = vpop.f32.mrb[56].mxu0  ;;  %v1848_v49 = vld [vmem:[%s9708_s1 + $0xa60] sm:$0xff]  ;;  %v2522_v50 = vpack.c.bf16 %v1932_v25, %v1922_v6  ;;  %v1909_v6 = vld [vmem:[%s9708_s1 + $0xc48] sm:$0xff] }
 0x442   :  { %v2439_v47 = vpack.c.bf16 %v1769_v28, %v1759_v27  ;;  %v2478_v27 = vpack.c.bf16 %v1848_v49, %v1838_v39  ;;  %v1868_v18 = vld [vmem:[%s9708_s1 + $0xb00] sm:$0xff] }
 0x445   :  { %3246 = vmatmul.mubr.bf16.gmra.mrb[96].mxu0 %v2398_v38  ;;  %v1789_v38 = vld [vmem:[%s9708_s1 + $0x888] sm:$0xff] }
 0x446   :  { %3253 = vmatprep.mubr.bf16.mxu0 %v2409_v44  ;;  %v2503_v44 = vpack.c.bf16 %v1893_v13, %v1883_v61  ;;  %v1973_v61 = vld [vmem:[%s9708_s1 + $0xe48] sm:$0xff]  ;;  %v1859_v13 = vld [vmem:[%s9708_s1 + $0xab8] sm:$0xff] }
 0x448   :  { %3984 = vmatmul.mubr.bf16.gmra.mrb[128].mxu1 %v2442_v51  ;;  %v1779_v51 = vld [vmem:[%s9708_s1 + $0x838] sm:$0xff] }
 0x449   :  { %3991 = vmatprep.mubr.bf16.mxu1 %v2453_v17  ;;  %v2793_v17 = vpack.c.bf16 %v1496_v58, %v1493_v30  ;;  %v2449_v45 = vpack.c.bf16 %v1789_v38, %v1779_v51  ;;  %v1952_v30 = vld [vmem:[%s9708_s1 + $0xda0] sm:$0xff]  ;;  %v1869_v58 = vld [vmem:[%s9708_s1 + $0xb08] sm:$0xff] }
 0x44a   :  { %v2489_v38 = vpack.c.bf16 %v1869_v58, %v1859_v13 }
 0x44b   :  { %4235 = vmatpush1.bf16.msra.mxu1 %v2793_v17  ;;  %v1858_v17 = vld [vmem:[%s9708_s1 + $0xab0] sm:$0xff] }
 0x44c   :  { %4236 = vmatprep.subr.bf16.mxu1 %v5353_v0  ;;  %v2488_v31 = vpack.c.bf16 %v1868_v18, %v1858_v17 }
 0x44d   :  { %3254 = vmatmul.mubr.bf16.gmra.mrb[100].mxu0 %v2408_v60  ;;  %v1913_v60 = vld [vmem:[%s9708_s1 + $0xc68] sm:$0xff] }
 0x44e   :  { %3261 = vmatprep.mubr.bf16.mxu0 %v2419_v5  ;;  %v1503_v5 = vpop.f32.mrb[57].mxu0 }
 0x44f   :  { %v1504_v8 = vpop.f32.mrb[58].mxu0 }
 0x450   :  { %3992 = vmatmul.mubr.bf16.gmra.mrb[132].mxu1 %v2452_v26  ;;  %v1903_v26 = vld [vmem:[%s9708_s1 + $0xc18] sm:$0xff]  ;;  %v1506_v56 = vpop.f32.mrb[59].mxu0 }
 0x451   :  { %3999 = vmatprep.mubr.bf16.mxu1 %v2463_v33  ;;  %v1799_v33 = vld [vmem:[%s9708_s1 + $0x8d8] sm:$0xff]  ;;  %v2513_v63 = vpack.c.bf16 %v1913_v60, %v1903_v26  ;;  %v1962_v26 = vld [vmem:[%s9708_s1 + $0xdf0] sm:$0xff]  ;;  %v1972_v60 = vld [vmem:[%s9708_s1 + $0xe40] sm:$0xff] }
 0x452   :  { %v2459_v52 = vpack.c.bf16 %v1809_v19, %v1799_v33  ;;  %v1983_v33 = vld [vmem:[%s9708_s1 + $0xe98] sm:$0xff]  ;;  %v2542_v3 = vpack.c.bf16 %v1972_v60, %v1962_v26  ;;  %v1982_v56 = vld [vmem:[%s9708_s1 + $0xe90] sm:$0xff] }
 0x455   :  { %3262 = vmatmul.mubr.bf16.gmra.mrb[104].mxu0 %v2418_v9  ;;  %v1829_v9 = vld [vmem:[%s9708_s1 + $0x9c8] sm:$0xff] }
 0x456   :  { %3269 = vmatprep.mubr.bf16.mxu0 %v2429_v14  ;;  %v2523_v14 = vpack.c.bf16 %v1933_v34, %v1923_v43 }
 0x458   :  { %4000 = vmatmul.mubr.bf16.gmra.mrb[136].mxu1 %v2462_v7  ;;  %v1819_v7 = vld [vmem:[%s9708_s1 + $0x978] sm:$0xff] }
 0x459   :  { %4007 = vmatprep.mubr.bf16.mxu1 %v2473_v10  ;;  %v2794_v10 = vpack.c.bf16 %v1504_v8, %v1501_v1  ;;  %v2469_v11 = vpack.c.bf16 %v1829_v9, %v1819_v7  ;;  %v1878_v1 = vld [vmem:[%s9708_s1 + $0xb50] sm:$0xff] }
 0x45a   :  { %v2498_v5 = vpack.c.bf16 %v1888_v2, %v1878_v1  ;;  %v2042_v1 = vld [vmem:[%s9708_s1 + $0x1070] sm:$0xff]  ;;  %v2052_v2 = vld [vmem:[%s9708_s1 + $0x10c0] sm:$0xff] }
 0x45b   :  { %4237 = vmatpush1.bf16.msra.mxu1 %v2794_v10 }
 0x45c   :  { %4238 = vmatprep.subr.bf16.mxu1 %v5353_v0  ;;  %v1839_v0 = vld [vmem:[%s9708_s1 + $0xa18] sm:$0xff] }
 0x45d   :  { %3270 = vmatmul.mubr.bf16.gmra.mrb[108].mxu0 %v2428_v22  ;;  %v1953_v22 = vld [vmem:[%s9708_s1 + $0xda8] sm:$0xff] }
 0x45e   :  { %3277 = vmatprep.mubr.bf16.mxu0 %v2439_v47  ;;  %v1509_v47 = vpop.f32.mrb[60].mxu0 }
 0x45f   :  { %v1511_v59 = vpop.f32.mrb[61].mxu0 }
 0x460   :  { %4008 = vmatmul.mubr.bf16.gmra.mrb[140].mxu1 %v2472_v21  ;;  %v1943_v21 = vld [vmem:[%s9708_s1 + $0xd58] sm:$0xff]  ;;  %v1512_v46 = vpop.f32.mrb[62].mxu0  ;;  %v2002_v59 = vld [vmem:[%s9708_s1 + $0xf30] sm:$0xff] }
 0x461   :  { %4015 = vmatprep.mubr.bf16.mxu1 %v2483_v35  ;;  %v1849_v35 = vld [vmem:[%s9708_s1 + $0xa68] sm:$0xff]  ;;  %v2533_v28 = vpack.c.bf16 %v1953_v22, %v1943_v21  ;;  %v1898_v22 = vld [vmem:[%s9708_s1 + $0xbf0] sm:$0xff] }
 0x462   :  { %v2479_v23 = vpack.c.bf16 %v1849_v35, %v1839_v0  ;;  %v1908_v0 = vld [vmem:[%s9708_s1 + $0xc40] sm:$0xff] }
 0x463   :  { %v2508_v39 = vpack.c.bf16 %v1908_v0, %v1898_v22  ;;  %v2083_v0 = vld [vmem:[%s9708_s1 + $0x11b8] sm:$0xff] }
 0x465   :  { %3278 = vmatmul.mubr.bf16.gmra.mrb[112].mxu0 %v2438_v32  ;;  %v1514_v32 = vpop.f32.mrb[63].mxu0 }
 0x466   :  { %3285 = vmatprep.mubr.bf16.mxu0 %v2449_v45  ;;  %v8389_v37 = vpop.f32.mrb[144].mxu0  ;;  %v2023_v32 = vld [vmem:[%s9708_s1 + $0xfd8] sm:$0xff] }
 0x467   :  { %v2992_v4 = vpop.f32.mrb[145].mxu0 }
 0x468   :  { %4016 = vmatmul.mubr.bf16.gmra.mrb[144].mxu1 %v2482_v29  ;;  %v2795_v29 = vpack.c.bf16 %v1512_v46, %v1509_v47  ;;  %v8400_v51 = vpop.f32.mrb[146].mxu0  ;;  %v2012_v46 = vld [vmem:[%s9708_s1 + $0xf80] sm:$0xff] }
 0x469   :  { %4023 = vmatprep.mubr.bf16.mxu1 %v2493_v20  ;;  %v1942_v20 = vld [vmem:[%s9708_s1 + $0xd50] sm:$0xff]  ;;  %v2995_v54 = vpop.f32.mrb[147].mxu0 }
 0x46a   :  { %4239 = vmatpush1.bf16.msra.mxu1 %v2795_v29  ;;  %v2532_v45 = vpack.c.bf16 %v1952_v30, %v1942_v20  ;;  %v2033_v20 = vld [vmem:[%s9708_s1 + $0x1028] sm:$0xff]  ;;  %v2032_v54 = vld [vmem:[%s9708_s1 + $0x1020] sm:$0xff] }
 0x46b   :  { %v2573_v13 = vpack.c.bf16 %v2033_v20, %v2023_v32 }
 0x46d   :  { %3286 = vmatmul.mubr.bf16.gmra.mrb[116].mxu0 %v2448_v42  ;;  %v8408_v42 = vpop.f32.mrb[148].mxu0 }
 0x46e   :  { %3293 = vmatprep.mubr.bf16.mxu0 %v2459_v52  ;;  %v1993_v52 = vld [vmem:[%s9708_s1 + $0xee8] sm:$0xff] }
 0x46f   :  { %v2553_v34 = vpack.c.bf16 %v1993_v52, %v1983_v33 }
 0x470   :  { %4024 = vmatmul.mubr.bf16.gmra.mrb[148].mxu1 %v2492_v40  ;;  %v2543_v40 = vpack.c.bf16 %v1973_v61, %v1963_v36  ;;  %v2562_v61 = vpack.c.bf16 %v2012_v46, %v2002_v59 }
 0x471   :  { %4031 = vmatprep.mubr.bf16.mxu1 %v2503_v44  ;;  %v3000_v44 = vpop.f32.mrb[149].mxu0 }
 0x472   :  { %v8410_v48 = vpop.f32.mrb[150].mxu0  ;;  %v2053_v44 = vld [vmem:[%s9708_s1 + $0x10c8] sm:$0xff] }
 0x473   :  { %v3003_v41 = vpop.f32.mrb[151].mxu0 }
 0x474   :  { %v8421_v19 = vpop.f32.mrb[152].mxu0 }
 0x475   :  { %3294 = vmatmul.mubr.bf16.gmra.mrb[120].mxu0 %v2458_v62  ;;  %v3008_v53 = vpop.f32.mrb[153].mxu0 }
 0x476   :  { %3301 = vmatprep.mubr.bf16.mxu0 %v2469_v11  ;;  %v8432_v62 = vpop.f32.mrb[154].mxu0  ;;  %v1992_v11 = vld [vmem:[%s9708_s1 + $0xee0] sm:$0xff] }
 0x477   :  { %v3011_v43 = vpop.f32.mrb[155].mxu0  ;;  %v2552_v35 = vpack.c.bf16 %v1992_v11, %v1982_v56 }
 0x478   :  { %4032 = vmatmul.mubr.bf16.gmra.mrb[152].mxu1 %v2502_v57  ;;  %v1889_v57 = vld [vmem:[%s9708_s1 + $0xba8] sm:$0xff]  ;;  %v8440_v8 = vpop.f32.mrb[156].mxu0  ;;  %v2063_v43 = vld [vmem:[%s9708_s1 + $0x1118] sm:$0xff] }
 0x479   :  { %4039 = vmatprep.mubr.bf16.mxu1 %v2513_v63  ;;  %v2499_v63 = vpack.c.bf16 %v1889_v57, %v1879_v55  ;;  %v3016_v7 = vpop.f32.mrb[157].mxu0 }
 0x47a   :  { %v8442_v9 = vpop.f32.mrb[158].mxu0 }
 0x47b   :  { %v3019_v10 = vpop.f32.mrb[159].mxu0 }
 0x47c   :  { %v8453_v15 = vpop.f32.mrb[160].mxu0  ;;  %v2582_v10 = vpack.c.bf16 %v2052_v2, %v2042_v1  ;;  %v2123_v2 = vld [vmem:[%s9708_s1 + $0x12f8] sm:$0xff] }
 0x47d   :  { %3302 = vmatmul.mubr.bf16.gmra.mrb[124].mxu0 %v2468_v16  ;;  %v3024_v16 = vpop.f32.mrb[161].mxu0 }
 0x47e   :  { %3309 = vmatprep.mubr.bf16.mxu0 %v2479_v23  ;;  %v8464_v25 = vpop.f32.mrb[162].mxu0 }
 0x47f   :  { %v3027_v23 = vpop.f32.mrb[163].mxu0 }
 0x480   :  { %4040 = vmatmul.mubr.bf16.gmra.mrb[156].mxu1 %v2512_v24  ;;  %v2013_v24 = vld [vmem:[%s9708_s1 + $0xf88] sm:$0xff] }
 0x481   :  { %4047 = vmatprep.mubr.bf16.mxu1 %v2523_v14  ;;  %v1899_v14 = vld [vmem:[%s9708_s1 + $0xbf8] sm:$0xff]  ;;  %v2563_v49 = vpack.c.bf16 %v2013_v24, %v2003_v12 }
 0x482   :  { %v2509_v21 = vpack.c.bf16 %v1909_v6, %v1899_v14  ;;  %v2062_v6 = vld [vmem:[%s9708_s1 + $0x1110] sm:$0xff] }
 0x485   :  { %3310 = vmatmul.mubr.bf16.gmra.mrb[128].mxu0 %v2478_v27 }
 0x486   :  { %3317 = vmatprep.mubr.bf16.mxu0 %v2489_v38 }
 0x488   :  { %4048 = vmatmul.mubr.bf16.gmra.mrb[0].mxu1 %v2522_v50  ;;  %v8472_v50 = vpop.f32.mrb[164].mxu0 }
 0x489   :  { %4055 = vmatprep.mubr.bf16.mxu1 %v2533_v28  ;;  %v3032_v27 = vpop.f32.mrb[165].mxu0 }
 0x48a   :  { %v8474_v28 = vpop.f32.mrb[166].mxu0 }
 0x48b   :  { %v3035_v47 = vpop.f32.mrb[167].mxu0 }
 0x48c   :  { %v8482_v29 = vpop.f32.mrb[168].mxu0 }
 0x48d   :  { %3318 = vmatmul.mubr.bf16.gmra.mrb[132].mxu0 %v2488_v31  ;;  %9711 = vst [vmem:[#allocation2_spill] sm:$0xff] %v8482_v29  ;;  %v3040_v30 = vpop.f32.mrb[169].mxu0 }
 0x48e   :  { %3325 = vmatprep.mubr.bf16.mxu0 %v2499_v63  ;;  %v8490_v36 = vpop.f32.mrb[170].mxu0  ;;  %v2082_v30 = vld [vmem:[%s9708_s1 + $0x11b0] sm:$0xff] }
 0x48f   :  { %9712 = vst [vmem:[#allocation3_spill] sm:$0xff] %v8490_v36  ;;  %v3043_v4 = vpop.f32.mrb[171].mxu0  ;;  %v1765_v36 = vld [vmem:[%s9708_s1 + $0x7c8] sm:$0xff] }
 0x490   :  { %4056 = vmatmul.mubr.bf16.gmra.mrb[4].mxu1 %v2532_v45  ;;  %v8492_v58 = vpop.f32.mrb[172].mxu0  ;;  %v2022_v45 = vld [vmem:[%s9708_s1 + $0xfd0] sm:$0xff] }
 0x491   :  { %4063 = vmatprep.mubr.bf16.mxu1 %v2543_v40  ;;  %9713 = vst [vmem:[#allocation4_spill] sm:$0xff] %v8492_v58  ;;  %v3048_v38 = vpop.f32.mrb[173].mxu0  ;;  %v2043_v40 = vld [vmem:[%s9708_s1 + $0x1078] sm:$0xff]  ;;  %v2572_v60 = vpack.c.bf16 %v2032_v54, %v2022_v45  ;;  %v1754_v58 = vld [vmem:[%s9708_s1 + $0x770] sm:$0xff] }
 0x492   :  { %v8494_v17 = vpop.f32.mrb[174].mxu0  ;;  %v2583_v52 = vpack.c.bf16 %v2053_v44, %v2043_v40  ;;  %v2113_v38 = vld [vmem:[%s9708_s1 + $0x12a8] sm:$0xff] }
 0x493   :  { %9714 = vst [vmem:[#allocation5_spill] sm:$0xff] %v8494_v17  ;;  %v3051_v18 = vpop.f32.mrb[175].mxu0  ;;  %v1745_v17 = vld [vmem:[%s9708_s1 + $0x728] sm:$0xff] }
 0x494   :  { %v8502_v31 = vpop.f32.mrb[176].mxu0 }
 0x495   :  { %3326 = vmatmul.mubr.bf16.gmra.mrb[136].mxu0 %v2498_v5  ;;  %9715 = vst [vmem:[#allocation6_spill] sm:$0xff] %v8502_v31  ;;  %v3056_v41 = vpop.f32.mrb[177].mxu0  ;;  %v2073_v5 = vld [vmem:[%s9708_s1 + $0x1168] sm:$0xff]  ;;  %v1734_v31 = vld [vmem:[%s9708_s1 + $0x6d0] sm:$0xff] }
 0x496   :  { %3333 = vmatprep.mubr.bf16.mxu0 %v2509_v21  ;;  %v8510_v26 = vpop.f32.mrb[178].mxu0  ;;  %v2593_v11 = vpack.c.bf16 %v2073_v5, %v2063_v43  ;;  %v2072_v21 = vld [vmem:[%s9708_s1 + $0x1160] sm:$0xff]  ;;  %v2133_v43 = vld [vmem:[%s9708_s1 + $0x1348] sm:$0xff] }
 0x497   :  { %9716 = vst [vmem:[#allocation7_spill] sm:$0xff] %v8510_v26  ;;  %v3059_v33 = vpop.f32.mrb[179].mxu0  ;;  %v1725_v26 = vld [vmem:[%s9708_s1 + $0x688] sm:$0xff] }
 0x498   :  { %4064 = vmatmul.mubr.bf16.gmra.mrb[8].mxu1 %v2542_v3  ;;  %v8512_v53 = vpop.f32.mrb[180].mxu0 }
 0x499   :  { %4071 = vmatprep.mubr.bf16.mxu1 %v2553_v34  ;;  %9717 = vst [vmem:[#allocation8_spill] sm:$0xff] %v8512_v53  ;;  %v3064_v55 = vpop.f32.mrb[181].mxu0  ;;  %v1714_v53 = vld [vmem:[%s9708_s1 + $0x630] sm:$0xff] }
 0x49a   :  { %v8514_v57 = vpop.f32.mrb[182].mxu0  ;;  %v2102_v55 = vld [vmem:[%s9708_s1 + $0x1250] sm:$0xff] }
 0x49b   :  { %9718 = vst [vmem:[#allocation9_spill] sm:$0xff] %v8514_v57  ;;  %v3067_v63 = vpop.f32.mrb[183].mxu0  ;;  %v1705_v57 = vld [vmem:[%s9708_s1 + $0x5e8] sm:$0xff] }
 0x49c   :  { %v8522_v3 = vpop.f32.mrb[184].mxu0  ;;  %v2112_v63 = vld [vmem:[%s9708_s1 + $0x12a0] sm:$0xff] }
 0x49d   :  { %3334 = vmatmul.mubr.bf16.gmra.mrb[140].mxu0 %v2508_v39  ;;  %9719 = vst [vmem:[#allocation10_spill] sm:$0xff] %v8522_v3  ;;  %v3072_v34 = vpop.f32.mrb[185].mxu0  ;;  %v1694_v3 = vld [vmem:[%s9708_s1 + $0x590] sm:$0xff] }
 0x49e   :  { %v8530_v7 = vpop.f32.mrb[186].mxu0 }
 0x49f   :  { %9720 = vst [vmem:[#allocation11_spill] sm:$0xff] %v8530_v7  ;;  %v3075_v56 = vpop.f32.mrb[187].mxu0  ;;  %v1685_v7 = vld [vmem:[%s9708_s1 + $0x548] sm:$0xff] }
 0x4a0   :  { %4072 = vmatmul.mubr.bf16.gmra.mrb[12].mxu1 %v2552_v35  ;;  %v8532_v12 = vpop.f32.mrb[188].mxu0  ;;  %v2093_v35 = vld [vmem:[%s9708_s1 + $0x1208] sm:$0xff] }
 0x4a1   :  { %4079 = vmatprep.mubr.bf16.mxu1 %v2563_v49  ;;  %9721 = vst [vmem:[#allocation12_spill] sm:$0xff] %v8532_v12  ;;  %v3080_v24 = vpop.f32.mrb[189].mxu0  ;;  %v2592_v49 = vpack.c.bf16 %v2072_v21, %v2062_v6  ;;  %v2603_v47 = vpack.c.bf16 %v2093_v35, %v2083_v0  ;;  %v2122_v0 = vld [vmem:[%s9708_s1 + $0x12f0] sm:$0xff]  ;;  %v2132_v35 = vld [vmem:[%s9708_s1 + $0x1340] sm:$0xff] }
 0x4a2   :  { %v8534_v16 = vpop.f32.mrb[190].mxu0  ;;  %v1674_v12 = vld [vmem:[%s9708_s1 + $0x4f0] sm:$0xff] }
 0x4a3   :  { %9722 = vst [vmem:[#allocation13_spill] sm:$0xff] %v8534_v16  ;;  %v3083_v14 = vpop.f32.mrb[191].mxu0  ;;  %v1665_v16 = vld [vmem:[%s9708_s1 + $0x4a8] sm:$0xff] }
 0x4a4   :  { %v8542_v22 = vpop.f32.mrb[192].mxu0 }
 0x4a5   :  { %9723 = vst [vmem:[#allocation14_spill] sm:$0xff] %v8542_v22  ;;  %v3088_v23 = vpop.f32.mrb[193].mxu0  ;;  %v1654_v22 = vld [vmem:[%s9708_s1 + $0x450] sm:$0xff] }
 0x4a6   :  { %v8550_v39 = vpop.f32.mrb[194].mxu0 }
 0x4a7   :  { %9724 = vst [vmem:[#allocation15_spill] sm:$0xff] %v8550_v39  ;;  %v3091_v27 = vpop.f32.mrb[195].mxu0  ;;  %v1645_v39 = vld [vmem:[%s9708_s1 + $0x408] sm:$0xff] }
 0x4a8   :  { %4080 = vmatmul.mubr.bf16.gmra.mrb[16].mxu1 %v2562_v61  ;;  %v8552_v59 = vpop.f32.mrb[196].mxu0  ;;  %v2092_v61 = vld [vmem:[%s9708_s1 + $0x1200] sm:$0xff]  ;;  %v2153_v27 = vld [vmem:[%s9708_s1 + $0x13e8] sm:$0xff] }
 0x4a9   :  { %4087 = vmatprep.mubr.bf16.mxu1 %v2573_v13  ;;  %9725 = vst [vmem:[#allocation16_spill] sm:$0xff] %v8552_v59  ;;  %v3096_v46 = vpop.f32.mrb[197].mxu0  ;;  %v2103_v13 = vld [vmem:[%s9708_s1 + $0x1258] sm:$0xff]  ;;  %v2602_v54 = vpack.c.bf16 %v2092_v61, %v2082_v30  ;;  %v1634_v59 = vld [vmem:[%s9708_s1 + $0x3b0] sm:$0xff] }
 0x4aa   :  { %v8554_v32 = vpop.f32.mrb[198].mxu0  ;;  %v2613_v44 = vpack.c.bf16 %v2113_v38, %v2103_v13 }
 0x4ab   :  { %9726 = vst [vmem:[#allocation17_spill] sm:$0xff] %v8554_v32  ;;  %v3099_v20 = vpop.f32.mrb[199].mxu0  ;;  %v1625_v32 = vld [vmem:[%s9708_s1 + $0x368] sm:$0xff] }
 0x4ac   :  { %v8562_v4 = vpop.f32.mrb[200].mxu0  ;;  %v2622_v20 = vpack.c.bf16 %v2132_v35, %v2122_v0 }
 0x4ad   :  { %9727 = vst [vmem:[#allocation18_spill] sm:$0xff] %v8562_v4  ;;  %v3104_v18 = vpop.f32.mrb[201].mxu0  ;;  %v1614_v4 = vld [vmem:[%s9708_s1 + $0x310] sm:$0xff] }
 0x4ae   :  { %v8570_v45 = vpop.f32.mrb[202].mxu0 }
 0x4af   :  { %9728 = vst [vmem:[#allocation19_spill] sm:$0xff] %v8570_v45  ;;  %v3107_v40 = vpop.f32.mrb[203].mxu0  ;;  %v1605_v45 = vld [vmem:[%s9708_s1 + $0x2c8] sm:$0xff] }
 0x4b0   :  { %4088 = vmatmul.mubr.bf16.gmra.mrb[20].mxu1 %v2572_v60  ;;  %v8572_v41 = vpop.f32.mrb[204].mxu0  ;;  %v2142_v40 = vld [vmem:[%s9708_s1 + $0x1390] sm:$0xff] }
 0x4b1   :  { %4095 = vmatprep.mubr.bf16.mxu1 %v2583_v52  ;;  %9729 = vst [vmem:[#allocation20_spill] sm:$0xff] %v8572_v41  ;;  %v3112_v60 = vpop.f32.mrb[205].mxu0  ;;  %v1594_v41 = vld [vmem:[%s9708_s1 + $0x270] sm:$0xff] }
 0x4b2   :  { %v8574_v33 = vpop.f32.mrb[206].mxu0  ;;  %v2163_v60 = vld [vmem:[%s9708_s1 + $0x1438] sm:$0xff] }
 0x4b3   :  { %9730 = vst [vmem:[#allocation21_spill] sm:$0xff] %v8574_v33  ;;  %v3115_v52 = vpop.f32.mrb[207].mxu0  ;;  %v1585_v33 = vld [vmem:[%s9708_s1 + $0x228] sm:$0xff] }
 0x4b4   :  { %v2173_v52 = vld [vmem:[%s9708_s1 + $0x1488] sm:$0xff] }
 0x4b8   :  { %4096 = vmatmul.mubr.bf16.gmra.mrb[24].mxu1 %v2582_v10  ;;  %v8582_v1 = vpop.f32.mrb[208].mxu0  ;;  %v2612_v10 = vpack.c.bf16 %v2112_v63, %v2102_v55 }
 0x4b9   :  { %4103 = vmatprep.mubr.bf16.mxu1 %v2593_v11  ;;  %9731 = vst [vmem:[#allocation22_spill] sm:$0xff] %v8582_v1  ;;  %v3120_v5 = vpop.f32.mrb[209].mxu0  ;;  %v2623_v11 = vpack.c.bf16 %v2133_v43, %v2123_v2  ;;  %v1574_v1 = vld [vmem:[%s9708_s1 + $0x1d0] sm:$0xff] }
 0x4ba   :  { %v8590_v34 = vpop.f32.mrb[210].mxu0  ;;  %v2643_v5 = vpack.c.bf16 %v2173_v52, %v2163_v60 }
 0x4bb   :  { %9732 = vst [vmem:[#allocation23_spill] sm:$0xff] %v8590_v34  ;;  %v3123_v56 = vpop.f32.mrb[211].mxu0  ;;  %v1565_v34 = vld [vmem:[%s9708_s1 + $0x188] sm:$0xff] }
 0x4bc   :  { %v2162_v56 = vld [vmem:[%s9708_s1 + $0x1430] sm:$0xff] }
 0x4c0   :  { %4104 = vmatmul.mubr.bf16.gmra.mrb[28].mxu1 %v2592_v49  ;;  %v8592_v24 = vpop.f32.mrb[212].mxu0  ;;  %v2143_v49 = vld [vmem:[%s9708_s1 + $0x1398] sm:$0xff] }
 0x4c1   :  { %4111 = vmatprep.mubr.bf16.mxu1 %v2603_v47  ;;  %9733 = vst [vmem:[#allocation24_spill] sm:$0xff] %v8592_v24  ;;  %v3128_v14 = vpop.f32.mrb[213].mxu0  ;;  %v2633_v61 = vpack.c.bf16 %v2153_v27, %v2143_v49  ;;  %v1554_v24 = vld [vmem:[%s9708_s1 + $0x130] sm:$0xff] }
 0x4c2   :  { %v8594_v6 = vpop.f32.mrb[214].mxu0  ;;  %v2183_v14 = vld [vmem:[%s9708_s1 + $0x14d8] sm:$0xff] }
 0x4c3   :  { %9734 = vst [vmem:[#allocation25_spill] sm:$0xff] %v8594_v6  ;;  %v3131_v21 = vpop.f32.mrb[215].mxu0  ;;  %v1545_v6 = vld [vmem:[%s9708_s1 + $0xe8] sm:$0xff] }
 0x4c4   :  { %v2193_v21 = vld [vmem:[%s9708_s1 + $0x1528] sm:$0xff] }
 0x4c8   :  { %4112 = vmatmul.mubr.bf16.gmra.mrb[32].mxu1 %v2602_v54  ;;  %v8602_v23 = vpop.f32.mrb[216].mxu0 }
 0x4c9   :  { %4119 = vmatprep.mubr.bf16.mxu1 %v2613_v44  ;;  %9735 = vst [vmem:[#allocation26_spill] sm:$0xff] %v8602_v23  ;;  %v3136_v47 = vpop.f32.mrb[217].mxu0  ;;  %v2152_v44 = vld [vmem:[%s9708_s1 + $0x13e0] sm:$0xff]  ;;  %v1534_v23 = vld [vmem:[%s9708_s1 + $0x90] sm:$0xff] }
 0x4ca   :  { %v8610_v46 = vpop.f32.mrb[218].mxu0  ;;  %v2632_v2 = vpack.c.bf16 %v2152_v44, %v2142_v40  ;;  %v2653_v47 = vpack.c.bf16 %v2193_v21, %v2183_v14 }
 0x4cb   :  { %9736 = vst [vmem:[#allocation27_spill] sm:$0xff] %v8610_v46  ;;  %v3139_v30 = vpop.f32.mrb[219].mxu0  ;;  %v1525_v46 = vld [vmem:[%s9708_s1 + $0x48] sm:$0xff] }
 0x4cc   :  { %v2182_v30 = vld [vmem:[%s9708_s1 + $0x14d0] sm:$0xff] }
 0x4d0   :  { %4120 = vmatmul.mubr.bf16.gmra.mrb[36].mxu1 %v2612_v10  ;;  %v8612_v13 = vpop.f32.mrb[220].mxu0 }
 0x4d1   :  { %4127 = vmatprep.mubr.bf16.mxu1 %v2623_v11  ;;  %9737 = vst [vmem:[#allocation28_spill] sm:$0xff] %v8612_v13  ;;  %v3144_v38 = vpop.f32.mrb[221].mxu0  ;;  %v2172_v11 = vld [vmem:[%s9708_s1 + $0x1480] sm:$0xff] }
 0x4d2   :  { %v8614_v18 = vpop.f32.mrb[222].mxu0  ;;  %v2642_v49 = vpack.c.bf16 %v2172_v11, %v2162_v56  ;;  %v2203_v38 = vld [vmem:[%s9708_s1 + $0x1578] sm:$0xff]  ;;  %v2233_v11 = vld [vmem:[%s9708_s1 + $0x1668] sm:$0xff]  ;;  %v2312_v13 = vld [vmem:[%s9708_s1 + $0x18e0] sm:$0xff] }
 0x4d3   :  { %9738 = vst [vmem:[#allocation29_spill] sm:$0xff] %v8614_v18  ;;  %v3147_v54 = vpop.f32.mrb[223].mxu0  ;;  %v2223_v56 = vld [vmem:[%s9708_s1 + $0x1618] sm:$0xff] }
 0x4d4   :  { %v2213_v54 = vld [vmem:[%s9708_s1 + $0x15c8] sm:$0xff]  ;;  %v2303_v18 = vld [vmem:[%s9708_s1 + $0x1898] sm:$0xff] }
 0x4d8   :  { %4128 = vmatmul.mubr.bf16.gmra.mrb[40].mxu1 %v2622_v20  ;;  %v8628_v55 = vpop.f32.mrb[64].mxu0 }
 0x4d9   :  { %4135 = vmatprep.mubr.bf16.mxu1 %v2633_v61  ;;  %v3185_v63 = vpop.f32.mrb[65].mxu0  ;;  %v2192_v61 = vld [vmem:[%s9708_s1 + $0x1520] sm:$0xff] }
 0x4da   :  { %v8630_v43 = vpop.f32.mrb[66].mxu0  ;;  %v2652_v60 = vpack.c.bf16 %v2192_v61, %v2182_v30  ;;  %v2663_v63 = vpack.c.bf16 %v2213_v54, %v2203_v38  ;;  %v2222_v30 = vld [vmem:[%s9708_s1 + $0x1610] sm:$0xff]  ;;  %v2232_v61 = vld [vmem:[%s9708_s1 + $0x1660] sm:$0xff]  ;;  %v2243_v38 = vld [vmem:[%s9708_s1 + $0x16b8] sm:$0xff] }
 0x4db   :  { %v3188_v10 = vpop.f32.mrb[67].mxu0  ;;  %v2253_v54 = vld [vmem:[%s9708_s1 + $0x1708] sm:$0xff] }
 0x4dc   :  { %v2212_v10 = vld [vmem:[%s9708_s1 + $0x15c0] sm:$0xff] }
 0x4e0   :  { %4136 = vmatmul.mubr.bf16.gmra.mrb[44].mxu1 %v2632_v2  ;;  %v8644_v0 = vpop.f32.mrb[68].mxu0 }
 0x4e1   :  { %4143 = vmatprep.mubr.bf16.mxu1 %v2643_v5  ;;  %v3193_v35 = vpop.f32.mrb[69].mxu0  ;;  %v2202_v5 = vld [vmem:[%s9708_s1 + $0x1570] sm:$0xff] }
 0x4e2   :  { %v8646_v27 = vpop.f32.mrb[70].mxu0  ;;  %v2662_v35 = vpack.c.bf16 %v2212_v10, %v2202_v5  ;;  %v2683_v5 = vpack.c.bf16 %v2253_v54, %v2243_v38 }
 0x4e3   :  { %v3196_v20 = vpop.f32.mrb[71].mxu0 }
 0x4e8   :  { %4144 = vmatmul.mubr.bf16.gmra.mrb[48].mxu1 %v2642_v49  ;;  %v8660_v40 = vpop.f32.mrb[72].mxu0 }
 0x4e9   :  { %4151 = vmatprep.mubr.bf16.mxu1 %v2653_v47  ;;  %v3201_v44 = vpop.f32.mrb[73].mxu0  ;;  %v2673_v47 = vpack.c.bf16 %v2233_v11, %v2223_v56  ;;  %v2242_v56 = vld [vmem:[%s9708_s1 + $0x16b0] sm:$0xff]  ;;  %v2252_v11 = vld [vmem:[%s9708_s1 + $0x1700] sm:$0xff] }
 0x4ea   :  { %v8662_v52 = vpop.f32.mrb[74].mxu0 }
 0x4eb   :  { %v3204_v2 = vpop.f32.mrb[75].mxu0 }
 0x4f0   :  { %4152 = vmatmul.mubr.bf16.gmra.mrb[52].mxu1 %v2652_v60  ;;  %v8676_v14 = vpop.f32.mrb[76].mxu0 }
 0x4f1   :  { %4159 = vmatprep.mubr.bf16.mxu1 %v2663_v63  ;;  %v3209_v21 = vpop.f32.mrb[77].mxu0  ;;  %v2672_v63 = vpack.c.bf16 %v2232_v61, %v2222_v30  ;;  %v2682_v30 = vpack.c.bf16 %v2252_v11, %v2242_v56 }
 0x4f2   :  { %v8678_v49 = vpop.f32.mrb[78].mxu0  ;;  %v2263_v21 = vld [vmem:[%s9708_s1 + $0x1758] sm:$0xff] }
 0x4f3   :  { %v3212_v20 = vpop.f32.mrb[79].mxu0 }
 0x4f8   :  { %4160 = vmatmul.mubr.bf16.gmra.mrb[56].mxu1 %v2662_v35  ;;  %v8692_v44 = vpop.f32.mrb[80].mxu0  ;;  %v2273_v35 = vld [vmem:[%s9708_s1 + $0x17a8] sm:$0xff] }
 0x4f9   :  { %4167 = vmatprep.mubr.bf16.mxu1 %v2673_v47  ;;  %v3217_v60 = vpop.f32.mrb[81].mxu0  ;;  %v2693_v38 = vpack.c.bf16 %v2273_v35, %v2263_v21 }
 0x4fa   :  { %v8694_v2 = vpop.f32.mrb[82].mxu0  ;;  %v2262_v60 = vld [vmem:[%s9708_s1 + $0x1750] sm:$0xff] }
 0x4fb   :  { %v3220_v10 = vpop.f32.mrb[83].mxu0 }
 0x4fc   :  { %v2293_v10 = vld [vmem:[%s9708_s1 + $0x1848] sm:$0xff] }
 0x500   :  { %4168 = vmatmul.mubr.bf16.gmra.mrb[60].mxu1 %v2672_v63  ;;  %v8708_v47 = vpop.f32.mrb[84].mxu0  ;;  %v2272_v63 = vld [vmem:[%s9708_s1 + $0x17a0] sm:$0xff] }
 0x501   :  { %4175 = vmatprep.mubr.bf16.mxu1 %v2683_v5  ;;  %v3225_v20 = vpop.f32.mrb[85].mxu0  ;;  %v2283_v5 = vld [vmem:[%s9708_s1 + $0x17f8] sm:$0xff]  ;;  %v2692_v21 = vpack.c.bf16 %v2272_v63, %v2262_v60  ;;  %v2313_v60 = vld [vmem:[%s9708_s1 + $0x18e8] sm:$0xff] }
 0x502   :  { %v8710_v61 = vpop.f32.mrb[86].mxu0  ;;  %v2703_v20 = vpack.c.bf16 %v2293_v10, %v2283_v5 }
 0x503   :  { %v3228_v54 = vpop.f32.mrb[87].mxu0 }
 0x504   :  { %v2292_v54 = vld [vmem:[%s9708_s1 + $0x1840] sm:$0xff] }
 0x508   :  { %4176 = vmatmul.mubr.bf16.gmra.mrb[64].mxu1 %v2682_v30  ;;  %v8724_v56 = vpop.f32.mrb[88].mxu0 }
 0x509   :  { %4183 = vmatprep.mubr.bf16.mxu1 %v2693_v38  ;;  %v3233_v11 = vpop.f32.mrb[89].mxu0  ;;  %v2282_v38 = vld [vmem:[%s9708_s1 + $0x17f0] sm:$0xff] }
 0x50a   :  { %v8726_v35 = vpop.f32.mrb[90].mxu0  ;;  %v2702_v10 = vpack.c.bf16 %v2292_v54, %v2282_v38  ;;  %v1535_v38 = vld [vmem:[%s9708_s1 + $0x98] sm:$0xff] }
 0x50b   :  { %v3236_v30 = vpop.f32.mrb[91].mxu0 }
 0x50c   :  { %v2302_v30 = vld [vmem:[%s9708_s1 + $0x1890] sm:$0xff] }
 0x510   :  { %4184 = vmatmul.mubr.bf16.gmra.mrb[68].mxu1 %v2692_v21  ;;  %v8740_v63 = vpop.f32.mrb[92].mxu0  ;;  %v2713_v21 = vpack.c.bf16 %v2313_v60, %v2303_v18  ;;  %v2712_v60 = vpack.c.bf16 %v2312_v13, %v2302_v30  ;;  %v1555_v13 = vld [vmem:[%s9708_s1 + $0x138] sm:$0xff] }
 0x511   :  { %4191 = vmatprep.mubr.bf16.mxu1 %v2703_v20  ;;  %v3241_v5 = vpop.f32.mrb[93].mxu0 }
 0x512   :  { %v8742_v11 = vpop.f32.mrb[94].mxu0 }
 0x513   :  { %v3244_v20 = vpop.f32.mrb[95].mxu0 }
 0x514   :  { %v1524_v20 = vld [vmem:[%s9708_s1 + $0x40] sm:$0xff] }
 0x518   :  { %4192 = vmatmul.mubr.bf16.gmra.mrb[72].mxu1 %v2702_v10  ;;  %v8756_v18 = vpop.f32.mrb[96].mxu0  ;;  %v2325_v10 = vpack.c.bf16 %v1535_v38, %v1525_v46  ;;  %v2324_v38 = vpack.c.bf16 %v1534_v23, %v1524_v20  ;;  %v1575_v23 = vld [vmem:[%s9708_s1 + $0x1d8] sm:$0xff] }
 0x519   :  { %4199 = vmatprep.mubr.bf16.mxu1 %v2713_v21  ;;  %v3249_v54 = vpop.f32.mrb[97].mxu0 }
 0x51a   :  { %v8758_v5 = vpop.f32.mrb[98].mxu0 }
 0x51b   :  { %v3252_v21 = vpop.f32.mrb[99].mxu0 }
 0x51c   :  { %v1544_v21 = vld [vmem:[%s9708_s1 + $0xe0] sm:$0xff] }
 0x520   :  { %4200 = vmatmul.mubr.bf16.gmra.mrb[76].mxu1 %v2712_v60  ;;  %v8772_v46 = vpop.f32.mrb[100].mxu0  ;;  %v2335_v60 = vpack.c.bf16 %v1555_v13, %v1545_v6  ;;  %v2334_v13 = vpack.c.bf16 %v1554_v24, %v1544_v21  ;;  %v1595_v24 = vld [vmem:[%s9708_s1 + $0x278] sm:$0xff] }
 0x521   :  { %4240 = vmatprep.mubr.bf16.mxu1 %v2325_v10  ;;  %v3257_v30 = vpop.f32.mrb[101].mxu0 }
 0x522   :  { %v8774_v54 = vpop.f32.mrb[102].mxu0 }
 0x523   :  { %v3260_v10 = vpop.f32.mrb[103].mxu0 }
 0x524   :  { %v1564_v10 = vld [vmem:[%s9708_s1 + $0x180] sm:$0xff] }
 0x528   :  { %4241 = vmatmul.mubr.bf16.vlgmr.msra.gmra.mrb[80].mxu1 %v2324_v38  ;;  %v8788_v6 = vpop.f32.mrb[104].mxu0  ;;  %v2345_v38 = vpack.c.bf16 %v1575_v23, %v1565_v34  ;;  %v2344_v23 = vpack.c.bf16 %v1574_v1, %v1564_v10  ;;  %v1615_v1 = vld [vmem:[%s9708_s1 + $0x318] sm:$0xff] }
 0x529   :  { %4248 = vmatprep.mubr.bf16.mxu1 %v2335_v60  ;;  %v3265_v20 = vpop.f32.mrb[105].mxu0 }
 0x52a   :  { %v8790_v30 = vpop.f32.mrb[106].mxu0 }
 0x52b   :  { %v3268_v60 = vpop.f32.mrb[107].mxu0 }
 0x52c   :  { %v1584_v60 = vld [vmem:[%s9708_s1 + $0x220] sm:$0xff] }
 0x530   :  { %4249 = vmatmul.mubr.bf16.gmra.mrb[84].mxu1 %v2334_v13  ;;  %v8804_v34 = vpop.f32.mrb[108].mxu0  ;;  %v2355_v13 = vpack.c.bf16 %v1595_v24, %v1585_v33  ;;  %v2354_v24 = vpack.c.bf16 %v1594_v41, %v1584_v60  ;;  %v1635_v41 = vld [vmem:[%s9708_s1 + $0x3b8] sm:$0xff] }
 0x531   :  { %4256 = vmatprep.mubr.bf16.mxu1 %v2345_v38  ;;  %v3273_v21 = vpop.f32.mrb[109].mxu0 }
 0x532   :  { %v8806_v20 = vpop.f32.mrb[110].mxu0 }
 0x533   :  { %v3276_v38 = vpop.f32.mrb[111].mxu0 }
 0x534   :  { %v1604_v38 = vld [vmem:[%s9708_s1 + $0x2c0] sm:$0xff] }
 0x538   :  { %4257 = vmatmul.mubr.bf16.gmra.mrb[88].mxu1 %v2344_v23  ;;  %v8820_v33 = vpop.f32.mrb[112].mxu0  ;;  %v2365_v23 = vpack.c.bf16 %v1615_v1, %v1605_v45  ;;  %v2364_v1 = vpack.c.bf16 %v1614_v4, %v1604_v38  ;;  %v1655_v4 = vld [vmem:[%s9708_s1 + $0x458] sm:$0xff] }
 0x539   :  { %4264 = vmatprep.mubr.bf16.mxu1 %v2355_v13  ;;  %v3281_v10 = vpop.f32.mrb[113].mxu0 }
 0x53a   :  { %v8822_v21 = vpop.f32.mrb[114].mxu0 }
 0x53b   :  { %v3284_v13 = vpop.f32.mrb[115].mxu0 }
 0x53c   :  { %v1624_v13 = vld [vmem:[%s9708_s1 + $0x360] sm:$0xff] }
 0x540   :  { %4265 = vmatmul.mubr.bf16.gmra.mrb[92].mxu1 %v2354_v24  ;;  %v8836_v45 = vpop.f32.mrb[116].mxu0  ;;  %v2375_v24 = vpack.c.bf16 %v1635_v41, %v1625_v32  ;;  %v2374_v41 = vpack.c.bf16 %v1634_v59, %v1624_v13  ;;  %v1675_v59 = vld [vmem:[%s9708_s1 + $0x4f8] sm:$0xff] }
 0x541   :  { %4272 = vmatprep.mubr.bf16.mxu1 %v2365_v23  ;;  %v3289_v60 = vpop.f32.mrb[117].mxu0 }
 0x542   :  { %v8838_v10 = vpop.f32.mrb[118].mxu0 }
 0x543   :  { %v3292_v23 = vpop.f32.mrb[119].mxu0 }
 0x544   :  { %v1644_v23 = vld [vmem:[%s9708_s1 + $0x400] sm:$0xff] }
 0x548   :  { %4273 = vmatmul.mubr.bf16.gmra.mrb[96].mxu1 %v2364_v1  ;;  %v8852_v32 = vpop.f32.mrb[120].mxu0  ;;  %v2385_v1 = vpack.c.bf16 %v1655_v4, %v1645_v39  ;;  %v2384_v4 = vpack.c.bf16 %v1654_v22, %v1644_v23  ;;  %v1695_v22 = vld [vmem:[%s9708_s1 + $0x598] sm:$0xff] }
 0x549   :  { %4280 = vmatprep.mubr.bf16.mxu1 %v2375_v24  ;;  %v3297_v38 = vpop.f32.mrb[121].mxu0 }
 0x54a   :  { %v8854_v60 = vpop.f32.mrb[122].mxu0 }
 0x54b   :  { %v3300_v24 = vpop.f32.mrb[123].mxu0 }
 0x54c   :  { %v1664_v24 = vld [vmem:[%s9708_s1 + $0x4a0] sm:$0xff] }
 0x550   :  { %4281 = vmatmul.mubr.bf16.gmra.mrb[100].mxu1 %v2374_v41  ;;  %v8868_v39 = vpop.f32.mrb[124].mxu0  ;;  %v2395_v41 = vpack.c.bf16 %v1675_v59, %v1665_v16  ;;  %v2394_v59 = vpack.c.bf16 %v1674_v12, %v1664_v24  ;;  %v1715_v12 = vld [vmem:[%s9708_s1 + $0x638] sm:$0xff] }
 0x551   :  { %4288 = vmatprep.mubr.bf16.mxu1 %v2385_v1  ;;  %v3305_v13 = vpop.f32.mrb[125].mxu0 }
 0x552   :  { %v8870_v38 = vpop.f32.mrb[126].mxu0 }
 0x553   :  { %v3308_v1 = vpop.f32.mrb[127].mxu0 }
 0x554   :  { %v1684_v1 = vld [vmem:[%s9708_s1 + $0x540] sm:$0xff] }
 0x558   :  { %4289 = vmatmul.mubr.bf16.gmra.mrb[104].mxu1 %v2384_v4  ;;  %v8884_v16 = vpop.f32.mrb[128].mxu0  ;;  %v2405_v4 = vpack.c.bf16 %v1695_v22, %v1685_v7  ;;  %v2404_v22 = vpack.c.bf16 %v1694_v3, %v1684_v1  ;;  %v1735_v3 = vld [vmem:[%s9708_s1 + $0x6d8] sm:$0xff] }
 0x559   :  { %4296 = vmatprep.mubr.bf16.mxu1 %v2395_v41  ;;  %v3313_v23 = vpop.f32.mrb[129].mxu0 }
 0x55a   :  { %v8886_v13 = vpop.f32.mrb[130].mxu0 }
 0x55b   :  { %v3316_v41 = vpop.f32.mrb[131].mxu0 }
 0x55c   :  { %v1704_v41 = vld [vmem:[%s9708_s1 + $0x5e0] sm:$0xff] }
 0x560   :  { %4297 = vmatmul.mubr.bf16.gmra.mrb[108].mxu1 %v2394_v59  ;;  %v8900_v7 = vpop.f32.mrb[132].mxu0  ;;  %v2415_v59 = vpack.c.bf16 %v1715_v12, %v1705_v57  ;;  %v2414_v12 = vpack.c.bf16 %v1714_v53, %v1704_v41  ;;  %v1755_v53 = vld [vmem:[%s9708_s1 + $0x778] sm:$0xff] }
 0x561   :  { %4304 = vmatprep.mubr.bf16.mxu1 %v2405_v4  ;;  %v3321_v24 = vpop.f32.mrb[133].mxu0 }
 0x562   :  { %v8902_v23 = vpop.f32.mrb[134].mxu0 }
 0x563   :  { %v3324_v4 = vpop.f32.mrb[135].mxu0 }
 0x564   :  { %v1724_v4 = vld [vmem:[%s9708_s1 + $0x680] sm:$0xff] }
 0x568   :  { %4305 = vmatmul.mubr.bf16.gmra.mrb[112].mxu1 %v2404_v22  ;;  %v8916_v57 = vpop.f32.mrb[136].mxu0  ;;  %v2425_v22 = vpack.c.bf16 %v1735_v3, %v1725_v26  ;;  %v2424_v3 = vpack.c.bf16 %v1734_v31, %v1724_v4  ;;  %v1775_v31 = vld [vmem:[%s9708_s1 + $0x818] sm:$0xff] }
 0x569   :  { %4312 = vmatprep.mubr.bf16.mxu1 %v2415_v59  ;;  %v3329_v1 = vpop.f32.mrb[137].mxu0  ;;  %v2445_v4 = vpack.c.bf16 %v1775_v31, %v1765_v36  ;;  %v1805_v31 = vld [vmem:[%s9708_s1 + $0x908] sm:$0xff] }
 0x56a   :  { %v8918_v24 = vpop.f32.mrb[138].mxu0 }
 0x56b   :  { %v3332_v59 = vpop.f32.mrb[139].mxu0 }
 0x56c   :  { %v1744_v59 = vld [vmem:[%s9708_s1 + $0x720] sm:$0xff] }
 0x570   :  { %4313 = vmatmul.mubr.bf16.gmra.mrb[116].mxu1 %v2414_v12  ;;  %v8932_v26 = vpop.f32.mrb[140].mxu0  ;;  %v2435_v12 = vpack.c.bf16 %v1755_v53, %v1745_v17  ;;  %v2434_v17 = vpack.c.bf16 %v1754_v58, %v1744_v59  ;;  %v1764_v53 = vld [vmem:[%s9708_s1 + $0x7c0] sm:$0xff]  ;;  %v1794_v59 = vld [vmem:[%s9708_s1 + $0x8b0] sm:$0xff] }
 0x571   :  { %4320 = vmatprep.mubr.bf16.mxu1 %v2425_v22  ;;  %v3337_v41 = vpop.f32.mrb[141].mxu0 }
 0x572   :  { %v8934_v1 = vpop.f32.mrb[142].mxu0  ;;  %v1774_v41 = vld [vmem:[%s9708_s1 + $0x810] sm:$0xff] }
 0x573   :  { %v3340_v22 = vpop.f32.mrb[143].mxu0  ;;  %v2444_v58 = vpack.c.bf16 %v1774_v41, %v1764_v53  ;;  %v1804_v41 = vld [vmem:[%s9708_s1 + $0x900] sm:$0xff] }
 0x574   :  { %v1784_v22 = vld [vmem:[%s9708_s1 + $0x860] sm:$0xff] }
 0x578   :  { %4321 = vmatmul.mubr.bf16.gmra.mrb[120].mxu1 %v2424_v3  ;;  %v1785_v3 = vld [vmem:[%s9708_s1 + $0x868] sm:$0xff] }
 0x579   :  { %4328 = vmatprep.mubr.bf16.mxu1 %v2435_v12  ;;  %v1795_v12 = vld [vmem:[%s9708_s1 + $0x8b8] sm:$0xff] }
 0x57a   :  { %v2455_v36 = vpack.c.bf16 %v1795_v12, %v1785_v3  ;;  %v1814_v3 = vld [vmem:[%s9708_s1 + $0x950] sm:$0xff]  ;;  %v1825_v12 = vld [vmem:[%s9708_s1 + $0x9a8] sm:$0xff] }
 0x580   :  { %4329 = vmatmul.mubr.bf16.gmra.mrb[124].mxu1 %v2434_v17  ;;  %v1815_v17 = vld [vmem:[%s9708_s1 + $0x958] sm:$0xff] }
 0x581   :  { %4336 = vmatprep.mubr.bf16.mxu1 %v2445_v4  ;;  %v2454_v4 = vpack.c.bf16 %v1794_v59, %v1784_v22  ;;  %v2465_v53 = vpack.c.bf16 %v1815_v17, %v1805_v31  ;;  %v1824_v59 = vld [vmem:[%s9708_s1 + $0x9a0] sm:$0xff]  ;;  %v1834_v31 = vld [vmem:[%s9708_s1 + $0x9f0] sm:$0xff]  ;;  %v1845_v17 = vld [vmem:[%s9708_s1 + $0xa48] sm:$0xff] }
 0x588   :  { %4337 = vmatmul.mubr.bf16.gmra.mrb[128].mxu1 %v2444_v58  ;;  %v1835_v58 = vld [vmem:[%s9708_s1 + $0x9f8] sm:$0xff] }
 0x589   :  { %4344 = vmatprep.mubr.bf16.mxu1 %v2455_v36  ;;  %v2464_v36 = vpack.c.bf16 %v1814_v3, %v1804_v41  ;;  %v2475_v22 = vpack.c.bf16 %v1835_v58, %v1825_v12  ;;  %v1844_v3 = vld [vmem:[%s9708_s1 + $0xa40] sm:$0xff]  ;;  %v1854_v12 = vld [vmem:[%s9708_s1 + $0xa90] sm:$0xff]  ;;  %v1865_v58 = vld [vmem:[%s9708_s1 + $0xae8] sm:$0xff] }
 0x590   :  { %4345 = vmatmul.mubr.bf16.gmra.mrb[132].mxu1 %v2454_v4  ;;  %v1855_v4 = vld [vmem:[%s9708_s1 + $0xa98] sm:$0xff] }
 0x591   :  { %4352 = vmatprep.mubr.bf16.mxu1 %v2465_v53  ;;  %v2474_v53 = vpack.c.bf16 %v1834_v31, %v1824_v59  ;;  %v2485_v41 = vpack.c.bf16 %v1855_v4, %v1845_v17  ;;  %v1864_v31 = vld [vmem:[%s9708_s1 + $0xae0] sm:$0xff]  ;;  %v1874_v17 = vld [vmem:[%s9708_s1 + $0xb30] sm:$0xff]  ;;  %v1885_v4 = vld [vmem:[%s9708_s1 + $0xb88] sm:$0xff] }
 0x598   :  { %4353 = vmatmul.mubr.bf16.gmra.mrb[136].mxu1 %v2464_v36  ;;  %v1875_v36 = vld [vmem:[%s9708_s1 + $0xb38] sm:$0xff] }
 0x599   :  { %4360 = vmatprep.mubr.bf16.mxu1 %v2475_v22  ;;  %v2484_v22 = vpack.c.bf16 %v1854_v12, %v1844_v3  ;;  %v2495_v59 = vpack.c.bf16 %v1875_v36, %v1865_v58  ;;  %v1884_v12 = vld [vmem:[%s9708_s1 + $0xb80] sm:$0xff]  ;;  %v1894_v58 = vld [vmem:[%s9708_s1 + $0xbd0] sm:$0xff]  ;;  %v1905_v36 = vld [vmem:[%s9708_s1 + $0xc28] sm:$0xff] }
 0x5a0   :  { %4361 = vmatmul.mubr.bf16.gmra.mrb[140].mxu1 %v2474_v53  ;;  %v1895_v53 = vld [vmem:[%s9708_s1 + $0xbd8] sm:$0xff] }
 0x5a1   :  { %4368 = vmatprep.mubr.bf16.mxu1 %v2485_v41  ;;  %v2494_v41 = vpack.c.bf16 %v1874_v17, %v1864_v31  ;;  %v2505_v3 = vpack.c.bf16 %v1895_v53, %v1885_v4  ;;  %v1904_v17 = vld [vmem:[%s9708_s1 + $0xc20] sm:$0xff]  ;;  %v1914_v4 = vld [vmem:[%s9708_s1 + $0xc70] sm:$0xff]  ;;  %v1925_v53 = vld [vmem:[%s9708_s1 + $0xcc8] sm:$0xff] }
 0x5a8   :  { %4369 = vmatmul.mubr.bf16.gmra.mrb[144].mxu1 %v2484_v22  ;;  %v1915_v22 = vld [vmem:[%s9708_s1 + $0xc78] sm:$0xff] }
 0x5a9   :  { %4376 = vmatprep.mubr.bf16.mxu1 %v2495_v59  ;;  %v2504_v59 = vpack.c.bf16 %v1894_v58, %v1884_v12  ;;  %v2515_v31 = vpack.c.bf16 %v1915_v22, %v1905_v36  ;;  %v1924_v58 = vld [vmem:[%s9708_s1 + $0xcc0] sm:$0xff]  ;;  %v1934_v36 = vld [vmem:[%s9708_s1 + $0xd10] sm:$0xff]  ;;  %v1945_v22 = vld [vmem:[%s9708_s1 + $0xd68] sm:$0xff] }
 0x5b0   :  { %4377 = vmatmul.mubr.bf16.gmra.mrb[148].mxu1 %v2494_v41  ;;  %v1935_v41 = vld [vmem:[%s9708_s1 + $0xd18] sm:$0xff] }
 0x5b1   :  { %4384 = vmatprep.mubr.bf16.mxu1 %v2505_v3  ;;  %v2514_v3 = vpack.c.bf16 %v1914_v4, %v1904_v17  ;;  %v2525_v12 = vpack.c.bf16 %v1935_v41, %v1925_v53  ;;  %v1944_v4 = vld [vmem:[%s9708_s1 + $0xd60] sm:$0xff]  ;;  %v1954_v53 = vld [vmem:[%s9708_s1 + $0xdb0] sm:$0xff]  ;;  %v1965_v41 = vld [vmem:[%s9708_s1 + $0xe08] sm:$0xff] }
 0x5b8   :  { %4385 = vmatmul.mubr.bf16.gmra.mrb[152].mxu1 %v2504_v59  ;;  %v1955_v59 = vld [vmem:[%s9708_s1 + $0xdb8] sm:$0xff] }
 0x5b9   :  { %4392 = vmatprep.mubr.bf16.mxu1 %v2515_v31  ;;  %v2524_v31 = vpack.c.bf16 %v1934_v36, %v1924_v58  ;;  %v2535_v17 = vpack.c.bf16 %v1955_v59, %v1945_v22  ;;  %v1964_v36 = vld [vmem:[%s9708_s1 + $0xe00] sm:$0xff]  ;;  %v1974_v22 = vld [vmem:[%s9708_s1 + $0xe50] sm:$0xff]  ;;  %v1985_v59 = vld [vmem:[%s9708_s1 + $0xea8] sm:$0xff] }
 0x5c0   :  { %4393 = vmatmul.mubr.bf16.gmra.mrb[156].mxu1 %v2514_v3  ;;  %v1975_v3 = vld [vmem:[%s9708_s1 + $0xe58] sm:$0xff] }
 0x5c1   :  { %4400 = vmatprep.mubr.bf16.mxu1 %v2525_v12  ;;  %v2534_v12 = vpack.c.bf16 %v1954_v53, %v1944_v4  ;;  %v2545_v58 = vpack.c.bf16 %v1975_v3, %v1965_v41  ;;  %v1984_v53 = vld [vmem:[%s9708_s1 + $0xea0] sm:$0xff]  ;;  %v1994_v41 = vld [vmem:[%s9708_s1 + $0xef0] sm:$0xff]  ;;  %v2005_v3 = vld [vmem:[%s9708_s1 + $0xf48] sm:$0xff] }
 0x5c8   :  { %4401 = vmatmul.mubr.bf16.gmra.mrb[0].mxu1 %v2524_v31  ;;  %v1995_v31 = vld [vmem:[%s9708_s1 + $0xef8] sm:$0xff] }
 0x5c9   :  { %4408 = vmatprep.mubr.bf16.mxu1 %v2535_v17  ;;  %v2544_v17 = vpack.c.bf16 %v1974_v22, %v1964_v36  ;;  %v2555_v4 = vpack.c.bf16 %v1995_v31, %v1985_v59  ;;  %v2004_v22 = vld [vmem:[%s9708_s1 + $0xf40] sm:$0xff]  ;;  %v2014_v59 = vld [vmem:[%s9708_s1 + $0xf90] sm:$0xff]  ;;  %v2025_v31 = vld [vmem:[%s9708_s1 + $0xfe8] sm:$0xff] }
 0x5d0   :  { %4409 = vmatmul.mubr.bf16.gmra.mrb[4].mxu1 %v2534_v12  ;;  %v2015_v12 = vld [vmem:[%s9708_s1 + $0xf98] sm:$0xff] }
 0x5d1   :  { %4416 = vmatprep.mubr.bf16.mxu1 %v2545_v58  ;;  %v2554_v58 = vpack.c.bf16 %v1994_v41, %v1984_v53  ;;  %v2565_v36 = vpack.c.bf16 %v2015_v12, %v2005_v3  ;;  %v2024_v41 = vld [vmem:[%s9708_s1 + $0xfe0] sm:$0xff]  ;;  %v2034_v3 = vld [vmem:[%s9708_s1 + $0x1030] sm:$0xff]  ;;  %v2045_v12 = vld [vmem:[%s9708_s1 + $0x1088] sm:$0xff] }
 0x5d8   :  { %4417 = vmatmul.mubr.bf16.gmra.mrb[8].mxu1 %v2544_v17  ;;  %v2035_v17 = vld [vmem:[%s9708_s1 + $0x1038] sm:$0xff] }
 0x5d9   :  { %4424 = vmatprep.mubr.bf16.mxu1 %v2555_v4  ;;  %v2564_v4 = vpack.c.bf16 %v2014_v59, %v2004_v22  ;;  %v2575_v53 = vpack.c.bf16 %v2035_v17, %v2025_v31  ;;  %v2044_v59 = vld [vmem:[%s9708_s1 + $0x1080] sm:$0xff]  ;;  %v2054_v31 = vld [vmem:[%s9708_s1 + $0x10d0] sm:$0xff]  ;;  %v2065_v17 = vld [vmem:[%s9708_s1 + $0x1128] sm:$0xff] }
 0x5e0   :  { %4425 = vmatmul.mubr.bf16.gmra.mrb[12].mxu1 %v2554_v58  ;;  %v2055_v58 = vld [vmem:[%s9708_s1 + $0x10d8] sm:$0xff] }
 0x5e1   :  { %4432 = vmatprep.mubr.bf16.mxu1 %v2565_v36  ;;  %v2574_v36 = vpack.c.bf16 %v2034_v3, %v2024_v41  ;;  %v2585_v22 = vpack.c.bf16 %v2055_v58, %v2045_v12  ;;  %v2064_v3 = vld [vmem:[%s9708_s1 + $0x1120] sm:$0xff]  ;;  %v2074_v12 = vld [vmem:[%s9708_s1 + $0x1170] sm:$0xff]  ;;  %v2085_v58 = vld [vmem:[%s9708_s1 + $0x11c8] sm:$0xff] }
 0x5e8   :  { %4433 = vmatmul.mubr.bf16.gmra.mrb[16].mxu1 %v2564_v4  ;;  %v2075_v4 = vld [vmem:[%s9708_s1 + $0x1178] sm:$0xff] }
 0x5e9   :  { %4440 = vmatprep.mubr.bf16.mxu1 %v2575_v53  ;;  %v2584_v53 = vpack.c.bf16 %v2054_v31, %v2044_v59  ;;  %v2595_v41 = vpack.c.bf16 %v2075_v4, %v2065_v17  ;;  %v2594_v17 = vpack.c.bf16 %v2074_v12, %v2064_v3  ;;  %v2094_v3 = vld [vmem:[%s9708_s1 + $0x1210] sm:$0xff] }
 0x5f0   :  { %4441 = vmatmul.mubr.bf16.gmra.mrb[20].mxu1 %v2574_v36  ;;  %v2095_v36 = vld [vmem:[%s9708_s1 + $0x1218] sm:$0xff] }
 0x5f1   :  { %4448 = vmatprep.mubr.bf16.mxu1 %v2585_v22 }
 0x5f8   :  { %4449 = vmatmul.mubr.bf16.gmra.mrb[24].mxu1 %v2584_v53  ;;  %v2605_v53 = vpack.c.bf16 %v2095_v36, %v2085_v58 }
 0x5f9   :  { %4456 = vmatprep.mubr.bf16.mxu1 %v2595_v41 }
 0x5fb   :  { %v4242_v22 = vpop.f32.mrb[80].mxu1 }
 0x5fc   :  { %v4779_v59 = vadd.f32 %v4242_v22, %v8628_v55  ;;  %v4244_v31 = vpop.f32.mrb[81].mxu1  ;;  %v2084_v55 = vld [vmem:[%s9708_s1 + $0x11c0] sm:$0xff] }
 0x5fd   :  { %v4245_v4 = vpop.f32.mrb[82].mxu1  ;;  %v2604_v22 = vpack.c.bf16 %v2094_v3, %v2084_v55 }
 0x5fe   :  { %4562 = vst.msk [vmem:[%s9709_s4] sm:$0xff] %vm4561_vm2, %v4779_v59  ;;  %v4780_v41 = vadd.f32 %v4245_v4, %v8630_v43  ;;  %v4247_v29 = vpop.f32.mrb[83].mxu1  ;;  %v2105_v43 = vld [vmem:[%s9708_s1 + $0x1268] sm:$0xff] }
 0x5ff   :  { %v2115_v29 = vld [vmem:[%s9708_s1 + $0x12b8] sm:$0xff] }
 0x600   :  { %4563 = vst.msk [vmem:[%s9709_s4 + $0x8] sm:$0xff] %vm4561_vm2, %v4780_v41  ;;  %4457 = vmatmul.mubr.bf16.gmra.mrb[28].mxu1 %v2594_v17  ;;  %v2615_v31 = vpack.c.bf16 %v2115_v29, %v2105_v43  ;;  %v2135_v41 = vld [vmem:[%s9708_s1 + $0x1358] sm:$0xff] }
 0x601   :  { %4464 = vmatprep.mubr.bf16.mxu1 %v2605_v53  ;;  %v2114_v53 = vld [vmem:[%s9708_s1 + $0x12b0] sm:$0xff] }
 0x603   :  { %v4250_v12 = vpop.f32.mrb[84].mxu1 }
 0x604   :  { %v4781_v58 = vadd.f32 %v4250_v12, %v8644_v0  ;;  %v4252_v36 = vpop.f32.mrb[85].mxu1  ;;  %v2104_v0 = vld [vmem:[%s9708_s1 + $0x1260] sm:$0xff] }
 0x605   :  { %v4253_v59 = vpop.f32.mrb[86].mxu1  ;;  %v2614_v29 = vpack.c.bf16 %v2114_v53, %v2104_v0 }
 0x606   :  { %4564 = vst.msk [vmem:[%s9709_s4 + $0x10] sm:$0xff] %vm4561_vm2, %v4781_v58  ;;  %v4782_v17 = vadd.f32 %v4253_v59, %v8646_v27  ;;  %v4255_v4 = vpop.f32.mrb[87].mxu1  ;;  %v2125_v27 = vld [vmem:[%s9708_s1 + $0x1308] sm:$0xff]  ;;  %v2134_v59 = vld [vmem:[%s9708_s1 + $0x1350] sm:$0xff] }
 0x607   :  { %v2625_v58 = vpack.c.bf16 %v2135_v41, %v2125_v27 }
 0x608   :  { %4565 = vst.msk [vmem:[%s9709_s4 + $0x18] sm:$0xff] %vm4561_vm2, %v4782_v17  ;;  %4465 = vmatmul.mubr.bf16.gmra.mrb[32].mxu1 %v2604_v22 }
 0x609   :  { %4472 = vmatprep.mubr.bf16.mxu1 %v2615_v31  ;;  %v2155_v31 = vld [vmem:[%s9708_s1 + $0x13f8] sm:$0xff] }
 0x60b   :  { %v4258_v55 = vpop.f32.mrb[88].mxu1 }
 0x60c   :  { %v4783_v3 = vadd.f32 %v4258_v55, %v8660_v40  ;;  %v4260_v43 = vpop.f32.mrb[89].mxu1  ;;  %v2124_v40 = vld [vmem:[%s9708_s1 + $0x1300] sm:$0xff] }
 0x60d   :  { %v4261_v12 = vpop.f32.mrb[90].mxu1  ;;  %v2624_v53 = vpack.c.bf16 %v2134_v59, %v2124_v40  ;;  %v2154_v43 = vld [vmem:[%s9708_s1 + $0x13f0] sm:$0xff] }
 0x60e   :  { %4566 = vst.msk [vmem:[%s9709_s4 + $0x20] sm:$0xff] %vm4561_vm2, %v4783_v3  ;;  %v4784_v36 = vadd.f32 %v4261_v12, %v8662_v52  ;;  %v4263_v22 = vpop.f32.mrb[91].mxu1  ;;  %v2145_v52 = vld [vmem:[%s9708_s1 + $0x13a8] sm:$0xff] }
 0x60f   :  { %v2635_v41 = vpack.c.bf16 %v2155_v31, %v2145_v52 }
 0x610   :  { %4567 = vst.msk [vmem:[%s9709_s4 + $0x28] sm:$0xff] %vm4561_vm2, %v4784_v36  ;;  %4473 = vmatmul.mubr.bf16.gmra.mrb[36].mxu1 %v2614_v29  ;;  %v2175_v29 = vld [vmem:[%s9708_s1 + $0x1498] sm:$0xff] }
 0x611   :  { %4480 = vmatprep.mubr.bf16.mxu1 %v2625_v58 }
 0x613   :  { %v4266_v17 = vpop.f32.mrb[92].mxu1 }
 0x614   :  { %v4785_v4 = vadd.f32 %v4266_v17, %v8676_v14  ;;  %v4268_v0 = vpop.f32.mrb[93].mxu1  ;;  %v2144_v14 = vld [vmem:[%s9708_s1 + $0x13a0] sm:$0xff]  ;;  %v2174_v17 = vld [vmem:[%s9708_s1 + $0x1490] sm:$0xff] }
 0x615   :  { %v4269_v27 = vpop.f32.mrb[94].mxu1  ;;  %v2634_v22 = vpack.c.bf16 %v2154_v43, %v2144_v14 }
 0x616   :  { %4568 = vst.msk [vmem:[%s9709_s4 + $0x30] sm:$0xff] %vm4561_vm2, %v4785_v4  ;;  %v4786_v55 = vadd.f32 %v4269_v27, %v8678_v49  ;;  %v4271_v3 = vpop.f32.mrb[95].mxu1  ;;  %v2165_v49 = vld [vmem:[%s9708_s1 + $0x1448] sm:$0xff]  ;;  %v2195_v4 = vld [vmem:[%s9708_s1 + $0x1538] sm:$0xff] }
 0x617   :  { %v2645_v59 = vpack.c.bf16 %v2175_v29, %v2165_v49  ;;  %v2194_v49 = vld [vmem:[%s9708_s1 + $0x1530] sm:$0xff]  ;;  %v2215_v29 = vld [vmem:[%s9708_s1 + $0x15d8] sm:$0xff] }
 0x618   :  { %4569 = vst.msk [vmem:[%s9709_s4 + $0x38] sm:$0xff] %vm4561_vm2, %v4786_v55  ;;  %4481 = vmatmul.mubr.bf16.gmra.mrb[40].mxu1 %v2624_v53 }
 0x619   :  { %4488 = vmatprep.mubr.bf16.mxu1 %v2635_v41 }
 0x61b   :  { %v4274_v12 = vpop.f32.mrb[96].mxu1 }
 0x61c   :  { %v4787_v58 = vadd.f32 %v4274_v12, %v8692_v44  ;;  %v4276_v36 = vpop.f32.mrb[97].mxu1  ;;  %v2164_v44 = vld [vmem:[%s9708_s1 + $0x1440] sm:$0xff] }
 0x61d   :  { %v4277_v40 = vpop.f32.mrb[98].mxu1  ;;  %v2644_v41 = vpack.c.bf16 %v2174_v17, %v2164_v44  ;;  %v2214_v44 = vld [vmem:[%s9708_s1 + $0x15d0] sm:$0xff]  ;;  %v2235_v17 = vld [vmem:[%s9708_s1 + $0x1678] sm:$0xff] }
 0x61e   :  { %4570 = vst.msk [vmem:[%s9709_s4 + $0x40] sm:$0xff] %vm4561_vm2, %v4787_v58  ;;  %v4788_v52 = vadd.f32 %v4277_v40, %v8694_v2  ;;  %v4279_v31 = vpop.f32.mrb[99].mxu1  ;;  %v2185_v2 = vld [vmem:[%s9708_s1 + $0x14e8] sm:$0xff] }
 0x61f   :  { %v2655_v3 = vpack.c.bf16 %v2195_v4, %v2185_v2 }
 0x620   :  { %4571 = vst.msk [vmem:[%s9709_s4 + $0x48] sm:$0xff] %vm4561_vm2, %v4788_v52  ;;  %4489 = vmatmul.mubr.bf16.gmra.mrb[44].mxu1 %v2634_v22 }
 0x621   :  { %4496 = vmatprep.mubr.bf16.mxu1 %v2645_v59 }
 0x623   :  { %v4282_v0 = vpop.f32.mrb[100].mxu1 }
 0x624   :  { %v4789_v53 = vadd.f32 %v4282_v0, %v8708_v47  ;;  %v4284_v27 = vpop.f32.mrb[101].mxu1  ;;  %v2184_v47 = vld [vmem:[%s9708_s1 + $0x14e0] sm:$0xff] }
 0x625   :  { %v4285_v55 = vpop.f32.mrb[102].mxu1  ;;  %v2654_v22 = vpack.c.bf16 %v2194_v49, %v2184_v47 }
 0x626   :  { %4572 = vst.msk [vmem:[%s9709_s4 + $0x50] sm:$0xff] %vm4561_vm2, %v4789_v53  ;;  %v4790_v14 = vadd.f32 %v4285_v55, %v8710_v61  ;;  %v4287_v43 = vpop.f32.mrb[103].mxu1  ;;  %v2205_v61 = vld [vmem:[%s9708_s1 + $0x1588] sm:$0xff] }
 0x627   :  { %v2665_v59 = vpack.c.bf16 %v2215_v29, %v2205_v61  ;;  %v2255_v43 = vld [vmem:[%s9708_s1 + $0x1718] sm:$0xff] }
 0x628   :  { %4573 = vst.msk [vmem:[%s9709_s4 + $0x58] sm:$0xff] %vm4561_vm2, %v4790_v14  ;;  %4497 = vmatmul.mubr.bf16.gmra.mrb[48].mxu1 %v2644_v41  ;;  %v2234_v14 = vld [vmem:[%s9708_s1 + $0x1670] sm:$0xff] }
 0x629   :  { %4504 = vmatprep.mubr.bf16.mxu1 %v2655_v3 }
 0x62b   :  { %v4290_v12 = vpop.f32.mrb[104].mxu1 }
 0x62c   :  { %v4791_v58 = vadd.f32 %v4290_v12, %v8724_v56  ;;  %v4292_v36 = vpop.f32.mrb[105].mxu1  ;;  %v2204_v56 = vld [vmem:[%s9708_s1 + $0x1580] sm:$0xff] }
 0x62d   :  { %v4293_v40 = vpop.f32.mrb[106].mxu1  ;;  %v2664_v53 = vpack.c.bf16 %v2214_v44, %v2204_v56 }
 0x62e   :  { %4574 = vst.msk [vmem:[%s9709_s4 + $0x60] sm:$0xff] %vm4561_vm2, %v4791_v58  ;;  %v4792_v52 = vadd.f32 %v4293_v40, %v8726_v35  ;;  %v4295_v31 = vpop.f32.mrb[107].mxu1  ;;  %v2225_v35 = vld [vmem:[%s9708_s1 + $0x1628] sm:$0xff]  ;;  %v2254_v40 = vld [vmem:[%s9708_s1 + $0x1710] sm:$0xff] }
 0x62f   :  { %v2675_v41 = vpack.c.bf16 %v2235_v17, %v2225_v35 }
 0x630   :  { %4575 = vst.msk [vmem:[%s9709_s4 + $0x68] sm:$0xff] %vm4561_vm2, %v4792_v52  ;;  %4505 = vmatmul.mubr.bf16.gmra.mrb[52].mxu1 %v2654_v22 }
 0x631   :  { %4512 = vmatprep.mubr.bf16.mxu1 %v2665_v59  ;;  %v2275_v59 = vld [vmem:[%s9708_s1 + $0x17b8] sm:$0xff] }
 0x633   :  { %v4298_v2 = vpop.f32.mrb[108].mxu1 }
 0x634   :  { %v4793_v4 = vadd.f32 %v4298_v2, %v8740_v63  ;;  %v4300_v0 = vpop.f32.mrb[109].mxu1  ;;  %v2224_v63 = vld [vmem:[%s9708_s1 + $0x1620] sm:$0xff] }
 0x635   :  { %v4301_v27 = vpop.f32.mrb[110].mxu1  ;;  %v2674_v29 = vpack.c.bf16 %v2234_v14, %v2224_v63  ;;  %v2274_v0 = vld [vmem:[%s9708_s1 + $0x17b0] sm:$0xff] }
 0x636   :  { %4576 = vst.msk [vmem:[%s9709_s4 + $0x70] sm:$0xff] %vm4561_vm2, %v4793_v4  ;;  %v4794_v55 = vadd.f32 %v4301_v27, %v8742_v11  ;;  %v4303_v3 = vpop.f32.mrb[111].mxu1  ;;  %v2245_v11 = vld [vmem:[%s9708_s1 + $0x16c8] sm:$0xff] }
 0x637   :  { %v2685_v58 = vpack.c.bf16 %v2255_v43, %v2245_v11 }
 0x638   :  { %4577 = vst.msk [vmem:[%s9709_s4 + $0x78] sm:$0xff] %vm4561_vm2, %v4794_v55  ;;  %4513 = vmatmul.mubr.bf16.gmra.mrb[56].mxu1 %v2664_v53  ;;  %v2295_v53 = vld [vmem:[%s9708_s1 + $0x1858] sm:$0xff] }
 0x639   :  { %4520 = vmatprep.mubr.bf16.mxu1 %v2675_v41 }
 0x63b   :  { %v4306_v47 = vpop.f32.mrb[112].mxu1 }
 0x63c   :  { %v4795_v49 = vadd.f32 %v4306_v47, %v8756_v18  ;;  %v4308_v61 = vpop.f32.mrb[113].mxu1  ;;  %v2244_v18 = vld [vmem:[%s9708_s1 + $0x16c0] sm:$0xff]  ;;  %v2294_v47 = vld [vmem:[%s9708_s1 + $0x1850] sm:$0xff] }
 0x63d   :  { %v4309_v12 = vpop.f32.mrb[114].mxu1  ;;  %v2684_v44 = vpack.c.bf16 %v2254_v40, %v2244_v18 }
 0x63e   :  { %4578 = vst.msk [vmem:[%s9709_s4 + $0x80] sm:$0xff] %vm4561_vm2, %v4795_v49  ;;  %v4796_v36 = vadd.f32 %v4309_v12, %v8758_v5  ;;  %v4311_v22 = vpop.f32.mrb[115].mxu1  ;;  %v2265_v5 = vld [vmem:[%s9708_s1 + $0x1768] sm:$0xff]  ;;  %v2315_v49 = vld [vmem:[%s9708_s1 + $0x18f8] sm:$0xff] }
 0x63f   :  { %v2695_v17 = vpack.c.bf16 %v2275_v59, %v2265_v5  ;;  %v2314_v5 = vld [vmem:[%s9708_s1 + $0x18f0] sm:$0xff] }
 0x640   :  { %4579 = vst.msk [vmem:[%s9709_s4 + $0x88] sm:$0xff] %vm4561_vm2, %v4796_v36  ;;  %4521 = vmatmul.mubr.bf16.gmra.mrb[60].mxu1 %v2674_v29 }
 0x641   :  { %4528 = vmatprep.mubr.bf16.mxu1 %v2685_v58 }
 0x643   :  { %v4314_v52 = vpop.f32.mrb[116].mxu1 }
 0x644   :  { %v4797_v31 = vadd.f32 %v4314_v52, %v8772_v46  ;;  %v4316_v56 = vpop.f32.mrb[117].mxu1  ;;  %v2264_v46 = vld [vmem:[%s9708_s1 + $0x1760] sm:$0xff] }
 0x645   :  { %v4317_v35 = vpop.f32.mrb[118].mxu1  ;;  %v2694_v3 = vpack.c.bf16 %v2274_v0, %v2264_v46 }
 0x646   :  { %4580 = vst.msk [vmem:[%s9709_s4 + $0x90] sm:$0xff] %vm4561_vm2, %v4797_v31  ;;  %v4798_v2 = vadd.f32 %v4317_v35, %v8774_v54  ;;  %v4319_v4 = vpop.f32.mrb[119].mxu1  ;;  %v2285_v54 = vld [vmem:[%s9708_s1 + $0x1808] sm:$0xff] }
 0x647   :  { %v2705_v14 = vpack.c.bf16 %v2295_v53, %v2285_v54 }
 0x648   :  { %4581 = vst.msk [vmem:[%s9709_s4 + $0x98] sm:$0xff] %vm4561_vm2, %v4798_v2  ;;  %4529 = vmatmul.mubr.bf16.gmra.mrb[64].mxu1 %v2684_v44 }
 0x649   :  { %4536 = vmatprep.mubr.bf16.mxu1 %v2695_v17 }
 0x64b   :  { %v4322_v27 = vpop.f32.mrb[120].mxu1 }
 0x64c   :  { %v4799_v41 = vadd.f32 %v4322_v27, %v8788_v6  ;;  %v4324_v55 = vpop.f32.mrb[121].mxu1  ;;  %v2284_v6 = vld [vmem:[%s9708_s1 + $0x1800] sm:$0xff] }
 0x64d   :  { %v4325_v63 = vpop.f32.mrb[122].mxu1  ;;  %v2704_v58 = vpack.c.bf16 %v2294_v47, %v2284_v6 }
 0x64e   :  { %4582 = vst.msk [vmem:[%s9709_s4 + $0xa0] sm:$0xff] %vm4561_vm2, %v4799_v41  ;;  %v4800_v11 = vadd.f32 %v4325_v63, %v8790_v30  ;;  %v4327_v43 = vpop.f32.mrb[123].mxu1  ;;  %v2305_v30 = vld [vmem:[%s9708_s1 + $0x18a8] sm:$0xff] }
 0x64f   :  { %v2715_v22 = vpack.c.bf16 %v2315_v49, %v2305_v30 }
 0x650   :  { %4583 = vst.msk [vmem:[%s9709_s4 + $0xa8] sm:$0xff] %vm4561_vm2, %v4800_v11  ;;  %4537 = vmatmul.mubr.bf16.gmra.mrb[68].mxu1 %v2694_v3 }
 0x651   :  { %4544 = vmatprep.mubr.bf16.mxu1 %v2705_v14 }
 0x653   :  { %v4330_v61 = vpop.f32.mrb[124].mxu1 }
 0x654   :  { %v4801_v29 = vadd.f32 %v4330_v61, %v8804_v34  ;;  %v4332_v12 = vpop.f32.mrb[125].mxu1  ;;  %v2304_v34 = vld [vmem:[%s9708_s1 + $0x18a0] sm:$0xff] }
 0x655   :  { %v4333_v36 = vpop.f32.mrb[126].mxu1  ;;  %v2714_v31 = vpack.c.bf16 %v2314_v5, %v2304_v34 }
 0x656   :  { %4584 = vst.msk [vmem:[%s9709_s4 + $0xb0] sm:$0xff] %vm4561_vm2, %v4801_v29  ;;  %v4802_v18 = vadd.f32 %v4333_v36, %v8806_v20  ;;  %v4335_v40 = vpop.f32.mrb[127].mxu1 }
 0x658   :  { %4585 = vst.msk [vmem:[%s9709_s4 + $0xb8] sm:$0xff] %vm4561_vm2, %v4802_v18  ;;  %4545 = vmatmul.mubr.bf16.gmra.mrb[72].mxu1 %v2704_v58 }
 0x659   :  { %4552 = vmatprep.mubr.bf16.mxu1 %v2715_v22 }
 0x65b   :  { %v4338_v59 = vpop.f32.mrb[128].mxu1 }
 0x65c   :  { %v4803_v52 = vadd.f32 %v4338_v59, %v8820_v33  ;;  %v4340_v20 = vpop.f32.mrb[129].mxu1 }
 0x65d   :  { %v4341_v56 = vpop.f32.mrb[130].mxu1 }
 0x65e   :  { %4586 = vst.msk [vmem:[%s9709_s4 + $0xc0] sm:$0xff] %vm4561_vm2, %v4803_v52  ;;  %v4804_v44 = vadd.f32 %v4341_v56, %v8822_v21  ;;  %v4343_v35 = vpop.f32.mrb[131].mxu1 }
 0x660   :  { %4587 = vst.msk [vmem:[%s9709_s4 + $0xc8] sm:$0xff] %vm4561_vm2, %v4804_v44  ;;  %4553 = vmatmul.mubr.bf16.gmra.mrb[76].mxu1 %v2714_v31 }
 0x663   :  { %v4346_v17 = vpop.f32.mrb[132].mxu1 }
 0x664   :  { %v4805_v33 = vadd.f32 %v4346_v17, %v8836_v45  ;;  %v4348_v2 = vpop.f32.mrb[133].mxu1 }
 0x665   :  { %v4349_v4 = vpop.f32.mrb[134].mxu1 }
 0x666   :  { %4588 = vst.msk [vmem:[%s9709_s4 + $0xd0] sm:$0xff] %vm4561_vm2, %v4805_v33  ;;  %v4806_v46 = vadd.f32 %v4349_v4, %v8838_v10  ;;  %v4351_v21 = vpop.f32.mrb[135].mxu1 }
 0x668   :  { %4589 = vst.msk [vmem:[%s9709_s4 + $0xd8] sm:$0xff] %vm4561_vm2, %v4806_v46 }
 0x66b   :  { %v4354_v0 = vpop.f32.mrb[136].mxu1 }
 0x66c   :  { %v4807_v54 = vadd.f32 %v4354_v0, %v8852_v32  ;;  %v4356_v53 = vpop.f32.mrb[137].mxu1 }
 0x66d   :  { %v4357_v45 = vpop.f32.mrb[138].mxu1 }
 0x66e   :  { %4590 = vst.msk [vmem:[%s9709_s4 + $0xe0] sm:$0xff] %vm4561_vm2, %v4807_v54  ;;  %v4808_v27 = vadd.f32 %v4357_v45, %v8854_v60  ;;  %v4359_v41 = vpop.f32.mrb[139].mxu1  ;;  %v4644_v45 = vld [vmem:[%s9710_s3 + $0x10] sm:$0xff] }
 0x66f   :  { %4648 = vst.msk [vmem:[%s9709_s4 + $0x290] sm:$0xff] %vm4561_vm2, %v4644_v45 }
 0x670   :  { %4591 = vst.msk [vmem:[%s9709_s4 + $0xe8] sm:$0xff] %vm4561_vm2, %v4808_v27 }
 0x673   :  { %v4362_v10 = vpop.f32.mrb[140].mxu1 }
 0x674   :  { %v4809_v55 = vadd.f32 %v4362_v10, %v8868_v39  ;;  %v4364_v3 = vpop.f32.mrb[141].mxu1 }
 0x675   :  { %v4365_v32 = vpop.f32.mrb[142].mxu1 }
 0x676   :  { %4592 = vst.msk [vmem:[%s9709_s4 + $0xf0] sm:$0xff] %vm4561_vm2, %v4809_v55  ;;  %v4810_v63 = vadd.f32 %v4365_v32, %v8870_v38  ;;  %v4367_v14 = vpop.f32.mrb[143].mxu1 }
 0x678   :  { %4593 = vst.msk [vmem:[%s9709_s4 + $0xf8] sm:$0xff] %vm4561_vm2, %v4810_v63 }
 0x67b   :  { %v4370_v60 = vpop.f32.mrb[144].mxu1 }
 0x67c   :  { %v4811_v11 = vadd.f32 %v4370_v60, %v8884_v16  ;;  %v4372_v43 = vpop.f32.mrb[145].mxu1 }
 0x67d   :  { %v4373_v39 = vpop.f32.mrb[146].mxu1 }
 0x67e   :  { %4594 = vst.msk [vmem:[%s9709_s4 + $0x100] sm:$0xff] %vm4561_vm2, %v4811_v11  ;;  %v4812_v6 = vadd.f32 %v4373_v39, %v8886_v13  ;;  %v4375_v47 = vpop.f32.mrb[147].mxu1  ;;  %v9739_v39 = vld [vmem:[#allocation2_spill] sm:$0xff] }
 0x680   :  { %4595 = vst.msk [vmem:[%s9709_s4 + $0x108] sm:$0xff] %vm4561_vm2, %v4812_v6 }
 0x683   :  { %v4378_v38 = vpop.f32.mrb[148].mxu1 }
 0x684   :  { %v4813_v30 = vadd.f32 %v4378_v38, %v8900_v7  ;;  %v4380_v49 = vpop.f32.mrb[149].mxu1  ;;  %v9740_v38 = vld [vmem:[#allocation3_spill] sm:$0xff] }
 0x685   :  { %v4381_v16 = vpop.f32.mrb[150].mxu1 }
 0x686   :  { %4596 = vst.msk [vmem:[%s9709_s4 + $0x110] sm:$0xff] %vm4561_vm2, %v4813_v30  ;;  %v4814_v61 = vadd.f32 %v4381_v16, %v8902_v23  ;;  %v4383_v29 = vpop.f32.mrb[151].mxu1  ;;  %v9741_v16 = vld [vmem:[#allocation4_spill] sm:$0xff] }
 0x688   :  { %4597 = vst.msk [vmem:[%s9709_s4 + $0x118] sm:$0xff] %vm4561_vm2, %v4814_v61 }
 0x68b   :  { %v4386_v13 = vpop.f32.mrb[152].mxu1 }
 0x68c   :  { %v4815_v12 = vadd.f32 %v4386_v13, %v8916_v57  ;;  %v4388_v58 = vpop.f32.mrb[153].mxu1 }
 0x68d   :  { %v4389_v7 = vpop.f32.mrb[154].mxu1 }
 0x68e   :  { %4598 = vst.msk [vmem:[%s9709_s4 + $0x120] sm:$0xff] %vm4561_vm2, %v4815_v12  ;;  %v4816_v36 = vadd.f32 %v4389_v7, %v8918_v24  ;;  %v4391_v22 = vpop.f32.mrb[155].mxu1  ;;  %v9742_v12 = vld [vmem:[#allocation5_spill] sm:$0xff] }
 0x68f   :  { %v9743_v22 = vld [vmem:[#allocation6_spill] sm:$0xff] }
 0x690   :  { %4599 = vst.msk [vmem:[%s9709_s4 + $0x128] sm:$0xff] %vm4561_vm2, %v4816_v36 }
 0x693   :  { %v4394_v23 = vpop.f32.mrb[156].mxu1 }
 0x694   :  { %v4817_v18 = vadd.f32 %v4394_v23, %v8932_v26  ;;  %v4396_v40 = vpop.f32.mrb[157].mxu1 }
 0x695   :  { %v4397_v57 = vpop.f32.mrb[158].mxu1 }
 0x696   :  { %4600 = vst.msk [vmem:[%s9709_s4 + $0x130] sm:$0xff] %vm4561_vm2, %v4817_v18  ;;  %v4818_v34 = vadd.f32 %v4397_v57, %v8934_v1  ;;  %v4399_v5 = vpop.f32.mrb[159].mxu1  ;;  %v9744_v57 = vld [vmem:[#allocation7_spill] sm:$0xff] }
 0x698   :  { %4601 = vst.msk [vmem:[%s9709_s4 + $0x138] sm:$0xff] %vm4561_vm2, %v4818_v34 }
 0x69b   :  { %v4402_v24 = vpop.f32.mrb[0].mxu1 }
 0x69c   :  { %v4819_v59 = vadd.f32 %v4402_v24, %v8389_v37  ;;  %v4404_v52 = vpop.f32.mrb[1].mxu1 }
 0x69d   :  { %v4405_v26 = vpop.f32.mrb[2].mxu1 }
 0x69e   :  { %4602 = vst.msk [vmem:[%s9709_s4 + $0x140] sm:$0xff] %vm4561_vm2, %v4819_v59  ;;  %v4820_v20 = vadd.f32 %v4405_v26, %v8400_v51  ;;  %v4407_v31 = vpop.f32.mrb[3].mxu1  ;;  %v9745_v59 = vld [vmem:[#allocation8_spill] sm:$0xff] }
 0x69f   :  { %v9746_v31 = vld [vmem:[#allocation9_spill] sm:$0xff] }
 0x6a0   :  { %4603 = vst.msk [vmem:[%s9709_s4 + $0x148] sm:$0xff] %vm4561_vm2, %v4820_v20 }
 0x6a3   :  { %v4410_v1 = vpop.f32.mrb[4].mxu1 }
 0x6a4   :  { %v4821_v56 = vadd.f32 %v4410_v1, %v8408_v42  ;;  %v4412_v44 = vpop.f32.mrb[5].mxu1 }
 0x6a5   :  { %v4413_v37 = vpop.f32.mrb[6].mxu1 }
 0x6a6   :  { %4604 = vst.msk [vmem:[%s9709_s4 + $0x150] sm:$0xff] %vm4561_vm2, %v4821_v56  ;;  %v4822_v35 = vadd.f32 %v4413_v37, %v8410_v48  ;;  %v4415_v17 = vpop.f32.mrb[7].mxu1  ;;  %v9747_v37 = vld [vmem:[#allocation10_spill] sm:$0xff] }
 0x6a8   :  { %4605 = vst.msk [vmem:[%s9709_s4 + $0x158] sm:$0xff] %vm4561_vm2, %v4822_v35 }
 0x6ab   :  { %v4418_v51 = vpop.f32.mrb[8].mxu1 }
 0x6ac   :  { %v4823_v33 = vadd.f32 %v4418_v51, %v8421_v19  ;;  %v4420_v2 = vpop.f32.mrb[9].mxu1 }
 0x6ad   :  { %v4421_v42 = vpop.f32.mrb[10].mxu1 }
 0x6ae   :  { %4606 = vst.msk [vmem:[%s9709_s4 + $0x160] sm:$0xff] %vm4561_vm2, %v4823_v33  ;;  %v4824_v4 = vadd.f32 %v4421_v42, %v8432_v62  ;;  %v4423_v46 = vpop.f32.mrb[11].mxu1  ;;  %v4642_v62 = vld [vmem:[%s9710_s3] sm:$0xff]  ;;  %v9748_v33 = vld [vmem:[#allocation11_spill] sm:$0xff] }
 0x6af   :  { %4646 = vst.msk [vmem:[%s9709_s4 + $0x280] sm:$0xff] %vm4561_vm2, %v4642_v62  ;;  %v9749_v46 = vld [vmem:[#allocation12_spill] sm:$0xff] }
 0x6b0   :  { %4607 = vst.msk [vmem:[%s9709_s4 + $0x168] sm:$0xff] %vm4561_vm2, %v4824_v4 }
 0x6b3   :  { %v4426_v48 = vpop.f32.mrb[12].mxu1 }
 0x6b4   :  { %v4825_v21 = vadd.f32 %v4426_v48, %v8440_v8  ;;  %v4428_v0 = vpop.f32.mrb[13].mxu1  ;;  %v4643_v8 = vld [vmem:[%s9710_s3 + $0x8] sm:$0xff] }
 0x6b5   :  { %v4429_v19 = vpop.f32.mrb[14].mxu1  ;;  %4647 = vst.msk [vmem:[%s9709_s4 + $0x288] sm:$0xff] %vm4561_vm2, %v4643_v8  ;;  %v9751_v8 = vld [vmem:[#allocation14_spill] sm:$0xff] }
 0x6b6   :  { %4608 = vst.msk [vmem:[%s9709_s4 + $0x170] sm:$0xff] %vm4561_vm2, %v4825_v21  ;;  %v4826_v54 = vadd.f32 %v4429_v19, %v8442_v9  ;;  %v4431_v53 = vpop.f32.mrb[15].mxu1  ;;  %v4645_v9 = vld [vmem:[%s9710_s3 + $0x18] sm:$0xff] }
 0x6b7   :  { %4649 = vst.msk [vmem:[%s9709_s4 + $0x298] sm:$0xff] %vm4561_vm2, %v4645_v9  ;;  %v9750_v19 = vld [vmem:[#allocation13_spill] sm:$0xff] }
 0x6b8   :  { %4609 = vst.msk [vmem:[%s9709_s4 + $0x178] sm:$0xff] %vm4561_vm2, %v4826_v54 }
 0x6bb   :  { %v4434_v27 = vpop.f32.mrb[16].mxu1 }
 0x6bc   :  { %v4827_v41 = vadd.f32 %v4434_v27, %v8453_v15  ;;  %v4436_v10 = vpop.f32.mrb[17].mxu1 }
 0x6bd   :  { %v4437_v55 = vpop.f32.mrb[18].mxu1 }
 0x6be   :  { %4610 = vst.msk [vmem:[%s9709_s4 + $0x180] sm:$0xff] %vm4561_vm2, %v4827_v41  ;;  %v4828_v3 = vadd.f32 %v4437_v55, %v8464_v25  ;;  %v4439_v32 = vpop.f32.mrb[19].mxu1  ;;  %v9752_v41 = vld [vmem:[#allocation15_spill] sm:$0xff] }
 0x6bf   :  { %v9753_v32 = vld [vmem:[#allocation16_spill] sm:$0xff] }
 0x6c0   :  { %4611 = vst.msk [vmem:[%s9709_s4 + $0x188] sm:$0xff] %vm4561_vm2, %v4828_v3 }
 0x6c3   :  { %v4442_v63 = vpop.f32.mrb[20].mxu1 }
 0x6c4   :  { %v4829_v14 = vadd.f32 %v4442_v63, %v8472_v50  ;;  %v4444_v60 = vpop.f32.mrb[21].mxu1 }
 0x6c5   :  { %v4445_v15 = vpop.f32.mrb[22].mxu1 }
 0x6c6   :  { %4612 = vst.msk [vmem:[%s9709_s4 + $0x190] sm:$0xff] %vm4561_vm2, %v4829_v14  ;;  %v4830_v11 = vadd.f32 %v4445_v15, %v8474_v28  ;;  %v4447_v43 = vpop.f32.mrb[23].mxu1  ;;  %v9754_v15 = vld [vmem:[#allocation17_spill] sm:$0xff] }
 0x6c8   :  { %4613 = vst.msk [vmem:[%s9709_s4 + $0x198] sm:$0xff] %vm4561_vm2, %v4830_v11 }
 0x6cb   :  { %v4450_v25 = vpop.f32.mrb[24].mxu1 }
 0x6cc   :  { %v4831_v6 = vadd.f32 %v4450_v25, %v9739_v39  ;;  %v4452_v47 = vpop.f32.mrb[25].mxu1  ;;  %v9755_v39 = vld [vmem:[#allocation18_spill] sm:$0xff] }
 0x6cd   :  { %v4453_v50 = vpop.f32.mrb[26].mxu1 }
 0x6ce   :  { %4614 = vst.msk [vmem:[%s9709_s4 + $0x1a0] sm:$0xff] %vm4561_vm2, %v4831_v6  ;;  %v4832_v30 = vadd.f32 %v4453_v50, %v9740_v38  ;;  %v4455_v49 = vpop.f32.mrb[27].mxu1  ;;  %v9756_v38 = vld [vmem:[#allocation19_spill] sm:$0xff] }
 0x6d0   :  { %4615 = vst.msk [vmem:[%s9709_s4 + $0x1a8] sm:$0xff] %vm4561_vm2, %v4832_v30 }
 0x6d3   :  { %v4458_v28 = vpop.f32.mrb[28].mxu1 }
 0x6d4   :  { %v4833_v61 = vadd.f32 %v4458_v28, %v9741_v16  ;;  %v4460_v29 = vpop.f32.mrb[29].mxu1  ;;  %v9757_v16 = vld [vmem:[#allocation20_spill] sm:$0xff] }
 0x6d5   :  { %v4461_v13 = vpop.f32.mrb[30].mxu1 }
 0x6d6   :  { %4616 = vst.msk [vmem:[%s9709_s4 + $0x1b0] sm:$0xff] %vm4561_vm2, %v4833_v61  ;;  %v4834_v58 = vadd.f32 %v4461_v13, %v9742_v12  ;;  %v4463_v7 = vpop.f32.mrb[31].mxu1  ;;  %v9758_v12 = vld [vmem:[#allocation21_spill] sm:$0xff] }
 0x6d8   :  { %4617 = vst.msk [vmem:[%s9709_s4 + $0x1b8] sm:$0xff] %vm4561_vm2, %v4834_v58 }
 0x6db   :  { %v4466_v36 = vpop.f32.mrb[32].mxu1 }
 0x6dc   :  { %v4835_v23 = vadd.f32 %v4466_v36, %v9743_v22  ;;  %v4468_v18 = vpop.f32.mrb[33].mxu1  ;;  %v9759_v22 = vld [vmem:[#allocation22_spill] sm:$0xff] }
 0x6dd   :  { %v4469_v40 = vpop.f32.mrb[34].mxu1 }
 0x6de   :  { %4618 = vst.msk [vmem:[%s9709_s4 + $0x1c0] sm:$0xff] %vm4561_vm2, %v4835_v23  ;;  %v4836_v34 = vadd.f32 %v4469_v40, %v9744_v57  ;;  %v4471_v5 = vpop.f32.mrb[35].mxu1  ;;  %v9760_v57 = vld [vmem:[#allocation23_spill] sm:$0xff] }
 0x6e0   :  { %4619 = vst.msk [vmem:[%s9709_s4 + $0x1c8] sm:$0xff] %vm4561_vm2, %v4836_v34 }
 0x6e3   :  { %v4474_v24 = vpop.f32.mrb[36].mxu1 }
 0x6e4   :  { %v4837_v52 = vadd.f32 %v4474_v24, %v9745_v59  ;;  %v4476_v26 = vpop.f32.mrb[37].mxu1  ;;  %v9761_v59 = vld [vmem:[#allocation24_spill] sm:$0xff] }
 0x6e5   :  { %v4477_v20 = vpop.f32.mrb[38].mxu1 }
 0x6e6   :  { %4620 = vst.msk [vmem:[%s9709_s4 + $0x1d0] sm:$0xff] %vm4561_vm2, %v4837_v52  ;;  %v4838_v1 = vadd.f32 %v4477_v20, %v9746_v31  ;;  %v4479_v56 = vpop.f32.mrb[39].mxu1  ;;  %v9762_v31 = vld [vmem:[#allocation25_spill] sm:$0xff] }
 0x6e8   :  { %4621 = vst.msk [vmem:[%s9709_s4 + $0x1d8] sm:$0xff] %vm4561_vm2, %v4838_v1 }
 0x6eb   :  { %v4482_v44 = vpop.f32.mrb[40].mxu1 }
 0x6ec   :  { %v4839_v35 = vadd.f32 %v4482_v44, %v9747_v37  ;;  %v4484_v17 = vpop.f32.mrb[41].mxu1  ;;  %v9763_v37 = vld [vmem:[#allocation26_spill] sm:$0xff] }
 0x6ed   :  { %v4485_v51 = vpop.f32.mrb[42].mxu1 }
 0x6ee   :  { %4622 = vst.msk [vmem:[%s9709_s4 + $0x1e0] sm:$0xff] %vm4561_vm2, %v4839_v35  ;;  %v4840_v2 = vadd.f32 %v4485_v51, %v9748_v33  ;;  %v4487_v42 = vpop.f32.mrb[43].mxu1  ;;  %v9764_v33 = vld [vmem:[#allocation27_spill] sm:$0xff] }
 0x6f0   :  { %4623 = vst.msk [vmem:[%s9709_s4 + $0x1e8] sm:$0xff] %vm4561_vm2, %v4840_v2 }
 0x6f3   :  { %v4490_v4 = vpop.f32.mrb[44].mxu1 }
 0x6f4   :  { %v4841_v48 = vadd.f32 %v4490_v4, %v9749_v46  ;;  %v4492_v21 = vpop.f32.mrb[45].mxu1  ;;  %v9765_v46 = vld [vmem:[#allocation28_spill] sm:$0xff] }
 0x6f5   :  { %v4493_v0 = vpop.f32.mrb[46].mxu1 }
 0x6f6   :  { %4624 = vst.msk [vmem:[%s9709_s4 + $0x1f0] sm:$0xff] %vm4561_vm2, %v4841_v48  ;;  %v4842_v54 = vadd.f32 %v4493_v0, %v9750_v19  ;;  %v4495_v53 = vpop.f32.mrb[47].mxu1  ;;  %v9766_v19 = vld [vmem:[#allocation29_spill] sm:$0xff] }
 0x6f8   :  { %4625 = vst.msk [vmem:[%s9709_s4 + $0x1f8] sm:$0xff] %vm4561_vm2, %v4842_v54 }
 0x6fb   :  { %v4498_v62 = vpop.f32.mrb[48].mxu1 }
 0x6fc   :  { %v4843_v45 = vadd.f32 %v4498_v62, %v9751_v8  ;;  %v4500_v9 = vpop.f32.mrb[49].mxu1 }
 0x6fd   :  { %v4501_v27 = vpop.f32.mrb[50].mxu1 }
 0x6fe   :  { %4626 = vst.msk [vmem:[%s9709_s4 + $0x200] sm:$0xff] %vm4561_vm2, %v4843_v45  ;;  %v4844_v10 = vadd.f32 %v4501_v27, %v9752_v41  ;;  %v4503_v55 = vpop.f32.mrb[51].mxu1 }
 0x700   :  { %4627 = vst.msk [vmem:[%s9709_s4 + $0x208] sm:$0xff] %vm4561_vm2, %v4844_v10 }
 0x703   :  { %v4506_v3 = vpop.f32.mrb[52].mxu1 }
 0x704   :  { %v4845_v63 = vadd.f32 %v4506_v3, %v9753_v32  ;;  %v4508_v14 = vpop.f32.mrb[53].mxu1 }
 0x705   :  { %v4509_v60 = vpop.f32.mrb[54].mxu1 }
 0x706   :  { %4628 = vst.msk [vmem:[%s9709_s4 + $0x210] sm:$0xff] %vm4561_vm2, %v4845_v63  ;;  %v4846_v11 = vadd.f32 %v4509_v60, %v9754_v15  ;;  %v4511_v43 = vpop.f32.mrb[55].mxu1 }
 0x708   :  { %4629 = vst.msk [vmem:[%s9709_s4 + $0x218] sm:$0xff] %vm4561_vm2, %v4846_v11 }
 0x70b   :  { %v4514_v25 = vpop.f32.mrb[56].mxu1 }
 0x70c   :  { %v4847_v6 = vadd.f32 %v4514_v25, %v9755_v39  ;;  %v4516_v47 = vpop.f32.mrb[57].mxu1 }
 0x70d   :  { %v4517_v50 = vpop.f32.mrb[58].mxu1 }
 0x70e   :  { %4630 = vst.msk [vmem:[%s9709_s4 + $0x220] sm:$0xff] %vm4561_vm2, %v4847_v6  ;;  %v4848_v30 = vadd.f32 %v4517_v50, %v9756_v38  ;;  %v4519_v49 = vpop.f32.mrb[59].mxu1 }
 0x710   :  { %4631 = vst.msk [vmem:[%s9709_s4 + $0x228] sm:$0xff] %vm4561_vm2, %v4848_v30 }
 0x713   :  { %v4522_v28 = vpop.f32.mrb[60].mxu1 }
 0x714   :  { %v4849_v61 = vadd.f32 %v4522_v28, %v9757_v16  ;;  %v4524_v29 = vpop.f32.mrb[61].mxu1 }
 0x715   :  { %v4525_v13 = vpop.f32.mrb[62].mxu1 }
 0x716   :  { %4632 = vst.msk [vmem:[%s9709_s4 + $0x230] sm:$0xff] %vm4561_vm2, %v4849_v61  ;;  %v4850_v58 = vadd.f32 %v4525_v13, %v9758_v12  ;;  %v4527_v7 = vpop.f32.mrb[63].mxu1 }
 0x718   :  { %4633 = vst.msk [vmem:[%s9709_s4 + $0x238] sm:$0xff] %vm4561_vm2, %v4850_v58 }
 0x71b   :  { %v4530_v36 = vpop.f32.mrb[64].mxu1 }
 0x71c   :  { %v4851_v23 = vadd.f32 %v4530_v36, %v9759_v22  ;;  %v4532_v18 = vpop.f32.mrb[65].mxu1 }
 0x71d   :  { %v4533_v40 = vpop.f32.mrb[66].mxu1 }
 0x71e   :  { %4634 = vst.msk [vmem:[%s9709_s4 + $0x240] sm:$0xff] %vm4561_vm2, %v4851_v23  ;;  %v4852_v34 = vadd.f32 %v4533_v40, %v9760_v57  ;;  %v4535_v5 = vpop.f32.mrb[67].mxu1 }
 0x720   :  { %4635 = vst.msk [vmem:[%s9709_s4 + $0x248] sm:$0xff] %vm4561_vm2, %v4852_v34 }
 0x723   :  { %v4538_v24 = vpop.f32.mrb[68].mxu1 }
 0x724   :  { %v4853_v52 = vadd.f32 %v4538_v24, %v9761_v59  ;;  %v4540_v26 = vpop.f32.mrb[69].mxu1 }
 0x725   :  { %v4541_v20 = vpop.f32.mrb[70].mxu1 }
 0x726   :  { %4636 = vst.msk [vmem:[%s9709_s4 + $0x250] sm:$0xff] %vm4561_vm2, %v4853_v52  ;;  %v4854_v1 = vadd.f32 %v4541_v20, %v9762_v31  ;;  %v4543_v56 = vpop.f32.mrb[71].mxu1 }
 0x728   :  { %4637 = vst.msk [vmem:[%s9709_s4 + $0x258] sm:$0xff] %vm4561_vm2, %v4854_v1 }
 0x72b   :  { %v4546_v44 = vpop.f32.mrb[72].mxu1 }
 0x72c   :  { %v4855_v35 = vadd.f32 %v4546_v44, %v9763_v37  ;;  %v4548_v17 = vpop.f32.mrb[73].mxu1 }
 0x72d   :  { %v4549_v51 = vpop.f32.mrb[74].mxu1 }
 0x72e   :  { %4638 = vst.msk [vmem:[%s9709_s4 + $0x260] sm:$0xff] %vm4561_vm2, %v4855_v35  ;;  %v4856_v2 = vadd.f32 %v4549_v51, %v9764_v33  ;;  %v4551_v42 = vpop.f32.mrb[75].mxu1 }
 0x730   :  { %4639 = vst.msk [vmem:[%s9709_s4 + $0x268] sm:$0xff] %vm4561_vm2, %v4856_v2 }
 0x733   :  { %v4554_v4 = vpop.f32.mrb[76].mxu1 }
 0x734   :  { %v4857_v48 = vadd.f32 %v4554_v4, %v9765_v46  ;;  %v4556_v21 = vpop.f32.mrb[77].mxu1 }
 0x735   :  { %v4557_v0 = vpop.f32.mrb[78].mxu1 }
 0x736   :  { %4640 = vst.msk [vmem:[%s9709_s4 + $0x270] sm:$0xff] %vm4561_vm2, %v4857_v48  ;;  %v4858_v54 = vadd.f32 %v4557_v0, %v9766_v19  ;;  %v4559_v53 = vpop.f32.mrb[79].mxu1 }
 0x738   :  { %4641 = vst.msk [vmem:[%s9709_s4 + $0x278] sm:$0xff] %vm4561_vm2, %v4858_v54 }

</bundles_post_ra>
